<compile_context>
chip_gen: v7x
topology: tpu7x:2x2x1
jax: 0.10.0
libtpu: 0.0.40
codegen_flags: <defaults>
</compile_context>

<pallas_src>
import functools
import math

import jax
import jax.numpy as jnp
from jax.experimental import pallas as pl
from jax.experimental.pallas import tpu as pltpu

F32 = jnp.float32


# ----------------------------- per-layer parameter layout -----------------------------

def _style_param_shapes(prefix, D, d_latent):
    return [
        (prefix + "st_lat_w", (d_latent, 2 * D)),
        (prefix + "st_lat_b", (1, 2 * D)),
        (prefix + "st_ln_g", (1, D)),
        (prefix + "st_ln_b", (1, D)),
        (prefix + "st_out_w", (D, D)),
        (prefix + "st_out_b", (1, D)),
    ]


def _mha_param_shapes(prefix, D, d_latent, H, dk, dv):
    return [
        (prefix + "wq", (D, H * dk)),
        (prefix + "bq", (1, H * dk)),
        (prefix + "wkv", (D, H * (dk + dv))),      # fused K|V projection (lane-dense)
        (prefix + "bkv", (1, H * (dk + dv))),
        (prefix + "fc_w", (H * dv, D)),
        (prefix + "fc_b", (1, D)),
        (prefix + "ln_g", (1, D)),
        (prefix + "ln_b", (1, D)),
    ] + _style_param_shapes(prefix, D, d_latent)


def _ffn_param_shapes(D, d_latent, d_inner):
    return [
        ("ffn_w1", (D, d_inner)),
        ("ffn_b1", (1, d_inner)),
        ("ffn_w2", (d_inner, D)),
        ("ffn_b2", (1, D)),
        ("ffn_ln_g", (1, D)),
        ("ffn_ln_b", (1, D)),
    ] + _style_param_shapes("ffn_", D, d_latent)


def layer_param_shapes(D, d_latent, d_inner, H, dk, dv):
    return (_mha_param_shapes("slf_", D, d_latent, H, dk, dv)
            + _mha_param_shapes("crs_", D, d_latent, H, dk, dv)
            + _ffn_param_shapes(D, d_latent, d_inner))


# ----------------------------- fused decoder-stack kernel -----------------------------

def _decoder_stack_kernel(*refs, names, B, T, S, D, H, dk, dv):
    n_w = len(names)
    dec0_ref, enc_ref, lat_ref, slfm_ref, crsm_ref = refs[:5]
    w_refs = refs[5:5 + n_w]
    out_ref = refs[5 + n_w]          # resident activation [B*T, D] (accumulator pattern)
    attn_scr = refs[6 + n_w]         # VMEM [B*T, H*dv]  per-head attention outputs
    mod_scr = refs[7 + n_w]          # VMEM [B*T, D]     modulated-LN buffer
    wd = dict(zip(names, w_refs))

    def w(name):
        return wd[name][0]           # drop the size-1 layer-block dim

    # initialize the resident activation with the embedded sequence at layer 0
    @pl.when(pl.program_id(0) == 0)
    def _():
        out_ref[...] = dec0_ref[...]

    lat = lat_ref[...]                       # [B, d_latent]
    lat_silu = lat * jax.nn.sigmoid(lat)     # SiLU once, reused by all 3 style blocks
    enc = enc_ref[...]                       # [B*S, D]
    slf_mask = slfm_ref[...]                 # [B*T, T]
    crs_mask = crsm_ref[...]                 # [B, S]  (broadcast over T in-kernel)

    def layer_norm(x, g, b, eps):
        mu = jnp.mean(x, axis=-1, keepdims=True)
        var = jnp.mean(jnp.square(x - mu), axis=-1, keepdims=True)
        return (x - mu) * jax.lax.rsqrt(var + eps) * g + b

    def silu(x):
        return x * jax.nn.sigmoid(x)

    def gelu_tanh(x):
        # tanh approximation (review request); exact erf version differs by <~3e-3
        c = math.sqrt(2.0 / math.pi)
        return 0.5 * x * (1.0 + jnp.tanh(c * (x + 0.044715 * x * x * x)))

    def stylize(h, prefix):
        # ScaledStylizationBlock: (SiLU->Linear)(latent) -> (scale, shift);
        # LN(h)*(1+scale)+shift -> SiLU -> Linear.   emb_norm eps = 1e-5 (torch default).
        lat_out = (jnp.dot(lat_silu, w(prefix + "st_lat_w"), preferred_element_type=F32)
                   + w(prefix + "st_lat_b"))                  # [B, 2D]
        scale = lat_out[:, :D]
        shift = lat_out[:, D:]
        hn = layer_norm(h, w(prefix + "st_ln_g"), w(prefix + "st_ln_b"), 1e-5)
        for bi in range(B):   # broadcast per-batch scale/shift over T rows, in VMEM
            mod_scr[bi * T:(bi + 1) * T, :] = (
                hn[bi * T:(bi + 1) * T, :] * (1.0 + scale[bi:bi + 1, :])
                + shift[bi:bi + 1, :])
        hm = silu(mod_scr[...])
        return (jnp.dot(hm, w(prefix + "st_out_w"), preferred_element_type=F32)
                + w(prefix + "st_out_b"))

    def mha(x_q, x_kv, Tk, mask_of_batch, prefix):
        # x_q: [B*T, D] (also the residual), x_kv: [B*Tk, D]
        q = jnp.dot(x_q, w(prefix + "wq"), preferred_element_type=F32) + w(prefix + "bq")
        kv = jnp.dot(x_kv, w(prefix + "wkv"), preferred_element_type=F32) + w(prefix + "bkv")
        k = kv[:, :H * dk]
        v = kv[:, H * dk:]
        inv_temp = 1.0 / math.sqrt(dk)
        for bi in range(B):
            m = mask_of_batch(bi)                              # [T, Tk] or [1, Tk]
            for hi in range(H):
                qbh = q[bi * T:(bi + 1) * T, hi * dk:(hi + 1) * dk]     # [T, dk]
                kbh = k[bi * Tk:(bi + 1) * Tk, hi * dk:(hi + 1) * dk]   # [Tk, dk]
                vbh = v[bi * Tk:(bi + 1) * Tk, hi * dv:(hi + 1) * dv]   # [Tk, dv]
                s = jax.lax.dot_general(qbh, kbh, (((1,), (1,)), ((), ())),
                                        preferred_element_type=F32) * inv_temp
                s = jnp.where(m == 0.0, -1000000000.0, s)
                s = s - jnp.max(s, axis=-1, keepdims=True)
                p = jnp.exp(s)
                p = p * pl.reciprocal(jnp.sum(p, axis=-1, keepdims=True), approx=True)
                attn_scr[bi * T:(bi + 1) * T, hi * dv:(hi + 1) * dv] = jnp.dot(
                    p, vbh, preferred_element_type=F32)
        a = attn_scr[...]                                      # [B*T, H*dv]
        fc = jnp.dot(a, w(prefix + "fc_w"), preferred_element_type=F32) + w(prefix + "fc_b")
        st = stylize(fc, prefix)
        return layer_norm(st + x_q, w(prefix + "ln_g"), w(prefix + "ln_b"), 1e-6)

    # -------- one decoder layer per grid step, activation carried in out_ref --------
    x = out_ref[...]
    x = mha(x, x, T, lambda bi: slf_mask[bi * T:(bi + 1) * T, :], "slf_")   # self-attn
    x = mha(x, enc, S, lambda bi: crs_mask[bi:bi + 1, :], "crs_")           # cross-attn
    # FFN
    h = jnp.dot(x, w("ffn_w1"), preferred_element_type=F32) + w("ffn_b1")
    h = gelu_tanh(h)
    h = jnp.dot(h, w("ffn_w2"), preferred_element_type=F32) + w("ffn_b2")
    st = stylize(h, "ffn_")
    x = layer_norm(st + x, w("ffn_ln_g"), w("ffn_ln_b"), 1e-6)
    out_ref[...] = x


# ----------------------------- forward (wrapper) -----------------------------

def motion_transformer_forward(params, trg_seq, trg_mask, enc_output, src_mask, latent,
                               *, n_head, d_k, d_v):
    """MotionTransformerV1.forward (return_attns=False), eval mode."""
    token_emb = params["token_emb"]
    pos_enc = params["pos_enc"]
    stacked = params["stacked"]

    B, T = trg_seq.shape
    S = enc_output.shape[1]
    D = token_emb.shape[1]
    L = stacked["slf_wq"].shape[0]
    d_latent = latent.shape[-1]
    d_inner = stacked["ffn_w1"].shape[2]

    # token embedding + positional encoding (tiny data-dependent gather; plain XLA)
    dec = token_emb[trg_seq] * (float(D) ** 0.5)
    dec = dec + pos_enc[:T][None, :, :]
    dec0 = dec.reshape(B * T, D).astype(F32)

    enc_flat = enc_output.reshape(B * S, D).astype(F32)
    lat2d = latent.reshape(B, d_latent).astype(F32)
    slf_mask = jnp.broadcast_to(trg_mask.astype(F32), (B, T, T)).reshape(B * T, T)
    crs_mask = src_mask.astype(F32).reshape(B, S)     # [B,1,S] -> [B,S]; no T-x HBM broadcast

    shapes = layer_param_shapes(D, d_latent, d_inner, n_head, d_k, d_v)
    names = tuple(n for n, _ in shapes)
    weight_args = [stacked[n] for n in names]

    act_specs = [
        pl.BlockSpec((B * T, D), lambda l: (0, 0)),       # dec0
        pl.BlockSpec((B * S, D), lambda l: (0, 0)),       # enc_output (flat)
        pl.BlockSpec((B, d_latent), lambda l: (0, 0)),    # latent
        pl.BlockSpec((B * T, T), lambda l: (0, 0)),       # self-attn mask
        pl.BlockSpec((B, S), lambda l: (0, 0)),           # cross-attn mask
    ]
    # stacked per-layer weights: block (1, r, c) indexed by the layer grid axis
    w_specs = [pl.BlockSpec((1,) + stacked[n].shape[1:], lambda l: (l, 0, 0))
               for n in names]

    kernel = functools.partial(_decoder_stack_kernel, names=names,
                               B=B, T=T, S=S, D=D, H=n_head, dk=d_k, dv=d_v)

    out = pl.pallas_call(
        kernel,
        out_shape=jax.ShapeDtypeStruct((B * T, D), F32),
        grid=(L,),
        in_specs=act_specs + w_specs,
        out_specs=pl.BlockSpec((B * T, D), lambda l: (0, 0)),
        scratch_shapes=[
            pltpu.VMEM((B * T, n_head * d_v), F32),   # per-head attention outputs
            pltpu.VMEM((B * T, D), F32),              # modulated-LN buffer
        ],
        compiler_params=pltpu.CompilerParams(
            # layers are sequential (activation carried in the resident output block)
            dimension_semantics=("arbitrary",)),
    )(dec0, enc_flat, lat2d, slf_mask, crs_mask, *weight_args)

    return (out.reshape(B, T, D),)


# ----------------------------- deterministic parameter init -----------------------------

def _xavier_normal(key, d_in, d_out):
    std = math.sqrt(2.0 / (d_in + d_out))
    return jax.random.normal(key, (d_in, d_out), F32) * std


def _init_one_layer(key, D, d_latent, d_inner, H, dk, dv):
    keys = iter(jax.random.split(key, 16))
    p = {}

    def style(prefix):
        p[prefix + "st_lat_w"] = _xavier_normal(next(keys), d_latent, 2 * D)
        p[prefix + "st_lat_b"] = jnp.zeros((1, 2 * D), F32)
        p[prefix + "st_ln_g"] = jnp.ones((1, D), F32)
        p[prefix + "st_ln_b"] = jnp.zeros((1, D), F32)
        p[prefix + "st_out_w"] = _xavier_normal(next(keys), D, D)
        p[prefix + "st_out_b"] = jnp.zeros((1, D), F32)

    def mha(prefix):
        p[prefix + "wq"] = _xavier_normal(next(keys), D, H * dk)
        p[prefix + "bq"] = jnp.zeros((1, H * dk), F32)
        wk = _xavier_normal(next(keys), D, H * dk)
        wv = _xavier_normal(next(keys), D, H * dv)
        p[prefix + "wkv"] = jnp.concatenate([wk, wv], axis=1)   # fused K|V
        p[prefix + "bkv"] = jnp.zeros((1, H * (dk + dv)), F32)
        p[prefix + "fc_w"] = _xavier_normal(next(keys), H * dv, D)
        p[prefix + "fc_b"] = jnp.zeros((1, D), F32)
        p[prefix + "ln_g"] = jnp.ones((1, D), F32)
        p[prefix + "ln_b"] = jnp.zeros((1, D), F32)
        style(prefix)

    mha("slf_")
    mha("crs_")
    p["ffn_w1"] = _xavier_normal(next(keys), D, d_inner)
    p["ffn_b1"] = jnp.zeros((1, d_inner), F32)
    p["ffn_w2"] = _xavier_normal(next(keys), d_inner, D)
    p["ffn_b2"] = jnp.zeros((1, D), F32)
    p["ffn_ln_g"] = jnp.ones((1, D), F32)
    p["ffn_ln_b"] = jnp.zeros((1, D), F32)
    style("ffn_")
    return p


def make_positional_encoding(max_len, d_model):
    pos = jnp.arange(max_len, dtype=F32)[:, None]
    _2i = jnp.arange(0, d_model, 2, dtype=F32)
    enc = jnp.zeros((max_len, d_model), F32)
    enc = enc.at[:, 0::2].set(jnp.sin(pos / jnp.power(10000.0, _2i / d_model)))
    enc = enc.at[:, 1::2].set(jnp.cos(pos / jnp.power(10000.0, _2i / d_model)))
    return enc


def init_params(key, *, d_model, d_latent, d_inner, d_k, d_v, n_head,
                n_layers, n_tokens, pad_idx, max_len=64):
    keys = jax.random.split(key, n_layers + 1)
    tok = jax.random.normal(keys[0], (n_tokens, d_model), F32)
    tok = tok.at[pad_idx].set(0.0)           # padding_idx row zeroed
    layer_dicts = [_init_one_layer(keys[1 + li], d_model, d_latent, d_inner,
                                   n_head, d_k, d_v)
                   for li in range(n_layers)]
    shapes = layer_param_shapes(d_model, d_latent, d_inner, n_head, d_k, d_v)
    stacked = {name: jnp.stack([ld[name] for ld in layer_dicts], axis=0)
               for name, _ in shapes}
    return dict(token_emb=tok,
                pos_enc=make_positional_encoding(max_len, d_model),
                stacked=stacked)


# ----------------------------- main -----------------------------

if __name__ == "__main__":
    B, T, S = 2, 8, 16
    d_model, d_latent, d_inner = 32, 16, 64
    n_head, d_k, d_v, n_layers = 4, 8, 8, 2
    n_tokens, pad_idx = 50, 0

    root = jax.random.PRNGKey(0)
    kp, k1, k2, k3 = jax.random.split(root, 4)

    params = init_params(kp, d_model=d_model, d_latent=d_latent, d_inner=d_inner,
                         d_k=d_k, d_v=d_v, n_head=n_head, n_layers=n_layers,
                         n_tokens=n_tokens, pad_idx=pad_idx)

    trg_seq = jax.random.randint(k1, (B, T), 1, n_tokens, dtype=jnp.int32)
    trg_mask = jnp.broadcast_to(
        jnp.tril(jnp.ones((T, T), jnp.float32))[None, :, :], (B, T, T))  # causal mask
    enc_output = jax.random.normal(k2, (B, S, d_model), jnp.float32)
    src_mask = jnp.ones((B, 1, S), jnp.float32).at[:, :, S - 2:].set(0.0)  # mask last 2 enc tokens
    latent = jax.random.normal(k3, (B, 1, d_latent), jnp.float32)

    forward = jax.jit(functools.partial(
        motion_transformer_forward, n_head=n_head, d_k=d_k, d_v=d_v))

    (dec_out,) = forward(params, trg_seq, trg_mask, enc_output, src_mask, latent)
    dec_out = jax.block_until_ready(dec_out)
    assert dec_out.shape == (B, T, d_model)
    assert bool(jnp.all(jnp.isfinite(dec_out)))
    print("KERNEL_OK")
</pallas_src>

<mosaic_0001>
module attributes {stable_mosaic.version = 11 : i64} {
  func.func @_decoder_stack_kernel(%arg0: i32, %arg1: memref<16x32xf32, #tpu.memory_space<vmem>>, %arg2: memref<32x32xf32, #tpu.memory_space<vmem>>, %arg3: memref<2x16xf32, #tpu.memory_space<vmem>>, %arg4: memref<16x8xf32, #tpu.memory_space<vmem>>, %arg5: memref<2x16xf32, #tpu.memory_space<vmem>>, %arg6: memref<1x32x32xf32, #tpu.memory_space<vmem>>, %arg7: memref<1x1x32xf32, #tpu.memory_space<vmem>>, %arg8: memref<1x32x64xf32, #tpu.memory_space<vmem>>, %arg9: memref<1x1x64xf32, #tpu.memory_space<vmem>>, %arg10: memref<1x32x32xf32, #tpu.memory_space<vmem>>, %arg11: memref<1x1x32xf32, #tpu.memory_space<vmem>>, %arg12: memref<1x1x32xf32, #tpu.memory_space<vmem>>, %arg13: memref<1x1x32xf32, #tpu.memory_space<vmem>>, %arg14: memref<1x16x64xf32, #tpu.memory_space<vmem>>, %arg15: memref<1x1x64xf32, #tpu.memory_space<vmem>>, %arg16: memref<1x1x32xf32, #tpu.memory_space<vmem>>, %arg17: memref<1x1x32xf32, #tpu.memory_space<vmem>>, %arg18: memref<1x32x32xf32, #tpu.memory_space<vmem>>, %arg19: memref<1x1x32xf32, #tpu.memory_space<vmem>>, %arg20: memref<1x32x32xf32, #tpu.memory_space<vmem>>, %arg21: memref<1x1x32xf32, #tpu.memory_space<vmem>>, %arg22: memref<1x32x64xf32, #tpu.memory_space<vmem>>, %arg23: memref<1x1x64xf32, #tpu.memory_space<vmem>>, %arg24: memref<1x32x32xf32, #tpu.memory_space<vmem>>, %arg25: memref<1x1x32xf32, #tpu.memory_space<vmem>>, %arg26: memref<1x1x32xf32, #tpu.memory_space<vmem>>, %arg27: memref<1x1x32xf32, #tpu.memory_space<vmem>>, %arg28: memref<1x16x64xf32, #tpu.memory_space<vmem>>, %arg29: memref<1x1x64xf32, #tpu.memory_space<vmem>>, %arg30: memref<1x1x32xf32, #tpu.memory_space<vmem>>, %arg31: memref<1x1x32xf32, #tpu.memory_space<vmem>>, %arg32: memref<1x32x32xf32, #tpu.memory_space<vmem>>, %arg33: memref<1x1x32xf32, #tpu.memory_space<vmem>>, %arg34: memref<1x32x64xf32, #tpu.memory_space<vmem>>, %arg35: memref<1x1x64xf32, #tpu.memory_space<vmem>>, %arg36: memref<1x64x32xf32, #tpu.memory_space<vmem>>, %arg37: memref<1x1x32xf32, #tpu.memory_space<vmem>>, %arg38: memref<1x1x32xf32, #tpu.memory_space<vmem>>, %arg39: memref<1x1x32xf32, #tpu.memory_space<vmem>>, %arg40: memref<1x16x64xf32, #tpu.memory_space<vmem>>, %arg41: memref<1x1x64xf32, #tpu.memory_space<vmem>>, %arg42: memref<1x1x32xf32, #tpu.memory_space<vmem>>, %arg43: memref<1x1x32xf32, #tpu.memory_space<vmem>>, %arg44: memref<1x32x32xf32, #tpu.memory_space<vmem>>, %arg45: memref<1x1x32xf32, #tpu.memory_space<vmem>>, %arg46: memref<16x32xf32, #tpu.memory_space<vmem>>, %arg47: memref<16x32xf32, #tpu.memory_space<vmem>>, %arg48: memref<16x32xf32, #tpu.memory_space<vmem>>) attributes {dimension_semantics = [#tpu.dimension_semantics<arbitrary>], iteration_bounds = array<i64: 2>, scalar_prefetch = 0 : i64, scratch_operands = 2 : i64, tpu.core_type = #tpu.core_type<tc>, window_params = [{pipeline_mode = #tpu.pipeline_mode<synchronous>, transform_indices = @transform_0, window_bounds = array<i64: 16, 32>}, {pipeline_mode = #tpu.pipeline_mode<synchronous>, transform_indices = @transform_1, window_bounds = array<i64: 32, 32>}, {pipeline_mode = #tpu.pipeline_mode<synchronous>, transform_indices = @transform_2, window_bounds = array<i64: 2, 16>}, {pipeline_mode = #tpu.pipeline_mode<synchronous>, transform_indices = @transform_3, window_bounds = array<i64: 16, 8>}, {pipeline_mode = #tpu.pipeline_mode<synchronous>, transform_indices = @transform_4, window_bounds = array<i64: 2, 16>}, {transform_indices = @transform_5, window_bounds = array<i64: 1, 32, 32>}, {transform_indices = @transform_6, window_bounds = array<i64: 1, 1, 32>}, {transform_indices = @transform_7, window_bounds = array<i64: 1, 32, 64>}, {transform_indices = @transform_8, window_bounds = array<i64: 1, 1, 64>}, {transform_indices = @transform_9, window_bounds = array<i64: 1, 32, 32>}, {transform_indices = @transform_10, window_bounds = array<i64: 1, 1, 32>}, {transform_indices = @transform_11, window_bounds = array<i64: 1, 1, 32>}, {transform_indices = @transform_12, window_bounds = array<i64: 1, 1, 32>}, {transform_indices = @transform_13, window_bounds = array<i64: 1, 16, 64>}, {transform_indices = @transform_14, window_bounds = array<i64: 1, 1, 64>}, {transform_indices = @transform_15, window_bounds = array<i64: 1, 1, 32>}, {transform_indices = @transform_16, window_bounds = array<i64: 1, 1, 32>}, {transform_indices = @transform_17, window_bounds = array<i64: 1, 32, 32>}, {transform_indices = @transform_18, window_bounds = array<i64: 1, 1, 32>}, {transform_indices = @transform_19, window_bounds = array<i64: 1, 32, 32>}, {transform_indices = @transform_20, window_bounds = array<i64: 1, 1, 32>}, {transform_indices = @transform_21, window_bounds = array<i64: 1, 32, 64>}, {transform_indices = @transform_22, window_bounds = array<i64: 1, 1, 64>}, {transform_indices = @transform_23, window_bounds = array<i64: 1, 32, 32>}, {transform_indices = @transform_24, window_bounds = array<i64: 1, 1, 32>}, {transform_indices = @transform_25, window_bounds = array<i64: 1, 1, 32>}, {transform_indices = @transform_26, window_bounds = array<i64: 1, 1, 32>}, {transform_indices = @transform_27, window_bounds = array<i64: 1, 16, 64>}, {transform_indices = @transform_28, window_bounds = array<i64: 1, 1, 64>}, {transform_indices = @transform_29, window_bounds = array<i64: 1, 1, 32>}, {transform_indices = @transform_30, window_bounds = array<i64: 1, 1, 32>}, {transform_indices = @transform_31, window_bounds = array<i64: 1, 32, 32>}, {transform_indices = @transform_32, window_bounds = array<i64: 1, 1, 32>}, {transform_indices = @transform_33, window_bounds = array<i64: 1, 32, 64>}, {transform_indices = @transform_34, window_bounds = array<i64: 1, 1, 64>}, {transform_indices = @transform_35, window_bounds = array<i64: 1, 64, 32>}, {transform_indices = @transform_36, window_bounds = array<i64: 1, 1, 32>}, {transform_indices = @transform_37, window_bounds = array<i64: 1, 1, 32>}, {transform_indices = @transform_38, window_bounds = array<i64: 1, 1, 32>}, {transform_indices = @transform_39, window_bounds = array<i64: 1, 16, 64>}, {transform_indices = @transform_40, window_bounds = array<i64: 1, 1, 64>}, {transform_indices = @transform_41, window_bounds = array<i64: 1, 1, 32>}, {transform_indices = @transform_42, window_bounds = array<i64: 1, 1, 32>}, {transform_indices = @transform_43, window_bounds = array<i64: 1, 32, 32>}, {transform_indices = @transform_44, window_bounds = array<i64: 1, 1, 32>}, {pipeline_mode = #tpu.pipeline_mode<synchronous>, transform_indices = @transform_45, window_bounds = array<i64: 16, 32>}]} {
    %c0_i32 = arith.constant 0 : i32
    %0 = arith.cmpi eq, %arg0, %c0_i32 : i32
    %1 = arith.extui %0 : i1 to i32
    %c0_i32_0 = arith.constant 0 : i32
    %2 = arith.cmpi ne, %1, %c0_i32_0 : i32
    scf.if %2 {
      %c0_352 = arith.constant 0 : index
      %c0_353 = arith.constant 0 : index
      %750 = vector.load %arg1[%c0_352, %c0_353] : memref<16x32xf32, #tpu.memory_space<vmem>>, vector<16x32xf32>
      %c0_354 = arith.constant 0 : index
      %c0_355 = arith.constant 0 : index
      %751 = vector.load %arg46[%c0_354, %c0_355] : memref<16x32xf32, #tpu.memory_space<vmem>>, vector<16x32xf32>
      tpu.vector_store %arg46[%c0_354, %c0_355], %750 {strides = array<i32>} : memref<16x32xf32, #tpu.memory_space<vmem>>, vector<16x32xf32>,
    } else {
    }
    %c0 = arith.constant 0 : index
    %c0_1 = arith.constant 0 : index
    %3 = vector.load %arg3[%c0, %c0_1] : memref<2x16xf32, #tpu.memory_space<vmem>>, vector<2x16xf32>
    %4 = arith.negf %3 : vector<2x16xf32>
    %5 = math.exp %4 : vector<2x16xf32>
    %cst = arith.constant 1.000000e+00 : f32
    %6 = vector.broadcast %cst : f32 to vector<2x16xf32>
    %7 = arith.addf %6, %5 : vector<2x16xf32>
    %8 = arith.divf %6, %7 : vector<2x16xf32>
    %9 = arith.mulf %3, %8 : vector<2x16xf32>
    %c0_2 = arith.constant 0 : index
    %c0_3 = arith.constant 0 : index
    %10 = vector.load %arg2[%c0_2, %c0_3] : memref<32x32xf32, #tpu.memory_space<vmem>>, vector<32x32xf32>
    %c0_4 = arith.constant 0 : index
    %c0_5 = arith.constant 0 : index
    %11 = vector.load %arg4[%c0_4, %c0_5] : memref<16x8xf32, #tpu.memory_space<vmem>>, vector<16x8xf32>
    %c0_6 = arith.constant 0 : index
    %c0_7 = arith.constant 0 : index
    %12 = vector.load %arg5[%c0_6, %c0_7] : memref<2x16xf32, #tpu.memory_space<vmem>>, vector<2x16xf32>
    %c0_8 = arith.constant 0 : index
    %c0_9 = arith.constant 0 : index
    %13 = vector.load %arg46[%c0_8, %c0_9] : memref<16x32xf32, #tpu.memory_space<vmem>>, vector<16x32xf32>
    %c0_10 = arith.constant 0 : index
    %c0_11 = arith.constant 0 : index
    %c0_12 = arith.constant 0 : index
    %14 = vector.load %arg6[%c0_10, %c0_11, %c0_12] : memref<1x32x32xf32, #tpu.memory_space<vmem>>, vector<1x32x32xf32>
    %15 = vector.shape_cast %14 : vector<1x32x32xf32> to vector<32x32xf32>
    %cst_13 = arith.constant dense<0.000000e+00> : vector<16x32xf32>
    %16 = tpu.matmul %13, %15, %cst_13 {dimension_numbers = #tpu.dot_dimension_numbers<[1], [0], [0], [1], [0, 0, 1, 1], [], []>} : vector<16x32xf32>, vector<32x32xf32>, vector<16x32xf32> -> vector<16x32xf32>
    %c0_14 = arith.constant 0 : index
    %c0_15 = arith.constant 0 : index
    %c0_16 = arith.constant 0 : index
    %17 = vector.load %arg7[%c0_14, %c0_15, %c0_16] : memref<1x1x32xf32, #tpu.memory_space<vmem>>, vector<1x1x32xf32>
    %18 = vector.shape_cast %17 : vector<1x1x32xf32> to vector<1x32xf32>
    %19 = vector.broadcast %18 : vector<1x32xf32> to vector<16x32xf32>
    %20 = arith.addf %16, %19 : vector<16x32xf32>
    %c0_17 = arith.constant 0 : index
    %c0_18 = arith.constant 0 : index
    %c0_19 = arith.constant 0 : index
    %21 = vector.load %arg8[%c0_17, %c0_18, %c0_19] : memref<1x32x64xf32, #tpu.memory_space<vmem>>, vector<1x32x64xf32>
    %22 = vector.shape_cast %21 : vector<1x32x64xf32> to vector<32x64xf32>
    %cst_20 = arith.constant dense<0.000000e+00> : vector<16x64xf32>
    %23 = tpu.matmul %13, %22, %cst_20 {dimension_numbers = #tpu.dot_dimension_numbers<[1], [0], [0], [1], [0, 0, 1, 1], [], []>} : vector<16x32xf32>, vector<32x64xf32>, vector<16x64xf32> -> vector<16x64xf32>
    %c0_21 = arith.constant 0 : index
    %c0_22 = arith.constant 0 : index
    %c0_23 = arith.constant 0 : index
    %24 = vector.load %arg9[%c0_21, %c0_22, %c0_23] : memref<1x1x64xf32, #tpu.memory_space<vmem>>, vector<1x1x64xf32>
    %25 = vector.shape_cast %24 : vector<1x1x64xf32> to vector<1x64xf32>
    %26 = vector.broadcast %25 : vector<1x64xf32> to vector<16x64xf32>
    %27 = arith.addf %23, %26 : vector<16x64xf32>
    %28 = vector.extract_strided_slice %27 {offsets = [0, 0], sizes = [16, 32], strides = [1, 1]} : vector<16x64xf32> to vector<16x32xf32>
    %29 = vector.extract_strided_slice %27 {offsets = [0, 32], sizes = [16, 32], strides = [1, 1]} : vector<16x64xf32> to vector<16x32xf32>
    %30 = vector.extract_strided_slice %11 {offsets = [0, 0], sizes = [8, 8], strides = [1, 1]} : vector<16x8xf32> to vector<8x8xf32>
    %31 = vector.extract_strided_slice %20 {offsets = [0, 0], sizes = [8, 8], strides = [1, 1]} : vector<16x32xf32> to vector<8x8xf32>
    %32 = vector.extract_strided_slice %28 {offsets = [0, 0], sizes = [8, 8], strides = [1, 1]} : vector<16x32xf32> to vector<8x8xf32>
    %33 = vector.extract_strided_slice %29 {offsets = [0, 0], sizes = [8, 8], strides = [1, 1]} : vector<16x32xf32> to vector<8x8xf32>
    %cst_24 = arith.constant dense<0.000000e+00> : vector<8x8xf32>
    %34 = tpu.matmul %31, %32, %cst_24 {dimension_numbers = #tpu.dot_dimension_numbers<[1], [1], [0], [0], [0, 0, 1, 0], [], []>} : vector<8x8xf32>, vector<8x8xf32>, vector<8x8xf32> -> vector<8x8xf32>
    %cst_25 = arith.constant 0.353553385 : f32
    %35 = vector.broadcast %cst_25 : f32 to vector<8x8xf32>
    %36 = arith.mulf %34, %35 : vector<8x8xf32>
    %cst_26 = arith.constant 0.000000e+00 : f32
    %37 = vector.broadcast %cst_26 : f32 to vector<8x8xf32>
    %38 = arith.cmpf oeq, %30, %37 : vector<8x8xf32>
    %cst_27 = arith.constant -1.000000e+09 : f32
    %39 = vector.broadcast %cst_27 : f32 to vector<8x8xf32>
    %40 = arith.select %38, %39, %36 : vector<8x8xi1>, vector<8x8xf32>
    %cst_28 = arith.constant dense<0xFF800000> : vector<8xf32>
    %41 = vector.multi_reduction <maximumf>, %40, %cst_28 [1] : vector<8x8xf32> to vector<8xf32>
    %42 = vector.shape_cast %41 : vector<8xf32> to vector<8x1xf32>
    %43 = vector.broadcast %42 : vector<8x1xf32> to vector<8x8xf32>
    %44 = arith.subf %40, %43 : vector<8x8xf32>
    %45 = math.exp %44 : vector<8x8xf32>
    %cst_29 = arith.constant dense<0.000000e+00> : vector<8xf32>
    %46 = vector.multi_reduction <add>, %45, %cst_29 [1] : vector<8x8xf32> to vector<8xf32>
    %47 = vector.shape_cast %46 : vector<8xf32> to vector<8x1xf32>
    %48 = tpu.reciprocal %47 {approx = true} : vector<8x1xf32> -> vector<8x1xf32>
    %49 = vector.broadcast %48 : vector<8x1xf32> to vector<8x8xf32>
    %50 = arith.mulf %45, %49 : vector<8x8xf32>
    %cst_30 = arith.constant dense<0.000000e+00> : vector<8x8xf32>
    %51 = tpu.matmul %50, %33, %cst_30 {dimension_numbers = #tpu.dot_dimension_numbers<[1], [0], [0], [1], [0, 0, 1, 1], [], []>} : vector<8x8xf32>, vector<8x8xf32>, vector<8x8xf32> -> vector<8x8xf32>
    %c0_31 = arith.constant 0 : index
    %c0_32 = arith.constant 0 : index
    %52 = vector.load %arg47[%c0_31, %c0_32] : memref<16x32xf32, #tpu.memory_space<vmem>>, vector<8x8xf32>
    tpu.vector_store %arg47[%c0_31, %c0_32], %51 {strides = array<i32>} : memref<16x32xf32, #tpu.memory_space<vmem>>, vector<8x8xf32>,
    %53 = vector.extract_strided_slice %20 {offsets = [0, 8], sizes = [8, 8], strides = [1, 1]} : vector<16x32xf32> to vector<8x8xf32>
    %54 = vector.extract_strided_slice %28 {offsets = [0, 8], sizes = [8, 8], strides = [1, 1]} : vector<16x32xf32> to vector<8x8xf32>
    %55 = vector.extract_strided_slice %29 {offsets = [0, 8], sizes = [8, 8], strides = [1, 1]} : vector<16x32xf32> to vector<8x8xf32>
    %cst_33 = arith.constant dense<0.000000e+00> : vector<8x8xf32>
    %56 = tpu.matmul %53, %54, %cst_33 {dimension_numbers = #tpu.dot_dimension_numbers<[1], [1], [0], [0], [0, 0, 1, 0], [], []>} : vector<8x8xf32>, vector<8x8xf32>, vector<8x8xf32> -> vector<8x8xf32>
    %cst_34 = arith.constant 0.353553385 : f32
    %57 = vector.broadcast %cst_34 : f32 to vector<8x8xf32>
    %58 = arith.mulf %56, %57 : vector<8x8xf32>
    %cst_35 = arith.constant 0.000000e+00 : f32
    %59 = vector.broadcast %cst_35 : f32 to vector<8x8xf32>
    %60 = arith.cmpf oeq, %30, %59 : vector<8x8xf32>
    %cst_36 = arith.constant -1.000000e+09 : f32
    %61 = vector.broadcast %cst_36 : f32 to vector<8x8xf32>
    %62 = arith.select %60, %61, %58 : vector<8x8xi1>, vector<8x8xf32>
    %cst_37 = arith.constant dense<0xFF800000> : vector<8xf32>
    %63 = vector.multi_reduction <maximumf>, %62, %cst_37 [1] : vector<8x8xf32> to vector<8xf32>
    %64 = vector.shape_cast %63 : vector<8xf32> to vector<8x1xf32>
    %65 = vector.broadcast %64 : vector<8x1xf32> to vector<8x8xf32>
    %66 = arith.subf %62, %65 : vector<8x8xf32>
    %67 = math.exp %66 : vector<8x8xf32>
    %cst_38 = arith.constant dense<0.000000e+00> : vector<8xf32>
    %68 = vector.multi_reduction <add>, %67, %cst_38 [1] : vector<8x8xf32> to vector<8xf32>
    %69 = vector.shape_cast %68 : vector<8xf32> to vector<8x1xf32>
    %70 = tpu.reciprocal %69 {approx = true} : vector<8x1xf32> -> vector<8x1xf32>
    %71 = vector.broadcast %70 : vector<8x1xf32> to vector<8x8xf32>
    %72 = arith.mulf %67, %71 : vector<8x8xf32>
    %cst_39 = arith.constant dense<0.000000e+00> : vector<8x8xf32>
    %73 = tpu.matmul %72, %55, %cst_39 {dimension_numbers = #tpu.dot_dimension_numbers<[1], [0], [0], [1], [0, 0, 1, 1], [], []>} : vector<8x8xf32>, vector<8x8xf32>, vector<8x8xf32> -> vector<8x8xf32>
    %c0_40 = arith.constant 0 : index
    %c8 = arith.constant 8 : index
    %74 = vector.load %arg47[%c0_40, %c8] : memref<16x32xf32, #tpu.memory_space<vmem>>, vector<8x8xf32>
    tpu.vector_store %arg47[%c0_40, %c8], %73 {strides = array<i32>} : memref<16x32xf32, #tpu.memory_space<vmem>>, vector<8x8xf32>,
    %75 = vector.extract_strided_slice %20 {offsets = [0, 16], sizes = [8, 8], strides = [1, 1]} : vector<16x32xf32> to vector<8x8xf32>
    %76 = vector.extract_strided_slice %28 {offsets = [0, 16], sizes = [8, 8], strides = [1, 1]} : vector<16x32xf32> to vector<8x8xf32>
    %77 = vector.extract_strided_slice %29 {offsets = [0, 16], sizes = [8, 8], strides = [1, 1]} : vector<16x32xf32> to vector<8x8xf32>
    %cst_41 = arith.constant dense<0.000000e+00> : vector<8x8xf32>
    %78 = tpu.matmul %75, %76, %cst_41 {dimension_numbers = #tpu.dot_dimension_numbers<[1], [1], [0], [0], [0, 0, 1, 0], [], []>} : vector<8x8xf32>, vector<8x8xf32>, vector<8x8xf32> -> vector<8x8xf32>
    %cst_42 = arith.constant 0.353553385 : f32
    %79 = vector.broadcast %cst_42 : f32 to vector<8x8xf32>
    %80 = arith.mulf %78, %79 : vector<8x8xf32>
    %cst_43 = arith.constant 0.000000e+00 : f32
    %81 = vector.broadcast %cst_43 : f32 to vector<8x8xf32>
    %82 = arith.cmpf oeq, %30, %81 : vector<8x8xf32>
    %cst_44 = arith.constant -1.000000e+09 : f32
    %83 = vector.broadcast %cst_44 : f32 to vector<8x8xf32>
    %84 = arith.select %82, %83, %80 : vector<8x8xi1>, vector<8x8xf32>
    %cst_45 = arith.constant dense<0xFF800000> : vector<8xf32>
    %85 = vector.multi_reduction <maximumf>, %84, %cst_45 [1] : vector<8x8xf32> to vector<8xf32>
    %86 = vector.shape_cast %85 : vector<8xf32> to vector<8x1xf32>
    %87 = vector.broadcast %86 : vector<8x1xf32> to vector<8x8xf32>
    %88 = arith.subf %84, %87 : vector<8x8xf32>
    %89 = math.exp %88 : vector<8x8xf32>
    %cst_46 = arith.constant dense<0.000000e+00> : vector<8xf32>
    %90 = vector.multi_reduction <add>, %89, %cst_46 [1] : vector<8x8xf32> to vector<8xf32>
    %91 = vector.shape_cast %90 : vector<8xf32> to vector<8x1xf32>
    %92 = tpu.reciprocal %91 {approx = true} : vector<8x1xf32> -> vector<8x1xf32>
    %93 = vector.broadcast %92 : vector<8x1xf32> to vector<8x8xf32>
    %94 = arith.mulf %89, %93 : vector<8x8xf32>
    %cst_47 = arith.constant dense<0.000000e+00> : vector<8x8xf32>
    %95 = tpu.matmul %94, %77, %cst_47 {dimension_numbers = #tpu.dot_dimension_numbers<[1], [0], [0], [1], [0, 0, 1, 1], [], []>} : vector<8x8xf32>, vector<8x8xf32>, vector<8x8xf32> -> vector<8x8xf32>
    %c0_48 = arith.constant 0 : index
    %c16 = arith.constant 16 : index
    %96 = vector.load %arg47[%c0_48, %c16] : memref<16x32xf32, #tpu.memory_space<vmem>>, vector<8x8xf32>
    tpu.vector_store %arg47[%c0_48, %c16], %95 {strides = array<i32>} : memref<16x32xf32, #tpu.memory_space<vmem>>, vector<8x8xf32>,
    %97 = vector.extract_strided_slice %20 {offsets = [0, 24], sizes = [8, 8], strides = [1, 1]} : vector<16x32xf32> to vector<8x8xf32>
    %98 = vector.extract_strided_slice %28 {offsets = [0, 24], sizes = [8, 8], strides = [1, 1]} : vector<16x32xf32> to vector<8x8xf32>
    %99 = vector.extract_strided_slice %29 {offsets = [0, 24], sizes = [8, 8], strides = [1, 1]} : vector<16x32xf32> to vector<8x8xf32>
    %cst_49 = arith.constant dense<0.000000e+00> : vector<8x8xf32>
    %100 = tpu.matmul %97, %98, %cst_49 {dimension_numbers = #tpu.dot_dimension_numbers<[1], [1], [0], [0], [0, 0, 1, 0], [], []>} : vector<8x8xf32>, vector<8x8xf32>, vector<8x8xf32> -> vector<8x8xf32>
    %cst_50 = arith.constant 0.353553385 : f32
    %101 = vector.broadcast %cst_50 : f32 to vector<8x8xf32>
    %102 = arith.mulf %100, %101 : vector<8x8xf32>
    %cst_51 = arith.constant 0.000000e+00 : f32
    %103 = vector.broadcast %cst_51 : f32 to vector<8x8xf32>
    %104 = arith.cmpf oeq, %30, %103 : vector<8x8xf32>
    %cst_52 = arith.constant -1.000000e+09 : f32
    %105 = vector.broadcast %cst_52 : f32 to vector<8x8xf32>
    %106 = arith.select %104, %105, %102 : vector<8x8xi1>, vector<8x8xf32>
    %cst_53 = arith.constant dense<0xFF800000> : vector<8xf32>
    %107 = vector.multi_reduction <maximumf>, %106, %cst_53 [1] : vector<8x8xf32> to vector<8xf32>
    %108 = vector.shape_cast %107 : vector<8xf32> to vector<8x1xf32>
    %109 = vector.broadcast %108 : vector<8x1xf32> to vector<8x8xf32>
    %110 = arith.subf %106, %109 : vector<8x8xf32>
    %111 = math.exp %110 : vector<8x8xf32>
    %cst_54 = arith.constant dense<0.000000e+00> : vector<8xf32>
    %112 = vector.multi_reduction <add>, %111, %cst_54 [1] : vector<8x8xf32> to vector<8xf32>
    %113 = vector.shape_cast %112 : vector<8xf32> to vector<8x1xf32>
    %114 = tpu.reciprocal %113 {approx = true} : vector<8x1xf32> -> vector<8x1xf32>
    %115 = vector.broadcast %114 : vector<8x1xf32> to vector<8x8xf32>
    %116 = arith.mulf %111, %115 : vector<8x8xf32>
    %cst_55 = arith.constant dense<0.000000e+00> : vector<8x8xf32>
    %117 = tpu.matmul %116, %99, %cst_55 {dimension_numbers = #tpu.dot_dimension_numbers<[1], [0], [0], [1], [0, 0, 1, 1], [], []>} : vector<8x8xf32>, vector<8x8xf32>, vector<8x8xf32> -> vector<8x8xf32>
    %c0_56 = arith.constant 0 : index
    %c24 = arith.constant 24 : index
    %118 = vector.load %arg47[%c0_56, %c24] : memref<16x32xf32, #tpu.memory_space<vmem>>, vector<8x8xf32>
    tpu.vector_store %arg47[%c0_56, %c24], %117 {strides = array<i32>} : memref<16x32xf32, #tpu.memory_space<vmem>>, vector<8x8xf32>,
    %119 = vector.extract_strided_slice %11 {offsets = [8, 0], sizes = [8, 8], strides = [1, 1]} : vector<16x8xf32> to vector<8x8xf32>
    %120 = vector.extract_strided_slice %20 {offsets = [8, 0], sizes = [8, 8], strides = [1, 1]} : vector<16x32xf32> to vector<8x8xf32>
    %121 = vector.extract_strided_slice %28 {offsets = [8, 0], sizes = [8, 8], strides = [1, 1]} : vector<16x32xf32> to vector<8x8xf32>
    %122 = vector.extract_strided_slice %29 {offsets = [8, 0], sizes = [8, 8], strides = [1, 1]} : vector<16x32xf32> to vector<8x8xf32>
    %cst_57 = arith.constant dense<0.000000e+00> : vector<8x8xf32>
    %123 = tpu.matmul %120, %121, %cst_57 {dimension_numbers = #tpu.dot_dimension_numbers<[1], [1], [0], [0], [0, 0, 1, 0], [], []>} : vector<8x8xf32>, vector<8x8xf32>, vector<8x8xf32> -> vector<8x8xf32>
    %cst_58 = arith.constant 0.353553385 : f32
    %124 = vector.broadcast %cst_58 : f32 to vector<8x8xf32>
    %125 = arith.mulf %123, %124 : vector<8x8xf32>
    %cst_59 = arith.constant 0.000000e+00 : f32
    %126 = vector.broadcast %cst_59 : f32 to vector<8x8xf32>
    %127 = arith.cmpf oeq, %119, %126 : vector<8x8xf32>
    %cst_60 = arith.constant -1.000000e+09 : f32
    %128 = vector.broadcast %cst_60 : f32 to vector<8x8xf32>
    %129 = arith.select %127, %128, %125 : vector<8x8xi1>, vector<8x8xf32>
    %cst_61 = arith.constant dense<0xFF800000> : vector<8xf32>
    %130 = vector.multi_reduction <maximumf>, %129, %cst_61 [1] : vector<8x8xf32> to vector<8xf32>
    %131 = vector.shape_cast %130 : vector<8xf32> to vector<8x1xf32>
    %132 = vector.broadcast %131 : vector<8x1xf32> to vector<8x8xf32>
    %133 = arith.subf %129, %132 : vector<8x8xf32>
    %134 = math.exp %133 : vector<8x8xf32>
    %cst_62 = arith.constant dense<0.000000e+00> : vector<8xf32>
    %135 = vector.multi_reduction <add>, %134, %cst_62 [1] : vector<8x8xf32> to vector<8xf32>
    %136 = vector.shape_cast %135 : vector<8xf32> to vector<8x1xf32>
    %137 = tpu.reciprocal %136 {approx = true} : vector<8x1xf32> -> vector<8x1xf32>
    %138 = vector.broadcast %137 : vector<8x1xf32> to vector<8x8xf32>
    %139 = arith.mulf %134, %138 : vector<8x8xf32>
    %cst_63 = arith.constant dense<0.000000e+00> : vector<8x8xf32>
    %140 = tpu.matmul %139, %122, %cst_63 {dimension_numbers = #tpu.dot_dimension_numbers<[1], [0], [0], [1], [0, 0, 1, 1], [], []>} : vector<8x8xf32>, vector<8x8xf32>, vector<8x8xf32> -> vector<8x8xf32>
    %c8_64 = arith.constant 8 : index
    %c0_65 = arith.constant 0 : index
    %141 = vector.load %arg47[%c8_64, %c0_65] : memref<16x32xf32, #tpu.memory_space<vmem>>, vector<8x8xf32>
    tpu.vector_store %arg47[%c8_64, %c0_65], %140 {strides = array<i32>} : memref<16x32xf32, #tpu.memory_space<vmem>>, vector<8x8xf32>,
    %142 = vector.extract_strided_slice %20 {offsets = [8, 8], sizes = [8, 8], strides = [1, 1]} : vector<16x32xf32> to vector<8x8xf32>
    %143 = vector.extract_strided_slice %28 {offsets = [8, 8], sizes = [8, 8], strides = [1, 1]} : vector<16x32xf32> to vector<8x8xf32>
    %144 = vector.extract_strided_slice %29 {offsets = [8, 8], sizes = [8, 8], strides = [1, 1]} : vector<16x32xf32> to vector<8x8xf32>
    %cst_66 = arith.constant dense<0.000000e+00> : vector<8x8xf32>
    %145 = tpu.matmul %142, %143, %cst_66 {dimension_numbers = #tpu.dot_dimension_numbers<[1], [1], [0], [0], [0, 0, 1, 0], [], []>} : vector<8x8xf32>, vector<8x8xf32>, vector<8x8xf32> -> vector<8x8xf32>
    %cst_67 = arith.constant 0.353553385 : f32
    %146 = vector.broadcast %cst_67 : f32 to vector<8x8xf32>
    %147 = arith.mulf %145, %146 : vector<8x8xf32>
    %cst_68 = arith.constant 0.000000e+00 : f32
    %148 = vector.broadcast %cst_68 : f32 to vector<8x8xf32>
    %149 = arith.cmpf oeq, %119, %148 : vector<8x8xf32>
    %cst_69 = arith.constant -1.000000e+09 : f32
    %150 = vector.broadcast %cst_69 : f32 to vector<8x8xf32>
    %151 = arith.select %149, %150, %147 : vector<8x8xi1>, vector<8x8xf32>
    %cst_70 = arith.constant dense<0xFF800000> : vector<8xf32>
    %152 = vector.multi_reduction <maximumf>, %151, %cst_70 [1] : vector<8x8xf32> to vector<8xf32>
    %153 = vector.shape_cast %152 : vector<8xf32> to vector<8x1xf32>
    %154 = vector.broadcast %153 : vector<8x1xf32> to vector<8x8xf32>
    %155 = arith.subf %151, %154 : vector<8x8xf32>
    %156 = math.exp %155 : vector<8x8xf32>
    %cst_71 = arith.constant dense<0.000000e+00> : vector<8xf32>
    %157 = vector.multi_reduction <add>, %156, %cst_71 [1] : vector<8x8xf32> to vector<8xf32>
    %158 = vector.shape_cast %157 : vector<8xf32> to vector<8x1xf32>
    %159 = tpu.reciprocal %158 {approx = true} : vector<8x1xf32> -> vector<8x1xf32>
    %160 = vector.broadcast %159 : vector<8x1xf32> to vector<8x8xf32>
    %161 = arith.mulf %156, %160 : vector<8x8xf32>
    %cst_72 = arith.constant dense<0.000000e+00> : vector<8x8xf32>
    %162 = tpu.matmul %161, %144, %cst_72 {dimension_numbers = #tpu.dot_dimension_numbers<[1], [0], [0], [1], [0, 0, 1, 1], [], []>} : vector<8x8xf32>, vector<8x8xf32>, vector<8x8xf32> -> vector<8x8xf32>
    %c8_73 = arith.constant 8 : index
    %c8_74 = arith.constant 8 : index
    %163 = vector.load %arg47[%c8_73, %c8_74] : memref<16x32xf32, #tpu.memory_space<vmem>>, vector<8x8xf32>
    tpu.vector_store %arg47[%c8_73, %c8_74], %162 {strides = array<i32>} : memref<16x32xf32, #tpu.memory_space<vmem>>, vector<8x8xf32>,
    %164 = vector.extract_strided_slice %20 {offsets = [8, 16], sizes = [8, 8], strides = [1, 1]} : vector<16x32xf32> to vector<8x8xf32>
    %165 = vector.extract_strided_slice %28 {offsets = [8, 16], sizes = [8, 8], strides = [1, 1]} : vector<16x32xf32> to vector<8x8xf32>
    %166 = vector.extract_strided_slice %29 {offsets = [8, 16], sizes = [8, 8], strides = [1, 1]} : vector<16x32xf32> to vector<8x8xf32>
    %cst_75 = arith.constant dense<0.000000e+00> : vector<8x8xf32>
    %167 = tpu.matmul %164, %165, %cst_75 {dimension_numbers = #tpu.dot_dimension_numbers<[1], [1], [0], [0], [0, 0, 1, 0], [], []>} : vector<8x8xf32>, vector<8x8xf32>, vector<8x8xf32> -> vector<8x8xf32>
    %cst_76 = arith.constant 0.353553385 : f32
    %168 = vector.broadcast %cst_76 : f32 to vector<8x8xf32>
    %169 = arith.mulf %167, %168 : vector<8x8xf32>
    %cst_77 = arith.constant 0.000000e+00 : f32
    %170 = vector.broadcast %cst_77 : f32 to vector<8x8xf32>
    %171 = arith.cmpf oeq, %119, %170 : vector<8x8xf32>
    %cst_78 = arith.constant -1.000000e+09 : f32
    %172 = vector.broadcast %cst_78 : f32 to vector<8x8xf32>
    %173 = arith.select %171, %172, %169 : vector<8x8xi1>, vector<8x8xf32>
    %cst_79 = arith.constant dense<0xFF800000> : vector<8xf32>
    %174 = vector.multi_reduction <maximumf>, %173, %cst_79 [1] : vector<8x8xf32> to vector<8xf32>
    %175 = vector.shape_cast %174 : vector<8xf32> to vector<8x1xf32>
    %176 = vector.broadcast %175 : vector<8x1xf32> to vector<8x8xf32>
    %177 = arith.subf %173, %176 : vector<8x8xf32>
    %178 = math.exp %177 : vector<8x8xf32>
    %cst_80 = arith.constant dense<0.000000e+00> : vector<8xf32>
    %179 = vector.multi_reduction <add>, %178, %cst_80 [1] : vector<8x8xf32> to vector<8xf32>
    %180 = vector.shape_cast %179 : vector<8xf32> to vector<8x1xf32>
    %181 = tpu.reciprocal %180 {approx = true} : vector<8x1xf32> -> vector<8x1xf32>
    %182 = vector.broadcast %181 : vector<8x1xf32> to vector<8x8xf32>
    %183 = arith.mulf %178, %182 : vector<8x8xf32>
    %cst_81 = arith.constant dense<0.000000e+00> : vector<8x8xf32>
    %184 = tpu.matmul %183, %166, %cst_81 {dimension_numbers = #tpu.dot_dimension_numbers<[1], [0], [0], [1], [0, 0, 1, 1], [], []>} : vector<8x8xf32>, vector<8x8xf32>, vector<8x8xf32> -> vector<8x8xf32>
    %c8_82 = arith.constant 8 : index
    %c16_83 = arith.constant 16 : index
    %185 = vector.load %arg47[%c8_82, %c16_83] : memref<16x32xf32, #tpu.memory_space<vmem>>, vector<8x8xf32>
    tpu.vector_store %arg47[%c8_82, %c16_83], %184 {strides = array<i32>} : memref<16x32xf32, #tpu.memory_space<vmem>>, vector<8x8xf32>,
    %186 = vector.extract_strided_slice %20 {offsets = [8, 24], sizes = [8, 8], strides = [1, 1]} : vector<16x32xf32> to vector<8x8xf32>
    %187 = vector.extract_strided_slice %28 {offsets = [8, 24], sizes = [8, 8], strides = [1, 1]} : vector<16x32xf32> to vector<8x8xf32>
    %188 = vector.extract_strided_slice %29 {offsets = [8, 24], sizes = [8, 8], strides = [1, 1]} : vector<16x32xf32> to vector<8x8xf32>
    %cst_84 = arith.constant dense<0.000000e+00> : vector<8x8xf32>
    %189 = tpu.matmul %186, %187, %cst_84 {dimension_numbers = #tpu.dot_dimension_numbers<[1], [1], [0], [0], [0, 0, 1, 0], [], []>} : vector<8x8xf32>, vector<8x8xf32>, vector<8x8xf32> -> vector<8x8xf32>
    %cst_85 = arith.constant 0.353553385 : f32
    %190 = vector.broadcast %cst_85 : f32 to vector<8x8xf32>
    %191 = arith.mulf %189, %190 : vector<8x8xf32>
    %cst_86 = arith.constant 0.000000e+00 : f32
    %192 = vector.broadcast %cst_86 : f32 to vector<8x8xf32>
    %193 = arith.cmpf oeq, %119, %192 : vector<8x8xf32>
    %cst_87 = arith.constant -1.000000e+09 : f32
    %194 = vector.broadcast %cst_87 : f32 to vector<8x8xf32>
    %195 = arith.select %193, %194, %191 : vector<8x8xi1>, vector<8x8xf32>
    %cst_88 = arith.constant dense<0xFF800000> : vector<8xf32>
    %196 = vector.multi_reduction <maximumf>, %195, %cst_88 [1] : vector<8x8xf32> to vector<8xf32>
    %197 = vector.shape_cast %196 : vector<8xf32> to vector<8x1xf32>
    %198 = vector.broadcast %197 : vector<8x1xf32> to vector<8x8xf32>
    %199 = arith.subf %195, %198 : vector<8x8xf32>
    %200 = math.exp %199 : vector<8x8xf32>
    %cst_89 = arith.constant dense<0.000000e+00> : vector<8xf32>
    %201 = vector.multi_reduction <add>, %200, %cst_89 [1] : vector<8x8xf32> to vector<8xf32>
    %202 = vector.shape_cast %201 : vector<8xf32> to vector<8x1xf32>
    %203 = tpu.reciprocal %202 {approx = true} : vector<8x1xf32> -> vector<8x1xf32>
    %204 = vector.broadcast %203 : vector<8x1xf32> to vector<8x8xf32>
    %205 = arith.mulf %200, %204 : vector<8x8xf32>
    %cst_90 = arith.constant dense<0.000000e+00> : vector<8x8xf32>
    %206 = tpu.matmul %205, %188, %cst_90 {dimension_numbers = #tpu.dot_dimension_numbers<[1], [0], [0], [1], [0, 0, 1, 1], [], []>} : vector<8x8xf32>, vector<8x8xf32>, vector<8x8xf32> -> vector<8x8xf32>
    %c8_91 = arith.constant 8 : index
    %c24_92 = arith.constant 24 : index
    %207 = vector.load %arg47[%c8_91, %c24_92] : memref<16x32xf32, #tpu.memory_space<vmem>>, vector<8x8xf32>
    tpu.vector_store %arg47[%c8_91, %c24_92], %206 {strides = array<i32>} : memref<16x32xf32, #tpu.memory_space<vmem>>, vector<8x8xf32>,
    %c0_93 = arith.constant 0 : index
    %c0_94 = arith.constant 0 : index
    %208 = vector.load %arg47[%c0_93, %c0_94] : memref<16x32xf32, #tpu.memory_space<vmem>>, vector<16x32xf32>
    %c0_95 = arith.constant 0 : index
    %c0_96 = arith.constant 0 : index
    %c0_97 = arith.constant 0 : index
    %209 = vector.load %arg10[%c0_95, %c0_96, %c0_97] : memref<1x32x32xf32, #tpu.memory_space<vmem>>, vector<1x32x32xf32>
    %210 = vector.shape_cast %209 : vector<1x32x32xf32> to vector<32x32xf32>
    %cst_98 = arith.constant dense<0.000000e+00> : vector<16x32xf32>
    %211 = tpu.matmul %208, %210, %cst_98 {dimension_numbers = #tpu.dot_dimension_numbers<[1], [0], [0], [1], [0, 0, 1, 1], [], []>} : vector<16x32xf32>, vector<32x32xf32>, vector<16x32xf32> -> vector<16x32xf32>
    %c0_99 = arith.constant 0 : index
    %c0_100 = arith.constant 0 : index
    %c0_101 = arith.constant 0 : index
    %212 = vector.load %arg11[%c0_99, %c0_100, %c0_101] : memref<1x1x32xf32, #tpu.memory_space<vmem>>, vector<1x1x32xf32>
    %213 = vector.shape_cast %212 : vector<1x1x32xf32> to vector<1x32xf32>
    %214 = vector.broadcast %213 : vector<1x32xf32> to vector<16x32xf32>
    %215 = arith.addf %211, %214 : vector<16x32xf32>
    %c0_102 = arith.constant 0 : index
    %c0_103 = arith.constant 0 : index
    %c0_104 = arith.constant 0 : index
    %216 = vector.load %arg14[%c0_102, %c0_103, %c0_104] : memref<1x16x64xf32, #tpu.memory_space<vmem>>, vector<1x16x64xf32>
    %217 = vector.shape_cast %216 : vector<1x16x64xf32> to vector<16x64xf32>
    %cst_105 = arith.constant dense<0.000000e+00> : vector<2x64xf32>
    %218 = tpu.matmul %9, %217, %cst_105 {dimension_numbers = #tpu.dot_dimension_numbers<[1], [0], [0], [1], [0, 0, 1, 1], [], []>} : vector<2x16xf32>, vector<16x64xf32>, vector<2x64xf32> -> vector<2x64xf32>
    %c0_106 = arith.constant 0 : index
    %c0_107 = arith.constant 0 : index
    %c0_108 = arith.constant 0 : index
    %219 = vector.load %arg15[%c0_106, %c0_107, %c0_108] : memref<1x1x64xf32, #tpu.memory_space<vmem>>, vector<1x1x64xf32>
    %220 = vector.shape_cast %219 : vector<1x1x64xf32> to vector<1x64xf32>
    %221 = vector.broadcast %220 : vector<1x64xf32> to vector<2x64xf32>
    %222 = arith.addf %218, %221 : vector<2x64xf32>
    %223 = vector.extract_strided_slice %222 {offsets = [0, 0], sizes = [2, 32], strides = [1, 1]} : vector<2x64xf32> to vector<2x32xf32>
    %224 = vector.extract_strided_slice %222 {offsets = [0, 32], sizes = [2, 32], strides = [1, 1]} : vector<2x64xf32> to vector<2x32xf32>
    %c0_109 = arith.constant 0 : index
    %c0_110 = arith.constant 0 : index
    %c0_111 = arith.constant 0 : index
    %225 = vector.load %arg16[%c0_109, %c0_110, %c0_111] : memref<1x1x32xf32, #tpu.memory_space<vmem>>, vector<1x1x32xf32>
    %226 = vector.shape_cast %225 : vector<1x1x32xf32> to vector<1x32xf32>
    %c0_112 = arith.constant 0 : index
    %c0_113 = arith.constant 0 : index
    %c0_114 = arith.constant 0 : index
    %227 = vector.load %arg17[%c0_112, %c0_113, %c0_114] : memref<1x1x32xf32, #tpu.memory_space<vmem>>, vector<1x1x32xf32>
    %228 = vector.shape_cast %227 : vector<1x1x32xf32> to vector<1x32xf32>
    %cst_115 = arith.constant dense<0.000000e+00> : vector<16xf32>
    %229 = vector.multi_reduction <add>, %215, %cst_115 [1] : vector<16x32xf32> to vector<16xf32>
    %230 = vector.shape_cast %229 : vector<16xf32> to vector<16x1xf32>
    %cst_116 = arith.constant 3.200000e+01 : f32
    %231 = vector.broadcast %cst_116 : f32 to vector<16x1xf32>
    %232 = arith.divf %230, %231 : vector<16x1xf32>
    %233 = vector.broadcast %232 : vector<16x1xf32> to vector<16x32xf32>
    %234 = arith.subf %215, %233 : vector<16x32xf32>
    %235 = arith.mulf %234, %234 : vector<16x32xf32>
    %cst_117 = arith.constant dense<0.000000e+00> : vector<16xf32>
    %236 = vector.multi_reduction <add>, %235, %cst_117 [1] : vector<16x32xf32> to vector<16xf32>
    %237 = vector.shape_cast %236 : vector<16xf32> to vector<16x1xf32>
    %cst_118 = arith.constant 3.200000e+01 : f32
    %238 = vector.broadcast %cst_118 : f32 to vector<16x1xf32>
    %239 = arith.divf %237, %238 : vector<16x1xf32>
    %240 = vector.broadcast %232 : vector<16x1xf32> to vector<16x32xf32>
    %241 = arith.subf %215, %240 : vector<16x32xf32>
    %cst_119 = arith.constant 9.99999974E-6 : f32
    %242 = vector.broadcast %cst_119 : f32 to vector<16x1xf32>
    %243 = arith.addf %239, %242 : vector<16x1xf32>
    %244 = math.rsqrt %243 : vector<16x1xf32>
    %245 = vector.broadcast %244 : vector<16x1xf32> to vector<16x32xf32>
    %246 = arith.mulf %241, %245 : vector<16x32xf32>
    %247 = vector.broadcast %226 : vector<1x32xf32> to vector<16x32xf32>
    %248 = arith.mulf %246, %247 : vector<16x32xf32>
    %249 = vector.broadcast %228 : vector<1x32xf32> to vector<16x32xf32>
    %250 = arith.addf %248, %249 : vector<16x32xf32>
    %251 = vector.extract_strided_slice %250 {offsets = [0, 0], sizes = [8, 32], strides = [1, 1]} : vector<16x32xf32> to vector<8x32xf32>
    %252 = vector.extract_strided_slice %223 {offsets = [0, 0], sizes = [1, 32], strides = [1, 1]} : vector<2x32xf32> to vector<1x32xf32>
    %cst_120 = arith.constant 1.000000e+00 : f32
    %253 = vector.broadcast %cst_120 : f32 to vector<1x32xf32>
    %254 = arith.addf %253, %252 : vector<1x32xf32>
    %255 = vector.broadcast %254 : vector<1x32xf32> to vector<8x32xf32>
    %256 = arith.mulf %251, %255 : vector<8x32xf32>
    %257 = vector.extract_strided_slice %224 {offsets = [0, 0], sizes = [1, 32], strides = [1, 1]} : vector<2x32xf32> to vector<1x32xf32>
    %258 = vector.broadcast %257 : vector<1x32xf32> to vector<8x32xf32>
    %259 = arith.addf %256, %258 : vector<8x32xf32>
    %c0_121 = arith.constant 0 : index
    %c0_122 = arith.constant 0 : index
    %260 = vector.load %arg48[%c0_121, %c0_122] : memref<16x32xf32, #tpu.memory_space<vmem>>, vector<8x32xf32>
    tpu.vector_store %arg48[%c0_121, %c0_122], %259 {strides = array<i32>} : memref<16x32xf32, #tpu.memory_space<vmem>>, vector<8x32xf32>,
    %261 = vector.extract_strided_slice %250 {offsets = [8, 0], sizes = [8, 32], strides = [1, 1]} : vector<16x32xf32> to vector<8x32xf32>
    %262 = vector.extract_strided_slice %223 {offsets = [1, 0], sizes = [1, 32], strides = [1, 1]} : vector<2x32xf32> to vector<1x32xf32>
    %cst_123 = arith.constant 1.000000e+00 : f32
    %263 = vector.broadcast %cst_123 : f32 to vector<1x32xf32>
    %264 = arith.addf %263, %262 : vector<1x32xf32>
    %265 = vector.broadcast %264 : vector<1x32xf32> to vector<8x32xf32>
    %266 = arith.mulf %261, %265 : vector<8x32xf32>
    %267 = vector.extract_strided_slice %224 {offsets = [1, 0], sizes = [1, 32], strides = [1, 1]} : vector<2x32xf32> to vector<1x32xf32>
    %268 = vector.broadcast %267 : vector<1x32xf32> to vector<8x32xf32>
    %269 = arith.addf %266, %268 : vector<8x32xf32>
    %c8_124 = arith.constant 8 : index
    %c0_125 = arith.constant 0 : index
    %270 = vector.load %arg48[%c8_124, %c0_125] : memref<16x32xf32, #tpu.memory_space<vmem>>, vector<8x32xf32>
    tpu.vector_store %arg48[%c8_124, %c0_125], %269 {strides = array<i32>} : memref<16x32xf32, #tpu.memory_space<vmem>>, vector<8x32xf32>,
    %c0_126 = arith.constant 0 : index
    %c0_127 = arith.constant 0 : index
    %271 = vector.load %arg48[%c0_126, %c0_127] : memref<16x32xf32, #tpu.memory_space<vmem>>, vector<16x32xf32>
    %272 = arith.negf %271 : vector<16x32xf32>
    %273 = math.exp %272 : vector<16x32xf32>
    %cst_128 = arith.constant 1.000000e+00 : f32
    %274 = vector.broadcast %cst_128 : f32 to vector<16x32xf32>
    %275 = arith.addf %274, %273 : vector<16x32xf32>
    %276 = arith.divf %274, %275 : vector<16x32xf32>
    %277 = arith.mulf %271, %276 : vector<16x32xf32>
    %c0_129 = arith.constant 0 : index
    %c0_130 = arith.constant 0 : index
    %c0_131 = arith.constant 0 : index
    %278 = vector.load %arg18[%c0_129, %c0_130, %c0_131] : memref<1x32x32xf32, #tpu.memory_space<vmem>>, vector<1x32x32xf32>
    %279 = vector.shape_cast %278 : vector<1x32x32xf32> to vector<32x32xf32>
    %cst_132 = arith.constant dense<0.000000e+00> : vector<16x32xf32>
    %280 = tpu.matmul %277, %279, %cst_132 {dimension_numbers = #tpu.dot_dimension_numbers<[1], [0], [0], [1], [0, 0, 1, 1], [], []>} : vector<16x32xf32>, vector<32x32xf32>, vector<16x32xf32> -> vector<16x32xf32>
    %c0_133 = arith.constant 0 : index
    %c0_134 = arith.constant 0 : index
    %c0_135 = arith.constant 0 : index
    %281 = vector.load %arg19[%c0_133, %c0_134, %c0_135] : memref<1x1x32xf32, #tpu.memory_space<vmem>>, vector<1x1x32xf32>
    %282 = vector.shape_cast %281 : vector<1x1x32xf32> to vector<1x32xf32>
    %283 = vector.broadcast %282 : vector<1x32xf32> to vector<16x32xf32>
    %284 = arith.addf %280, %283 : vector<16x32xf32>
    %285 = arith.addf %284, %13 : vector<16x32xf32>
    %c0_136 = arith.constant 0 : index
    %c0_137 = arith.constant 0 : index
    %c0_138 = arith.constant 0 : index
    %286 = vector.load %arg12[%c0_136, %c0_137, %c0_138] : memref<1x1x32xf32, #tpu.memory_space<vmem>>, vector<1x1x32xf32>
    %287 = vector.shape_cast %286 : vector<1x1x32xf32> to vector<1x32xf32>
    %c0_139 = arith.constant 0 : index
    %c0_140 = arith.constant 0 : index
    %c0_141 = arith.constant 0 : index
    %288 = vector.load %arg13[%c0_139, %c0_140, %c0_141] : memref<1x1x32xf32, #tpu.memory_space<vmem>>, vector<1x1x32xf32>
    %289 = vector.shape_cast %288 : vector<1x1x32xf32> to vector<1x32xf32>
    %cst_142 = arith.constant dense<0.000000e+00> : vector<16xf32>
    %290 = vector.multi_reduction <add>, %285, %cst_142 [1] : vector<16x32xf32> to vector<16xf32>
    %291 = vector.shape_cast %290 : vector<16xf32> to vector<16x1xf32>
    %cst_143 = arith.constant 3.200000e+01 : f32
    %292 = vector.broadcast %cst_143 : f32 to vector<16x1xf32>
    %293 = arith.divf %291, %292 : vector<16x1xf32>
    %294 = vector.broadcast %293 : vector<16x1xf32> to vector<16x32xf32>
    %295 = arith.subf %285, %294 : vector<16x32xf32>
    %296 = arith.mulf %295, %295 : vector<16x32xf32>
    %cst_144 = arith.constant dense<0.000000e+00> : vector<16xf32>
    %297 = vector.multi_reduction <add>, %296, %cst_144 [1] : vector<16x32xf32> to vector<16xf32>
    %298 = vector.shape_cast %297 : vector<16xf32> to vector<16x1xf32>
    %cst_145 = arith.constant 3.200000e+01 : f32
    %299 = vector.broadcast %cst_145 : f32 to vector<16x1xf32>
    %300 = arith.divf %298, %299 : vector<16x1xf32>
    %301 = vector.broadcast %293 : vector<16x1xf32> to vector<16x32xf32>
    %302 = arith.subf %285, %301 : vector<16x32xf32>
    %cst_146 = arith.constant 9.99999997E-7 : f32
    %303 = vector.broadcast %cst_146 : f32 to vector<16x1xf32>
    %304 = arith.addf %300, %303 : vector<16x1xf32>
    %305 = math.rsqrt %304 : vector<16x1xf32>
    %306 = vector.broadcast %305 : vector<16x1xf32> to vector<16x32xf32>
    %307 = arith.mulf %302, %306 : vector<16x32xf32>
    %308 = vector.broadcast %287 : vector<1x32xf32> to vector<16x32xf32>
    %309 = arith.mulf %307, %308 : vector<16x32xf32>
    %310 = vector.broadcast %289 : vector<1x32xf32> to vector<16x32xf32>
    %311 = arith.addf %309, %310 : vector<16x32xf32>
    %c0_147 = arith.constant 0 : index
    %c0_148 = arith.constant 0 : index
    %c0_149 = arith.constant 0 : index
    %312 = vector.load %arg20[%c0_147, %c0_148, %c0_149] : memref<1x32x32xf32, #tpu.memory_space<vmem>>, vector<1x32x32xf32>
    %313 = vector.shape_cast %312 : vector<1x32x32xf32> to vector<32x32xf32>
    %cst_150 = arith.constant dense<0.000000e+00> : vector<16x32xf32>
    %314 = tpu.matmul %311, %313, %cst_150 {dimension_numbers = #tpu.dot_dimension_numbers<[1], [0], [0], [1], [0, 0, 1, 1], [], []>} : vector<16x32xf32>, vector<32x32xf32>, vector<16x32xf32> -> vector<16x32xf32>
    %c0_151 = arith.constant 0 : index
    %c0_152 = arith.constant 0 : index
    %c0_153 = arith.constant 0 : index
    %315 = vector.load %arg21[%c0_151, %c0_152, %c0_153] : memref<1x1x32xf32, #tpu.memory_space<vmem>>, vector<1x1x32xf32>
    %316 = vector.shape_cast %315 : vector<1x1x32xf32> to vector<1x32xf32>
    %317 = vector.broadcast %316 : vector<1x32xf32> to vector<16x32xf32>
    %318 = arith.addf %314, %317 : vector<16x32xf32>
    %c0_154 = arith.constant 0 : index
    %c0_155 = arith.constant 0 : index
    %c0_156 = arith.constant 0 : index
    %319 = vector.load %arg22[%c0_154, %c0_155, %c0_156] : memref<1x32x64xf32, #tpu.memory_space<vmem>>, vector<1x32x64xf32>
    %320 = vector.shape_cast %319 : vector<1x32x64xf32> to vector<32x64xf32>
    %cst_157 = arith.constant dense<0.000000e+00> : vector<32x64xf32>
    %321 = tpu.matmul %10, %320, %cst_157 {dimension_numbers = #tpu.dot_dimension_numbers<[1], [0], [0], [1], [0, 0, 1, 1], [], []>} : vector<32x32xf32>, vector<32x64xf32>, vector<32x64xf32> -> vector<32x64xf32>
    %c0_158 = arith.constant 0 : index
    %c0_159 = arith.constant 0 : index
    %c0_160 = arith.constant 0 : index
    %322 = vector.load %arg23[%c0_158, %c0_159, %c0_160] : memref<1x1x64xf32, #tpu.memory_space<vmem>>, vector<1x1x64xf32>
    %323 = vector.shape_cast %322 : vector<1x1x64xf32> to vector<1x64xf32>
    %324 = vector.broadcast %323 : vector<1x64xf32> to vector<32x64xf32>
    %325 = arith.addf %321, %324 : vector<32x64xf32>
    %326 = vector.extract_strided_slice %325 {offsets = [0, 0], sizes = [32, 32], strides = [1, 1]} : vector<32x64xf32> to vector<32x32xf32>
    %327 = vector.extract_strided_slice %325 {offsets = [0, 32], sizes = [32, 32], strides = [1, 1]} : vector<32x64xf32> to vector<32x32xf32>
    %328 = vector.extract_strided_slice %12 {offsets = [0, 0], sizes = [1, 16], strides = [1, 1]} : vector<2x16xf32> to vector<1x16xf32>
    %329 = vector.extract_strided_slice %318 {offsets = [0, 0], sizes = [8, 8], strides = [1, 1]} : vector<16x32xf32> to vector<8x8xf32>
    %330 = vector.extract_strided_slice %326 {offsets = [0, 0], sizes = [16, 8], strides = [1, 1]} : vector<32x32xf32> to vector<16x8xf32>
    %331 = vector.extract_strided_slice %327 {offsets = [0, 0], sizes = [16, 8], strides = [1, 1]} : vector<32x32xf32> to vector<16x8xf32>
    %cst_161 = arith.constant dense<0.000000e+00> : vector<8x16xf32>
    %332 = tpu.matmul %329, %330, %cst_161 {dimension_numbers = #tpu.dot_dimension_numbers<[1], [1], [0], [0], [0, 0, 1, 0], [], []>} : vector<8x8xf32>, vector<16x8xf32>, vector<8x16xf32> -> vector<8x16xf32>
    %cst_162 = arith.constant 0.353553385 : f32
    %333 = vector.broadcast %cst_162 : f32 to vector<8x16xf32>
    %334 = arith.mulf %332, %333 : vector<8x16xf32>
    %cst_163 = arith.constant 0.000000e+00 : f32
    %335 = vector.broadcast %cst_163 : f32 to vector<1x16xf32>
    %336 = arith.cmpf oeq, %328, %335 : vector<1x16xf32>
    %cst_164 = arith.constant -1.000000e+09 : f32
    %337 = vector.shape_cast %336 : vector<1x16xi1> to vector<1x16xi1>
    %338 = vector.broadcast %337 : vector<1x16xi1> to vector<8x16xi1>
    %339 = vector.broadcast %cst_164 : f32 to vector<8x16xf32>
    %340 = arith.select %338, %339, %334 : vector<8x16xi1>, vector<8x16xf32>
    %cst_165 = arith.constant dense<0xFF800000> : vector<8xf32>
    %341 = vector.multi_reduction <maximumf>, %340, %cst_165 [1] : vector<8x16xf32> to vector<8xf32>
    %342 = vector.shape_cast %341 : vector<8xf32> to vector<8x1xf32>
    %343 = vector.broadcast %342 : vector<8x1xf32> to vector<8x16xf32>
    %344 = arith.subf %340, %343 : vector<8x16xf32>
    %345 = math.exp %344 : vector<8x16xf32>
    %cst_166 = arith.constant dense<0.000000e+00> : vector<8xf32>
    %346 = vector.multi_reduction <add>, %345, %cst_166 [1] : vector<8x16xf32> to vector<8xf32>
    %347 = vector.shape_cast %346 : vector<8xf32> to vector<8x1xf32>
    %348 = tpu.reciprocal %347 {approx = true} : vector<8x1xf32> -> vector<8x1xf32>
    %349 = vector.broadcast %348 : vector<8x1xf32> to vector<8x16xf32>
    %350 = arith.mulf %345, %349 : vector<8x16xf32>
    %cst_167 = arith.constant dense<0.000000e+00> : vector<8x8xf32>
    %351 = tpu.matmul %350, %331, %cst_167 {dimension_numbers = #tpu.dot_dimension_numbers<[1], [0], [0], [1], [0, 0, 1, 1], [], []>} : vector<8x16xf32>, vector<16x8xf32>, vector<8x8xf32> -> vector<8x8xf32>
    %c0_168 = arith.constant 0 : index
    %c0_169 = arith.constant 0 : index
    %352 = vector.load %arg47[%c0_168, %c0_169] : memref<16x32xf32, #tpu.memory_space<vmem>>, vector<8x8xf32>
    tpu.vector_store %arg47[%c0_168, %c0_169], %351 {strides = array<i32>} : memref<16x32xf32, #tpu.memory_space<vmem>>, vector<8x8xf32>,
    %353 = vector.extract_strided_slice %318 {offsets = [0, 8], sizes = [8, 8], strides = [1, 1]} : vector<16x32xf32> to vector<8x8xf32>
    %354 = vector.extract_strided_slice %326 {offsets = [0, 8], sizes = [16, 8], strides = [1, 1]} : vector<32x32xf32> to vector<16x8xf32>
    %355 = vector.extract_strided_slice %327 {offsets = [0, 8], sizes = [16, 8], strides = [1, 1]} : vector<32x32xf32> to vector<16x8xf32>
    %cst_170 = arith.constant dense<0.000000e+00> : vector<8x16xf32>
    %356 = tpu.matmul %353, %354, %cst_170 {dimension_numbers = #tpu.dot_dimension_numbers<[1], [1], [0], [0], [0, 0, 1, 0], [], []>} : vector<8x8xf32>, vector<16x8xf32>, vector<8x16xf32> -> vector<8x16xf32>
    %cst_171 = arith.constant 0.353553385 : f32
    %357 = vector.broadcast %cst_171 : f32 to vector<8x16xf32>
    %358 = arith.mulf %356, %357 : vector<8x16xf32>
    %cst_172 = arith.constant 0.000000e+00 : f32
    %359 = vector.broadcast %cst_172 : f32 to vector<1x16xf32>
    %360 = arith.cmpf oeq, %328, %359 : vector<1x16xf32>
    %cst_173 = arith.constant -1.000000e+09 : f32
    %361 = vector.shape_cast %360 : vector<1x16xi1> to vector<1x16xi1>
    %362 = vector.broadcast %361 : vector<1x16xi1> to vector<8x16xi1>
    %363 = vector.broadcast %cst_173 : f32 to vector<8x16xf32>
    %364 = arith.select %362, %363, %358 : vector<8x16xi1>, vector<8x16xf32>
    %cst_174 = arith.constant dense<0xFF800000> : vector<8xf32>
    %365 = vector.multi_reduction <maximumf>, %364, %cst_174 [1] : vector<8x16xf32> to vector<8xf32>
    %366 = vector.shape_cast %365 : vector<8xf32> to vector<8x1xf32>
    %367 = vector.broadcast %366 : vector<8x1xf32> to vector<8x16xf32>
    %368 = arith.subf %364, %367 : vector<8x16xf32>
    %369 = math.exp %368 : vector<8x16xf32>
    %cst_175 = arith.constant dense<0.000000e+00> : vector<8xf32>
    %370 = vector.multi_reduction <add>, %369, %cst_175 [1] : vector<8x16xf32> to vector<8xf32>
    %371 = vector.shape_cast %370 : vector<8xf32> to vector<8x1xf32>
    %372 = tpu.reciprocal %371 {approx = true} : vector<8x1xf32> -> vector<8x1xf32>
    %373 = vector.broadcast %372 : vector<8x1xf32> to vector<8x16xf32>
    %374 = arith.mulf %369, %373 : vector<8x16xf32>
    %cst_176 = arith.constant dense<0.000000e+00> : vector<8x8xf32>
    %375 = tpu.matmul %374, %355, %cst_176 {dimension_numbers = #tpu.dot_dimension_numbers<[1], [0], [0], [1], [0, 0, 1, 1], [], []>} : vector<8x16xf32>, vector<16x8xf32>, vector<8x8xf32> -> vector<8x8xf32>
    %c0_177 = arith.constant 0 : index
    %c8_178 = arith.constant 8 : index
    %376 = vector.load %arg47[%c0_177, %c8_178] : memref<16x32xf32, #tpu.memory_space<vmem>>, vector<8x8xf32>
    tpu.vector_store %arg47[%c0_177, %c8_178], %375 {strides = array<i32>} : memref<16x32xf32, #tpu.memory_space<vmem>>, vector<8x8xf32>,
    %377 = vector.extract_strided_slice %318 {offsets = [0, 16], sizes = [8, 8], strides = [1, 1]} : vector<16x32xf32> to vector<8x8xf32>
    %378 = vector.extract_strided_slice %326 {offsets = [0, 16], sizes = [16, 8], strides = [1, 1]} : vector<32x32xf32> to vector<16x8xf32>
    %379 = vector.extract_strided_slice %327 {offsets = [0, 16], sizes = [16, 8], strides = [1, 1]} : vector<32x32xf32> to vector<16x8xf32>
    %cst_179 = arith.constant dense<0.000000e+00> : vector<8x16xf32>
    %380 = tpu.matmul %377, %378, %cst_179 {dimension_numbers = #tpu.dot_dimension_numbers<[1], [1], [0], [0], [0, 0, 1, 0], [], []>} : vector<8x8xf32>, vector<16x8xf32>, vector<8x16xf32> -> vector<8x16xf32>
    %cst_180 = arith.constant 0.353553385 : f32
    %381 = vector.broadcast %cst_180 : f32 to vector<8x16xf32>
    %382 = arith.mulf %380, %381 : vector<8x16xf32>
    %cst_181 = arith.constant 0.000000e+00 : f32
    %383 = vector.broadcast %cst_181 : f32 to vector<1x16xf32>
    %384 = arith.cmpf oeq, %328, %383 : vector<1x16xf32>
    %cst_182 = arith.constant -1.000000e+09 : f32
    %385 = vector.shape_cast %384 : vector<1x16xi1> to vector<1x16xi1>
    %386 = vector.broadcast %385 : vector<1x16xi1> to vector<8x16xi1>
    %387 = vector.broadcast %cst_182 : f32 to vector<8x16xf32>
    %388 = arith.select %386, %387, %382 : vector<8x16xi1>, vector<8x16xf32>
    %cst_183 = arith.constant dense<0xFF800000> : vector<8xf32>
    %389 = vector.multi_reduction <maximumf>, %388, %cst_183 [1] : vector<8x16xf32> to vector<8xf32>
    %390 = vector.shape_cast %389 : vector<8xf32> to vector<8x1xf32>
    %391 = vector.broadcast %390 : vector<8x1xf32> to vector<8x16xf32>
    %392 = arith.subf %388, %391 : vector<8x16xf32>
    %393 = math.exp %392 : vector<8x16xf32>
    %cst_184 = arith.constant dense<0.000000e+00> : vector<8xf32>
    %394 = vector.multi_reduction <add>, %393, %cst_184 [1] : vector<8x16xf32> to vector<8xf32>
    %395 = vector.shape_cast %394 : vector<8xf32> to vector<8x1xf32>
    %396 = tpu.reciprocal %395 {approx = true} : vector<8x1xf32> -> vector<8x1xf32>
    %397 = vector.broadcast %396 : vector<8x1xf32> to vector<8x16xf32>
    %398 = arith.mulf %393, %397 : vector<8x16xf32>
    %cst_185 = arith.constant dense<0.000000e+00> : vector<8x8xf32>
    %399 = tpu.matmul %398, %379, %cst_185 {dimension_numbers = #tpu.dot_dimension_numbers<[1], [0], [0], [1], [0, 0, 1, 1], [], []>} : vector<8x16xf32>, vector<16x8xf32>, vector<8x8xf32> -> vector<8x8xf32>
    %c0_186 = arith.constant 0 : index
    %c16_187 = arith.constant 16 : index
    %400 = vector.load %arg47[%c0_186, %c16_187] : memref<16x32xf32, #tpu.memory_space<vmem>>, vector<8x8xf32>
    tpu.vector_store %arg47[%c0_186, %c16_187], %399 {strides = array<i32>} : memref<16x32xf32, #tpu.memory_space<vmem>>, vector<8x8xf32>,
    %401 = vector.extract_strided_slice %318 {offsets = [0, 24], sizes = [8, 8], strides = [1, 1]} : vector<16x32xf32> to vector<8x8xf32>
    %402 = vector.extract_strided_slice %326 {offsets = [0, 24], sizes = [16, 8], strides = [1, 1]} : vector<32x32xf32> to vector<16x8xf32>
    %403 = vector.extract_strided_slice %327 {offsets = [0, 24], sizes = [16, 8], strides = [1, 1]} : vector<32x32xf32> to vector<16x8xf32>
    %cst_188 = arith.constant dense<0.000000e+00> : vector<8x16xf32>
    %404 = tpu.matmul %401, %402, %cst_188 {dimension_numbers = #tpu.dot_dimension_numbers<[1], [1], [0], [0], [0, 0, 1, 0], [], []>} : vector<8x8xf32>, vector<16x8xf32>, vector<8x16xf32> -> vector<8x16xf32>
    %cst_189 = arith.constant 0.353553385 : f32
    %405 = vector.broadcast %cst_189 : f32 to vector<8x16xf32>
    %406 = arith.mulf %404, %405 : vector<8x16xf32>
    %cst_190 = arith.constant 0.000000e+00 : f32
    %407 = vector.broadcast %cst_190 : f32 to vector<1x16xf32>
    %408 = arith.cmpf oeq, %328, %407 : vector<1x16xf32>
    %cst_191 = arith.constant -1.000000e+09 : f32
    %409 = vector.shape_cast %408 : vector<1x16xi1> to vector<1x16xi1>
    %410 = vector.broadcast %409 : vector<1x16xi1> to vector<8x16xi1>
    %411 = vector.broadcast %cst_191 : f32 to vector<8x16xf32>
    %412 = arith.select %410, %411, %406 : vector<8x16xi1>, vector<8x16xf32>
    %cst_192 = arith.constant dense<0xFF800000> : vector<8xf32>
    %413 = vector.multi_reduction <maximumf>, %412, %cst_192 [1] : vector<8x16xf32> to vector<8xf32>
    %414 = vector.shape_cast %413 : vector<8xf32> to vector<8x1xf32>
    %415 = vector.broadcast %414 : vector<8x1xf32> to vector<8x16xf32>
    %416 = arith.subf %412, %415 : vector<8x16xf32>
    %417 = math.exp %416 : vector<8x16xf32>
    %cst_193 = arith.constant dense<0.000000e+00> : vector<8xf32>
    %418 = vector.multi_reduction <add>, %417, %cst_193 [1] : vector<8x16xf32> to vector<8xf32>
    %419 = vector.shape_cast %418 : vector<8xf32> to vector<8x1xf32>
    %420 = tpu.reciprocal %419 {approx = true} : vector<8x1xf32> -> vector<8x1xf32>
    %421 = vector.broadcast %420 : vector<8x1xf32> to vector<8x16xf32>
    %422 = arith.mulf %417, %421 : vector<8x16xf32>
    %cst_194 = arith.constant dense<0.000000e+00> : vector<8x8xf32>
    %423 = tpu.matmul %422, %403, %cst_194 {dimension_numbers = #tpu.dot_dimension_numbers<[1], [0], [0], [1], [0, 0, 1, 1], [], []>} : vector<8x16xf32>, vector<16x8xf32>, vector<8x8xf32> -> vector<8x8xf32>
    %c0_195 = arith.constant 0 : index
    %c24_196 = arith.constant 24 : index
    %424 = vector.load %arg47[%c0_195, %c24_196] : memref<16x32xf32, #tpu.memory_space<vmem>>, vector<8x8xf32>
    tpu.vector_store %arg47[%c0_195, %c24_196], %423 {strides = array<i32>} : memref<16x32xf32, #tpu.memory_space<vmem>>, vector<8x8xf32>,
    %425 = vector.extract_strided_slice %12 {offsets = [1, 0], sizes = [1, 16], strides = [1, 1]} : vector<2x16xf32> to vector<1x16xf32>
    %426 = vector.extract_strided_slice %318 {offsets = [8, 0], sizes = [8, 8], strides = [1, 1]} : vector<16x32xf32> to vector<8x8xf32>
    %427 = vector.extract_strided_slice %326 {offsets = [16, 0], sizes = [16, 8], strides = [1, 1]} : vector<32x32xf32> to vector<16x8xf32>
    %428 = vector.extract_strided_slice %327 {offsets = [16, 0], sizes = [16, 8], strides = [1, 1]} : vector<32x32xf32> to vector<16x8xf32>
    %cst_197 = arith.constant dense<0.000000e+00> : vector<8x16xf32>
    %429 = tpu.matmul %426, %427, %cst_197 {dimension_numbers = #tpu.dot_dimension_numbers<[1], [1], [0], [0], [0, 0, 1, 0], [], []>} : vector<8x8xf32>, vector<16x8xf32>, vector<8x16xf32> -> vector<8x16xf32>
    %cst_198 = arith.constant 0.353553385 : f32
    %430 = vector.broadcast %cst_198 : f32 to vector<8x16xf32>
    %431 = arith.mulf %429, %430 : vector<8x16xf32>
    %cst_199 = arith.constant 0.000000e+00 : f32
    %432 = vector.broadcast %cst_199 : f32 to vector<1x16xf32>
    %433 = arith.cmpf oeq, %425, %432 : vector<1x16xf32>
    %cst_200 = arith.constant -1.000000e+09 : f32
    %434 = vector.shape_cast %433 : vector<1x16xi1> to vector<1x16xi1>
    %435 = vector.broadcast %434 : vector<1x16xi1> to vector<8x16xi1>
    %436 = vector.broadcast %cst_200 : f32 to vector<8x16xf32>
    %437 = arith.select %435, %436, %431 : vector<8x16xi1>, vector<8x16xf32>
    %cst_201 = arith.constant dense<0xFF800000> : vector<8xf32>
    %438 = vector.multi_reduction <maximumf>, %437, %cst_201 [1] : vector<8x16xf32> to vector<8xf32>
    %439 = vector.shape_cast %438 : vector<8xf32> to vector<8x1xf32>
    %440 = vector.broadcast %439 : vector<8x1xf32> to vector<8x16xf32>
    %441 = arith.subf %437, %440 : vector<8x16xf32>
    %442 = math.exp %441 : vector<8x16xf32>
    %cst_202 = arith.constant dense<0.000000e+00> : vector<8xf32>
    %443 = vector.multi_reduction <add>, %442, %cst_202 [1] : vector<8x16xf32> to vector<8xf32>
    %444 = vector.shape_cast %443 : vector<8xf32> to vector<8x1xf32>
    %445 = tpu.reciprocal %444 {approx = true} : vector<8x1xf32> -> vector<8x1xf32>
    %446 = vector.broadcast %445 : vector<8x1xf32> to vector<8x16xf32>
    %447 = arith.mulf %442, %446 : vector<8x16xf32>
    %cst_203 = arith.constant dense<0.000000e+00> : vector<8x8xf32>
    %448 = tpu.matmul %447, %428, %cst_203 {dimension_numbers = #tpu.dot_dimension_numbers<[1], [0], [0], [1], [0, 0, 1, 1], [], []>} : vector<8x16xf32>, vector<16x8xf32>, vector<8x8xf32> -> vector<8x8xf32>
    %c8_204 = arith.constant 8 : index
    %c0_205 = arith.constant 0 : index
    %449 = vector.load %arg47[%c8_204, %c0_205] : memref<16x32xf32, #tpu.memory_space<vmem>>, vector<8x8xf32>
    tpu.vector_store %arg47[%c8_204, %c0_205], %448 {strides = array<i32>} : memref<16x32xf32, #tpu.memory_space<vmem>>, vector<8x8xf32>,
    %450 = vector.extract_strided_slice %318 {offsets = [8, 8], sizes = [8, 8], strides = [1, 1]} : vector<16x32xf32> to vector<8x8xf32>
    %451 = vector.extract_strided_slice %326 {offsets = [16, 8], sizes = [16, 8], strides = [1, 1]} : vector<32x32xf32> to vector<16x8xf32>
    %452 = vector.extract_strided_slice %327 {offsets = [16, 8], sizes = [16, 8], strides = [1, 1]} : vector<32x32xf32> to vector<16x8xf32>
    %cst_206 = arith.constant dense<0.000000e+00> : vector<8x16xf32>
    %453 = tpu.matmul %450, %451, %cst_206 {dimension_numbers = #tpu.dot_dimension_numbers<[1], [1], [0], [0], [0, 0, 1, 0], [], []>} : vector<8x8xf32>, vector<16x8xf32>, vector<8x16xf32> -> vector<8x16xf32>
    %cst_207 = arith.constant 0.353553385 : f32
    %454 = vector.broadcast %cst_207 : f32 to vector<8x16xf32>
    %455 = arith.mulf %453, %454 : vector<8x16xf32>
    %cst_208 = arith.constant 0.000000e+00 : f32
    %456 = vector.broadcast %cst_208 : f32 to vector<1x16xf32>
    %457 = arith.cmpf oeq, %425, %456 : vector<1x16xf32>
    %cst_209 = arith.constant -1.000000e+09 : f32
    %458 = vector.shape_cast %457 : vector<1x16xi1> to vector<1x16xi1>
    %459 = vector.broadcast %458 : vector<1x16xi1> to vector<8x16xi1>
    %460 = vector.broadcast %cst_209 : f32 to vector<8x16xf32>
    %461 = arith.select %459, %460, %455 : vector<8x16xi1>, vector<8x16xf32>
    %cst_210 = arith.constant dense<0xFF800000> : vector<8xf32>
    %462 = vector.multi_reduction <maximumf>, %461, %cst_210 [1] : vector<8x16xf32> to vector<8xf32>
    %463 = vector.shape_cast %462 : vector<8xf32> to vector<8x1xf32>
    %464 = vector.broadcast %463 : vector<8x1xf32> to vector<8x16xf32>
    %465 = arith.subf %461, %464 : vector<8x16xf32>
    %466 = math.exp %465 : vector<8x16xf32>
    %cst_211 = arith.constant dense<0.000000e+00> : vector<8xf32>
    %467 = vector.multi_reduction <add>, %466, %cst_211 [1] : vector<8x16xf32> to vector<8xf32>
    %468 = vector.shape_cast %467 : vector<8xf32> to vector<8x1xf32>
    %469 = tpu.reciprocal %468 {approx = true} : vector<8x1xf32> -> vector<8x1xf32>
    %470 = vector.broadcast %469 : vector<8x1xf32> to vector<8x16xf32>
    %471 = arith.mulf %466, %470 : vector<8x16xf32>
    %cst_212 = arith.constant dense<0.000000e+00> : vector<8x8xf32>
    %472 = tpu.matmul %471, %452, %cst_212 {dimension_numbers = #tpu.dot_dimension_numbers<[1], [0], [0], [1], [0, 0, 1, 1], [], []>} : vector<8x16xf32>, vector<16x8xf32>, vector<8x8xf32> -> vector<8x8xf32>
    %c8_213 = arith.constant 8 : index
    %c8_214 = arith.constant 8 : index
    %473 = vector.load %arg47[%c8_213, %c8_214] : memref<16x32xf32, #tpu.memory_space<vmem>>, vector<8x8xf32>
    tpu.vector_store %arg47[%c8_213, %c8_214], %472 {strides = array<i32>} : memref<16x32xf32, #tpu.memory_space<vmem>>, vector<8x8xf32>,
    %474 = vector.extract_strided_slice %318 {offsets = [8, 16], sizes = [8, 8], strides = [1, 1]} : vector<16x32xf32> to vector<8x8xf32>
    %475 = vector.extract_strided_slice %326 {offsets = [16, 16], sizes = [16, 8], strides = [1, 1]} : vector<32x32xf32> to vector<16x8xf32>
    %476 = vector.extract_strided_slice %327 {offsets = [16, 16], sizes = [16, 8], strides = [1, 1]} : vector<32x32xf32> to vector<16x8xf32>
    %cst_215 = arith.constant dense<0.000000e+00> : vector<8x16xf32>
    %477 = tpu.matmul %474, %475, %cst_215 {dimension_numbers = #tpu.dot_dimension_numbers<[1], [1], [0], [0], [0, 0, 1, 0], [], []>} : vector<8x8xf32>, vector<16x8xf32>, vector<8x16xf32> -> vector<8x16xf32>
    %cst_216 = arith.constant 0.353553385 : f32
    %478 = vector.broadcast %cst_216 : f32 to vector<8x16xf32>
    %479 = arith.mulf %477, %478 : vector<8x16xf32>
    %cst_217 = arith.constant 0.000000e+00 : f32
    %480 = vector.broadcast %cst_217 : f32 to vector<1x16xf32>
    %481 = arith.cmpf oeq, %425, %480 : vector<1x16xf32>
    %cst_218 = arith.constant -1.000000e+09 : f32
    %482 = vector.shape_cast %481 : vector<1x16xi1> to vector<1x16xi1>
    %483 = vector.broadcast %482 : vector<1x16xi1> to vector<8x16xi1>
    %484 = vector.broadcast %cst_218 : f32 to vector<8x16xf32>
    %485 = arith.select %483, %484, %479 : vector<8x16xi1>, vector<8x16xf32>
    %cst_219 = arith.constant dense<0xFF800000> : vector<8xf32>
    %486 = vector.multi_reduction <maximumf>, %485, %cst_219 [1] : vector<8x16xf32> to vector<8xf32>
    %487 = vector.shape_cast %486 : vector<8xf32> to vector<8x1xf32>
    %488 = vector.broadcast %487 : vector<8x1xf32> to vector<8x16xf32>
    %489 = arith.subf %485, %488 : vector<8x16xf32>
    %490 = math.exp %489 : vector<8x16xf32>
    %cst_220 = arith.constant dense<0.000000e+00> : vector<8xf32>
    %491 = vector.multi_reduction <add>, %490, %cst_220 [1] : vector<8x16xf32> to vector<8xf32>
    %492 = vector.shape_cast %491 : vector<8xf32> to vector<8x1xf32>
    %493 = tpu.reciprocal %492 {approx = true} : vector<8x1xf32> -> vector<8x1xf32>
    %494 = vector.broadcast %493 : vector<8x1xf32> to vector<8x16xf32>
    %495 = arith.mulf %490, %494 : vector<8x16xf32>
    %cst_221 = arith.constant dense<0.000000e+00> : vector<8x8xf32>
    %496 = tpu.matmul %495, %476, %cst_221 {dimension_numbers = #tpu.dot_dimension_numbers<[1], [0], [0], [1], [0, 0, 1, 1], [], []>} : vector<8x16xf32>, vector<16x8xf32>, vector<8x8xf32> -> vector<8x8xf32>
    %c8_222 = arith.constant 8 : index
    %c16_223 = arith.constant 16 : index
    %497 = vector.load %arg47[%c8_222, %c16_223] : memref<16x32xf32, #tpu.memory_space<vmem>>, vector<8x8xf32>
    tpu.vector_store %arg47[%c8_222, %c16_223], %496 {strides = array<i32>} : memref<16x32xf32, #tpu.memory_space<vmem>>, vector<8x8xf32>,
    %498 = vector.extract_strided_slice %318 {offsets = [8, 24], sizes = [8, 8], strides = [1, 1]} : vector<16x32xf32> to vector<8x8xf32>
    %499 = vector.extract_strided_slice %326 {offsets = [16, 24], sizes = [16, 8], strides = [1, 1]} : vector<32x32xf32> to vector<16x8xf32>
    %500 = vector.extract_strided_slice %327 {offsets = [16, 24], sizes = [16, 8], strides = [1, 1]} : vector<32x32xf32> to vector<16x8xf32>
    %cst_224 = arith.constant dense<0.000000e+00> : vector<8x16xf32>
    %501 = tpu.matmul %498, %499, %cst_224 {dimension_numbers = #tpu.dot_dimension_numbers<[1], [1], [0], [0], [0, 0, 1, 0], [], []>} : vector<8x8xf32>, vector<16x8xf32>, vector<8x16xf32> -> vector<8x16xf32>
    %cst_225 = arith.constant 0.353553385 : f32
    %502 = vector.broadcast %cst_225 : f32 to vector<8x16xf32>
    %503 = arith.mulf %501, %502 : vector<8x16xf32>
    %cst_226 = arith.constant 0.000000e+00 : f32
    %504 = vector.broadcast %cst_226 : f32 to vector<1x16xf32>
    %505 = arith.cmpf oeq, %425, %504 : vector<1x16xf32>
    %cst_227 = arith.constant -1.000000e+09 : f32
    %506 = vector.shape_cast %505 : vector<1x16xi1> to vector<1x16xi1>
    %507 = vector.broadcast %506 : vector<1x16xi1> to vector<8x16xi1>
    %508 = vector.broadcast %cst_227 : f32 to vector<8x16xf32>
    %509 = arith.select %507, %508, %503 : vector<8x16xi1>, vector<8x16xf32>
    %cst_228 = arith.constant dense<0xFF800000> : vector<8xf32>
    %510 = vector.multi_reduction <maximumf>, %509, %cst_228 [1] : vector<8x16xf32> to vector<8xf32>
    %511 = vector.shape_cast %510 : vector<8xf32> to vector<8x1xf32>
    %512 = vector.broadcast %511 : vector<8x1xf32> to vector<8x16xf32>
    %513 = arith.subf %509, %512 : vector<8x16xf32>
    %514 = math.exp %513 : vector<8x16xf32>
    %cst_229 = arith.constant dense<0.000000e+00> : vector<8xf32>
    %515 = vector.multi_reduction <add>, %514, %cst_229 [1] : vector<8x16xf32> to vector<8xf32>
    %516 = vector.shape_cast %515 : vector<8xf32> to vector<8x1xf32>
    %517 = tpu.reciprocal %516 {approx = true} : vector<8x1xf32> -> vector<8x1xf32>
    %518 = vector.broadcast %517 : vector<8x1xf32> to vector<8x16xf32>
    %519 = arith.mulf %514, %518 : vector<8x16xf32>
    %cst_230 = arith.constant dense<0.000000e+00> : vector<8x8xf32>
    %520 = tpu.matmul %519, %500, %cst_230 {dimension_numbers = #tpu.dot_dimension_numbers<[1], [0], [0], [1], [0, 0, 1, 1], [], []>} : vector<8x16xf32>, vector<16x8xf32>, vector<8x8xf32> -> vector<8x8xf32>
    %c8_231 = arith.constant 8 : index
    %c24_232 = arith.constant 24 : index
    %521 = vector.load %arg47[%c8_231, %c24_232] : memref<16x32xf32, #tpu.memory_space<vmem>>, vector<8x8xf32>
    tpu.vector_store %arg47[%c8_231, %c24_232], %520 {strides = array<i32>} : memref<16x32xf32, #tpu.memory_space<vmem>>, vector<8x8xf32>,
    %c0_233 = arith.constant 0 : index
    %c0_234 = arith.constant 0 : index
    %522 = vector.load %arg47[%c0_233, %c0_234] : memref<16x32xf32, #tpu.memory_space<vmem>>, vector<16x32xf32>
    %c0_235 = arith.constant 0 : index
    %c0_236 = arith.constant 0 : index
    %c0_237 = arith.constant 0 : index
    %523 = vector.load %arg24[%c0_235, %c0_236, %c0_237] : memref<1x32x32xf32, #tpu.memory_space<vmem>>, vector<1x32x32xf32>
    %524 = vector.shape_cast %523 : vector<1x32x32xf32> to vector<32x32xf32>
    %cst_238 = arith.constant dense<0.000000e+00> : vector<16x32xf32>
    %525 = tpu.matmul %522, %524, %cst_238 {dimension_numbers = #tpu.dot_dimension_numbers<[1], [0], [0], [1], [0, 0, 1, 1], [], []>} : vector<16x32xf32>, vector<32x32xf32>, vector<16x32xf32> -> vector<16x32xf32>
    %c0_239 = arith.constant 0 : index
    %c0_240 = arith.constant 0 : index
    %c0_241 = arith.constant 0 : index
    %526 = vector.load %arg25[%c0_239, %c0_240, %c0_241] : memref<1x1x32xf32, #tpu.memory_space<vmem>>, vector<1x1x32xf32>
    %527 = vector.shape_cast %526 : vector<1x1x32xf32> to vector<1x32xf32>
    %528 = vector.broadcast %527 : vector<1x32xf32> to vector<16x32xf32>
    %529 = arith.addf %525, %528 : vector<16x32xf32>
    %c0_242 = arith.constant 0 : index
    %c0_243 = arith.constant 0 : index
    %c0_244 = arith.constant 0 : index
    %530 = vector.load %arg28[%c0_242, %c0_243, %c0_244] : memref<1x16x64xf32, #tpu.memory_space<vmem>>, vector<1x16x64xf32>
    %531 = vector.shape_cast %530 : vector<1x16x64xf32> to vector<16x64xf32>
    %cst_245 = arith.constant dense<0.000000e+00> : vector<2x64xf32>
    %532 = tpu.matmul %9, %531, %cst_245 {dimension_numbers = #tpu.dot_dimension_numbers<[1], [0], [0], [1], [0, 0, 1, 1], [], []>} : vector<2x16xf32>, vector<16x64xf32>, vector<2x64xf32> -> vector<2x64xf32>
    %c0_246 = arith.constant 0 : index
    %c0_247 = arith.constant 0 : index
    %c0_248 = arith.constant 0 : index
    %533 = vector.load %arg29[%c0_246, %c0_247, %c0_248] : memref<1x1x64xf32, #tpu.memory_space<vmem>>, vector<1x1x64xf32>
    %534 = vector.shape_cast %533 : vector<1x1x64xf32> to vector<1x64xf32>
    %535 = vector.broadcast %534 : vector<1x64xf32> to vector<2x64xf32>
    %536 = arith.addf %532, %535 : vector<2x64xf32>
    %537 = vector.extract_strided_slice %536 {offsets = [0, 0], sizes = [2, 32], strides = [1, 1]} : vector<2x64xf32> to vector<2x32xf32>
    %538 = vector.extract_strided_slice %536 {offsets = [0, 32], sizes = [2, 32], strides = [1, 1]} : vector<2x64xf32> to vector<2x32xf32>
    %c0_249 = arith.constant 0 : index
    %c0_250 = arith.constant 0 : index
    %c0_251 = arith.constant 0 : index
    %539 = vector.load %arg30[%c0_249, %c0_250, %c0_251] : memref<1x1x32xf32, #tpu.memory_space<vmem>>, vector<1x1x32xf32>
    %540 = vector.shape_cast %539 : vector<1x1x32xf32> to vector<1x32xf32>
    %c0_252 = arith.constant 0 : index
    %c0_253 = arith.constant 0 : index
    %c0_254 = arith.constant 0 : index
    %541 = vector.load %arg31[%c0_252, %c0_253, %c0_254] : memref<1x1x32xf32, #tpu.memory_space<vmem>>, vector<1x1x32xf32>
    %542 = vector.shape_cast %541 : vector<1x1x32xf32> to vector<1x32xf32>
    %cst_255 = arith.constant dense<0.000000e+00> : vector<16xf32>
    %543 = vector.multi_reduction <add>, %529, %cst_255 [1] : vector<16x32xf32> to vector<16xf32>
    %544 = vector.shape_cast %543 : vector<16xf32> to vector<16x1xf32>
    %cst_256 = arith.constant 3.200000e+01 : f32
    %545 = vector.broadcast %cst_256 : f32 to vector<16x1xf32>
    %546 = arith.divf %544, %545 : vector<16x1xf32>
    %547 = vector.broadcast %546 : vector<16x1xf32> to vector<16x32xf32>
    %548 = arith.subf %529, %547 : vector<16x32xf32>
    %549 = arith.mulf %548, %548 : vector<16x32xf32>
    %cst_257 = arith.constant dense<0.000000e+00> : vector<16xf32>
    %550 = vector.multi_reduction <add>, %549, %cst_257 [1] : vector<16x32xf32> to vector<16xf32>
    %551 = vector.shape_cast %550 : vector<16xf32> to vector<16x1xf32>
    %cst_258 = arith.constant 3.200000e+01 : f32
    %552 = vector.broadcast %cst_258 : f32 to vector<16x1xf32>
    %553 = arith.divf %551, %552 : vector<16x1xf32>
    %554 = vector.broadcast %546 : vector<16x1xf32> to vector<16x32xf32>
    %555 = arith.subf %529, %554 : vector<16x32xf32>
    %cst_259 = arith.constant 9.99999974E-6 : f32
    %556 = vector.broadcast %cst_259 : f32 to vector<16x1xf32>
    %557 = arith.addf %553, %556 : vector<16x1xf32>
    %558 = math.rsqrt %557 : vector<16x1xf32>
    %559 = vector.broadcast %558 : vector<16x1xf32> to vector<16x32xf32>
    %560 = arith.mulf %555, %559 : vector<16x32xf32>
    %561 = vector.broadcast %540 : vector<1x32xf32> to vector<16x32xf32>
    %562 = arith.mulf %560, %561 : vector<16x32xf32>
    %563 = vector.broadcast %542 : vector<1x32xf32> to vector<16x32xf32>
    %564 = arith.addf %562, %563 : vector<16x32xf32>
    %565 = vector.extract_strided_slice %564 {offsets = [0, 0], sizes = [8, 32], strides = [1, 1]} : vector<16x32xf32> to vector<8x32xf32>
    %566 = vector.extract_strided_slice %537 {offsets = [0, 0], sizes = [1, 32], strides = [1, 1]} : vector<2x32xf32> to vector<1x32xf32>
    %cst_260 = arith.constant 1.000000e+00 : f32
    %567 = vector.broadcast %cst_260 : f32 to vector<1x32xf32>
    %568 = arith.addf %567, %566 : vector<1x32xf32>
    %569 = vector.broadcast %568 : vector<1x32xf32> to vector<8x32xf32>
    %570 = arith.mulf %565, %569 : vector<8x32xf32>
    %571 = vector.extract_strided_slice %538 {offsets = [0, 0], sizes = [1, 32], strides = [1, 1]} : vector<2x32xf32> to vector<1x32xf32>
    %572 = vector.broadcast %571 : vector<1x32xf32> to vector<8x32xf32>
    %573 = arith.addf %570, %572 : vector<8x32xf32>
    %c0_261 = arith.constant 0 : index
    %c0_262 = arith.constant 0 : index
    %574 = vector.load %arg48[%c0_261, %c0_262] : memref<16x32xf32, #tpu.memory_space<vmem>>, vector<8x32xf32>
    tpu.vector_store %arg48[%c0_261, %c0_262], %573 {strides = array<i32>} : memref<16x32xf32, #tpu.memory_space<vmem>>, vector<8x32xf32>,
    %575 = vector.extract_strided_slice %564 {offsets = [8, 0], sizes = [8, 32], strides = [1, 1]} : vector<16x32xf32> to vector<8x32xf32>
    %576 = vector.extract_strided_slice %537 {offsets = [1, 0], sizes = [1, 32], strides = [1, 1]} : vector<2x32xf32> to vector<1x32xf32>
    %cst_263 = arith.constant 1.000000e+00 : f32
    %577 = vector.broadcast %cst_263 : f32 to vector<1x32xf32>
    %578 = arith.addf %577, %576 : vector<1x32xf32>
    %579 = vector.broadcast %578 : vector<1x32xf32> to vector<8x32xf32>
    %580 = arith.mulf %575, %579 : vector<8x32xf32>
    %581 = vector.extract_strided_slice %538 {offsets = [1, 0], sizes = [1, 32], strides = [1, 1]} : vector<2x32xf32> to vector<1x32xf32>
    %582 = vector.broadcast %581 : vector<1x32xf32> to vector<8x32xf32>
    %583 = arith.addf %580, %582 : vector<8x32xf32>
    %c8_264 = arith.constant 8 : index
    %c0_265 = arith.constant 0 : index
    %584 = vector.load %arg48[%c8_264, %c0_265] : memref<16x32xf32, #tpu.memory_space<vmem>>, vector<8x32xf32>
    tpu.vector_store %arg48[%c8_264, %c0_265], %583 {strides = array<i32>} : memref<16x32xf32, #tpu.memory_space<vmem>>, vector<8x32xf32>,
    %c0_266 = arith.constant 0 : index
    %c0_267 = arith.constant 0 : index
    %585 = vector.load %arg48[%c0_266, %c0_267] : memref<16x32xf32, #tpu.memory_space<vmem>>, vector<16x32xf32>
    %586 = arith.negf %585 : vector<16x32xf32>
    %587 = math.exp %586 : vector<16x32xf32>
    %cst_268 = arith.constant 1.000000e+00 : f32
    %588 = vector.broadcast %cst_268 : f32 to vector<16x32xf32>
    %589 = arith.addf %588, %587 : vector<16x32xf32>
    %590 = arith.divf %588, %589 : vector<16x32xf32>
    %591 = arith.mulf %585, %590 : vector<16x32xf32>
    %c0_269 = arith.constant 0 : index
    %c0_270 = arith.constant 0 : index
    %c0_271 = arith.constant 0 : index
    %592 = vector.load %arg32[%c0_269, %c0_270, %c0_271] : memref<1x32x32xf32, #tpu.memory_space<vmem>>, vector<1x32x32xf32>
    %593 = vector.shape_cast %592 : vector<1x32x32xf32> to vector<32x32xf32>
    %cst_272 = arith.constant dense<0.000000e+00> : vector<16x32xf32>
    %594 = tpu.matmul %591, %593, %cst_272 {dimension_numbers = #tpu.dot_dimension_numbers<[1], [0], [0], [1], [0, 0, 1, 1], [], []>} : vector<16x32xf32>, vector<32x32xf32>, vector<16x32xf32> -> vector<16x32xf32>
    %c0_273 = arith.constant 0 : index
    %c0_274 = arith.constant 0 : index
    %c0_275 = arith.constant 0 : index
    %595 = vector.load %arg33[%c0_273, %c0_274, %c0_275] : memref<1x1x32xf32, #tpu.memory_space<vmem>>, vector<1x1x32xf32>
    %596 = vector.shape_cast %595 : vector<1x1x32xf32> to vector<1x32xf32>
    %597 = vector.broadcast %596 : vector<1x32xf32> to vector<16x32xf32>
    %598 = arith.addf %594, %597 : vector<16x32xf32>
    %599 = arith.addf %598, %311 : vector<16x32xf32>
    %c0_276 = arith.constant 0 : index
    %c0_277 = arith.constant 0 : index
    %c0_278 = arith.constant 0 : index
    %600 = vector.load %arg26[%c0_276, %c0_277, %c0_278] : memref<1x1x32xf32, #tpu.memory_space<vmem>>, vector<1x1x32xf32>
    %601 = vector.shape_cast %600 : vector<1x1x32xf32> to vector<1x32xf32>
    %c0_279 = arith.constant 0 : index
    %c0_280 = arith.constant 0 : index
    %c0_281 = arith.constant 0 : index
    %602 = vector.load %arg27[%c0_279, %c0_280, %c0_281] : memref<1x1x32xf32, #tpu.memory_space<vmem>>, vector<1x1x32xf32>
    %603 = vector.shape_cast %602 : vector<1x1x32xf32> to vector<1x32xf32>
    %cst_282 = arith.constant dense<0.000000e+00> : vector<16xf32>
    %604 = vector.multi_reduction <add>, %599, %cst_282 [1] : vector<16x32xf32> to vector<16xf32>
    %605 = vector.shape_cast %604 : vector<16xf32> to vector<16x1xf32>
    %cst_283 = arith.constant 3.200000e+01 : f32
    %606 = vector.broadcast %cst_283 : f32 to vector<16x1xf32>
    %607 = arith.divf %605, %606 : vector<16x1xf32>
    %608 = vector.broadcast %607 : vector<16x1xf32> to vector<16x32xf32>
    %609 = arith.subf %599, %608 : vector<16x32xf32>
    %610 = arith.mulf %609, %609 : vector<16x32xf32>
    %cst_284 = arith.constant dense<0.000000e+00> : vector<16xf32>
    %611 = vector.multi_reduction <add>, %610, %cst_284 [1] : vector<16x32xf32> to vector<16xf32>
    %612 = vector.shape_cast %611 : vector<16xf32> to vector<16x1xf32>
    %cst_285 = arith.constant 3.200000e+01 : f32
    %613 = vector.broadcast %cst_285 : f32 to vector<16x1xf32>
    %614 = arith.divf %612, %613 : vector<16x1xf32>
    %615 = vector.broadcast %607 : vector<16x1xf32> to vector<16x32xf32>
    %616 = arith.subf %599, %615 : vector<16x32xf32>
    %cst_286 = arith.constant 9.99999997E-7 : f32
    %617 = vector.broadcast %cst_286 : f32 to vector<16x1xf32>
    %618 = arith.addf %614, %617 : vector<16x1xf32>
    %619 = math.rsqrt %618 : vector<16x1xf32>
    %620 = vector.broadcast %619 : vector<16x1xf32> to vector<16x32xf32>
    %621 = arith.mulf %616, %620 : vector<16x32xf32>
    %622 = vector.broadcast %601 : vector<1x32xf32> to vector<16x32xf32>
    %623 = arith.mulf %621, %622 : vector<16x32xf32>
    %624 = vector.broadcast %603 : vector<1x32xf32> to vector<16x32xf32>
    %625 = arith.addf %623, %624 : vector<16x32xf32>
    %c0_287 = arith.constant 0 : index
    %c0_288 = arith.constant 0 : index
    %c0_289 = arith.constant 0 : index
    %626 = vector.load %arg34[%c0_287, %c0_288, %c0_289] : memref<1x32x64xf32, #tpu.memory_space<vmem>>, vector<1x32x64xf32>
    %627 = vector.shape_cast %626 : vector<1x32x64xf32> to vector<32x64xf32>
    %cst_290 = arith.constant dense<0.000000e+00> : vector<16x64xf32>
    %628 = tpu.matmul %625, %627, %cst_290 {dimension_numbers = #tpu.dot_dimension_numbers<[1], [0], [0], [1], [0, 0, 1, 1], [], []>} : vector<16x32xf32>, vector<32x64xf32>, vector<16x64xf32> -> vector<16x64xf32>
    %c0_291 = arith.constant 0 : index
    %c0_292 = arith.constant 0 : index
    %c0_293 = arith.constant 0 : index
    %629 = vector.load %arg35[%c0_291, %c0_292, %c0_293] : memref<1x1x64xf32, #tpu.memory_space<vmem>>, vector<1x1x64xf32>
    %630 = vector.shape_cast %629 : vector<1x1x64xf32> to vector<1x64xf32>
    %631 = vector.broadcast %630 : vector<1x64xf32> to vector<16x64xf32>
    %632 = arith.addf %628, %631 : vector<16x64xf32>
    %cst_294 = arith.constant 5.000000e-01 : f32
    %633 = vector.broadcast %cst_294 : f32 to vector<16x64xf32>
    %634 = arith.mulf %633, %632 : vector<16x64xf32>
    %cst_295 = arith.constant 4.471500e-02 : f32
    %635 = vector.broadcast %cst_295 : f32 to vector<16x64xf32>
    %636 = arith.mulf %635, %632 : vector<16x64xf32>
    %637 = arith.mulf %636, %632 : vector<16x64xf32>
    %638 = arith.mulf %637, %632 : vector<16x64xf32>
    %639 = arith.addf %632, %638 : vector<16x64xf32>
    %cst_296 = arith.constant 0.797884583 : f32
    %640 = vector.broadcast %cst_296 : f32 to vector<16x64xf32>
    %641 = arith.mulf %640, %639 : vector<16x64xf32>
    %642 = math.tanh %641 : vector<16x64xf32>
    %cst_297 = arith.constant 1.000000e+00 : f32
    %643 = vector.broadcast %cst_297 : f32 to vector<16x64xf32>
    %644 = arith.addf %643, %642 : vector<16x64xf32>
    %645 = arith.mulf %634, %644 : vector<16x64xf32>
    %c0_298 = arith.constant 0 : index
    %c0_299 = arith.constant 0 : index
    %c0_300 = arith.constant 0 : index
    %646 = vector.load %arg36[%c0_298, %c0_299, %c0_300] : memref<1x64x32xf32, #tpu.memory_space<vmem>>, vector<1x64x32xf32>
    %647 = vector.shape_cast %646 : vector<1x64x32xf32> to vector<64x32xf32>
    %cst_301 = arith.constant dense<0.000000e+00> : vector<16x32xf32>
    %648 = tpu.matmul %645, %647, %cst_301 {dimension_numbers = #tpu.dot_dimension_numbers<[1], [0], [0], [1], [0, 0, 1, 1], [], []>} : vector<16x64xf32>, vector<64x32xf32>, vector<16x32xf32> -> vector<16x32xf32>
    %c0_302 = arith.constant 0 : index
    %c0_303 = arith.constant 0 : index
    %c0_304 = arith.constant 0 : index
    %649 = vector.load %arg37[%c0_302, %c0_303, %c0_304] : memref<1x1x32xf32, #tpu.memory_space<vmem>>, vector<1x1x32xf32>
    %650 = vector.shape_cast %649 : vector<1x1x32xf32> to vector<1x32xf32>
    %651 = vector.broadcast %650 : vector<1x32xf32> to vector<16x32xf32>
    %652 = arith.addf %648, %651 : vector<16x32xf32>
    %c0_305 = arith.constant 0 : index
    %c0_306 = arith.constant 0 : index
    %c0_307 = arith.constant 0 : index
    %653 = vector.load %arg40[%c0_305, %c0_306, %c0_307] : memref<1x16x64xf32, #tpu.memory_space<vmem>>, vector<1x16x64xf32>
    %654 = vector.shape_cast %653 : vector<1x16x64xf32> to vector<16x64xf32>
    %cst_308 = arith.constant dense<0.000000e+00> : vector<2x64xf32>
    %655 = tpu.matmul %9, %654, %cst_308 {dimension_numbers = #tpu.dot_dimension_numbers<[1], [0], [0], [1], [0, 0, 1, 1], [], []>} : vector<2x16xf32>, vector<16x64xf32>, vector<2x64xf32> -> vector<2x64xf32>
    %c0_309 = arith.constant 0 : index
    %c0_310 = arith.constant 0 : index
    %c0_311 = arith.constant 0 : index
    %656 = vector.load %arg41[%c0_309, %c0_310, %c0_311] : memref<1x1x64xf32, #tpu.memory_space<vmem>>, vector<1x1x64xf32>
    %657 = vector.shape_cast %656 : vector<1x1x64xf32> to vector<1x64xf32>
    %658 = vector.broadcast %657 : vector<1x64xf32> to vector<2x64xf32>
    %659 = arith.addf %655, %658 : vector<2x64xf32>
    %660 = vector.extract_strided_slice %659 {offsets = [0, 0], sizes = [2, 32], strides = [1, 1]} : vector<2x64xf32> to vector<2x32xf32>
    %661 = vector.extract_strided_slice %659 {offsets = [0, 32], sizes = [2, 32], strides = [1, 1]} : vector<2x64xf32> to vector<2x32xf32>
    %c0_312 = arith.constant 0 : index
    %c0_313 = arith.constant 0 : index
    %c0_314 = arith.constant 0 : index
    %662 = vector.load %arg42[%c0_312, %c0_313, %c0_314] : memref<1x1x32xf32, #tpu.memory_space<vmem>>, vector<1x1x32xf32>
    %663 = vector.shape_cast %662 : vector<1x1x32xf32> to vector<1x32xf32>
    %c0_315 = arith.constant 0 : index
    %c0_316 = arith.constant 0 : index
    %c0_317 = arith.constant 0 : index
    %664 = vector.load %arg43[%c0_315, %c0_316, %c0_317] : memref<1x1x32xf32, #tpu.memory_space<vmem>>, vector<1x1x32xf32>
    %665 = vector.shape_cast %664 : vector<1x1x32xf32> to vector<1x32xf32>
    %cst_318 = arith.constant dense<0.000000e+00> : vector<16xf32>
    %666 = vector.multi_reduction <add>, %652, %cst_318 [1] : vector<16x32xf32> to vector<16xf32>
    %667 = vector.shape_cast %666 : vector<16xf32> to vector<16x1xf32>
    %cst_319 = arith.constant 3.200000e+01 : f32
    %668 = vector.broadcast %cst_319 : f32 to vector<16x1xf32>
    %669 = arith.divf %667, %668 : vector<16x1xf32>
    %670 = vector.broadcast %669 : vector<16x1xf32> to vector<16x32xf32>
    %671 = arith.subf %652, %670 : vector<16x32xf32>
    %672 = arith.mulf %671, %671 : vector<16x32xf32>
    %cst_320 = arith.constant dense<0.000000e+00> : vector<16xf32>
    %673 = vector.multi_reduction <add>, %672, %cst_320 [1] : vector<16x32xf32> to vector<16xf32>
    %674 = vector.shape_cast %673 : vector<16xf32> to vector<16x1xf32>
    %cst_321 = arith.constant 3.200000e+01 : f32
    %675 = vector.broadcast %cst_321 : f32 to vector<16x1xf32>
    %676 = arith.divf %674, %675 : vector<16x1xf32>
    %677 = vector.broadcast %669 : vector<16x1xf32> to vector<16x32xf32>
    %678 = arith.subf %652, %677 : vector<16x32xf32>
    %cst_322 = arith.constant 9.99999974E-6 : f32
    %679 = vector.broadcast %cst_322 : f32 to vector<16x1xf32>
    %680 = arith.addf %676, %679 : vector<16x1xf32>
    %681 = math.rsqrt %680 : vector<16x1xf32>
    %682 = vector.broadcast %681 : vector<16x1xf32> to vector<16x32xf32>
    %683 = arith.mulf %678, %682 : vector<16x32xf32>
    %684 = vector.broadcast %663 : vector<1x32xf32> to vector<16x32xf32>
    %685 = arith.mulf %683, %684 : vector<16x32xf32>
    %686 = vector.broadcast %665 : vector<1x32xf32> to vector<16x32xf32>
    %687 = arith.addf %685, %686 : vector<16x32xf32>
    %688 = vector.extract_strided_slice %687 {offsets = [0, 0], sizes = [8, 32], strides = [1, 1]} : vector<16x32xf32> to vector<8x32xf32>
    %689 = vector.extract_strided_slice %660 {offsets = [0, 0], sizes = [1, 32], strides = [1, 1]} : vector<2x32xf32> to vector<1x32xf32>
    %cst_323 = arith.constant 1.000000e+00 : f32
    %690 = vector.broadcast %cst_323 : f32 to vector<1x32xf32>
    %691 = arith.addf %690, %689 : vector<1x32xf32>
    %692 = vector.broadcast %691 : vector<1x32xf32> to vector<8x32xf32>
    %693 = arith.mulf %688, %692 : vector<8x32xf32>
    %694 = vector.extract_strided_slice %661 {offsets = [0, 0], sizes = [1, 32], strides = [1, 1]} : vector<2x32xf32> to vector<1x32xf32>
    %695 = vector.broadcast %694 : vector<1x32xf32> to vector<8x32xf32>
    %696 = arith.addf %693, %695 : vector<8x32xf32>
    %c0_324 = arith.constant 0 : index
    %c0_325 = arith.constant 0 : index
    %697 = vector.load %arg48[%c0_324, %c0_325] : memref<16x32xf32, #tpu.memory_space<vmem>>, vector<8x32xf32>
    tpu.vector_store %arg48[%c0_324, %c0_325], %696 {strides = array<i32>} : memref<16x32xf32, #tpu.memory_space<vmem>>, vector<8x32xf32>,
    %698 = vector.extract_strided_slice %687 {offsets = [8, 0], sizes = [8, 32], strides = [1, 1]} : vector<16x32xf32> to vector<8x32xf32>
    %699 = vector.extract_strided_slice %660 {offsets = [1, 0], sizes = [1, 32], strides = [1, 1]} : vector<2x32xf32> to vector<1x32xf32>
    %cst_326 = arith.constant 1.000000e+00 : f32
    %700 = vector.broadcast %cst_326 : f32 to vector<1x32xf32>
    %701 = arith.addf %700, %699 : vector<1x32xf32>
    %702 = vector.broadcast %701 : vector<1x32xf32> to vector<8x32xf32>
    %703 = arith.mulf %698, %702 : vector<8x32xf32>
    %704 = vector.extract_strided_slice %661 {offsets = [1, 0], sizes = [1, 32], strides = [1, 1]} : vector<2x32xf32> to vector<1x32xf32>
    %705 = vector.broadcast %704 : vector<1x32xf32> to vector<8x32xf32>
    %706 = arith.addf %703, %705 : vector<8x32xf32>
    %c8_327 = arith.constant 8 : index
    %c0_328 = arith.constant 0 : index
    %707 = vector.load %arg48[%c8_327, %c0_328] : memref<16x32xf32, #tpu.memory_space<vmem>>, vector<8x32xf32>
    tpu.vector_store %arg48[%c8_327, %c0_328], %706 {strides = array<i32>} : memref<16x32xf32, #tpu.memory_space<vmem>>, vector<8x32xf32>,
    %c0_329 = arith.constant 0 : index
    %c0_330 = arith.constant 0 : index
    %708 = vector.load %arg48[%c0_329, %c0_330] : memref<16x32xf32, #tpu.memory_space<vmem>>, vector<16x32xf32>
    %709 = arith.negf %708 : vector<16x32xf32>
    %710 = math.exp %709 : vector<16x32xf32>
    %cst_331 = arith.constant 1.000000e+00 : f32
    %711 = vector.broadcast %cst_331 : f32 to vector<16x32xf32>
    %712 = arith.addf %711, %710 : vector<16x32xf32>
    %713 = arith.divf %711, %712 : vector<16x32xf32>
    %714 = arith.mulf %708, %713 : vector<16x32xf32>
    %c0_332 = arith.constant 0 : index
    %c0_333 = arith.constant 0 : index
    %c0_334 = arith.constant 0 : index
    %715 = vector.load %arg44[%c0_332, %c0_333, %c0_334] : memref<1x32x32xf32, #tpu.memory_space<vmem>>, vector<1x32x32xf32>
    %716 = vector.shape_cast %715 : vector<1x32x32xf32> to vector<32x32xf32>
    %cst_335 = arith.constant dense<0.000000e+00> : vector<16x32xf32>
    %717 = tpu.matmul %714, %716, %cst_335 {dimension_numbers = #tpu.dot_dimension_numbers<[1], [0], [0], [1], [0, 0, 1, 1], [], []>} : vector<16x32xf32>, vector<32x32xf32>, vector<16x32xf32> -> vector<16x32xf32>
    %c0_336 = arith.constant 0 : index
    %c0_337 = arith.constant 0 : index
    %c0_338 = arith.constant 0 : index
    %718 = vector.load %arg45[%c0_336, %c0_337, %c0_338] : memref<1x1x32xf32, #tpu.memory_space<vmem>>, vector<1x1x32xf32>
    %719 = vector.shape_cast %718 : vector<1x1x32xf32> to vector<1x32xf32>
    %720 = vector.broadcast %719 : vector<1x32xf32> to vector<16x32xf32>
    %721 = arith.addf %717, %720 : vector<16x32xf32>
    %722 = arith.addf %721, %625 : vector<16x32xf32>
    %c0_339 = arith.constant 0 : index
    %c0_340 = arith.constant 0 : index
    %c0_341 = arith.constant 0 : index
    %723 = vector.load %arg38[%c0_339, %c0_340, %c0_341] : memref<1x1x32xf32, #tpu.memory_space<vmem>>, vector<1x1x32xf32>
    %724 = vector.shape_cast %723 : vector<1x1x32xf32> to vector<1x32xf32>
    %c0_342 = arith.constant 0 : index
    %c0_343 = arith.constant 0 : index
    %c0_344 = arith.constant 0 : index
    %725 = vector.load %arg39[%c0_342, %c0_343, %c0_344] : memref<1x1x32xf32, #tpu.memory_space<vmem>>, vector<1x1x32xf32>
    %726 = vector.shape_cast %725 : vector<1x1x32xf32> to vector<1x32xf32>
    %cst_345 = arith.constant dense<0.000000e+00> : vector<16xf32>
    %727 = vector.multi_reduction <add>, %722, %cst_345 [1] : vector<16x32xf32> to vector<16xf32>
    %728 = vector.shape_cast %727 : vector<16xf32> to vector<16x1xf32>
    %cst_346 = arith.constant 3.200000e+01 : f32
    %729 = vector.broadcast %cst_346 : f32 to vector<16x1xf32>
    %730 = arith.divf %728, %729 : vector<16x1xf32>
    %731 = vector.broadcast %730 : vector<16x1xf32> to vector<16x32xf32>
    %732 = arith.subf %722, %731 : vector<16x32xf32>
    %733 = arith.mulf %732, %732 : vector<16x32xf32>
    %cst_347 = arith.constant dense<0.000000e+00> : vector<16xf32>
    %734 = vector.multi_reduction <add>, %733, %cst_347 [1] : vector<16x32xf32> to vector<16xf32>
    %735 = vector.shape_cast %734 : vector<16xf32> to vector<16x1xf32>
    %cst_348 = arith.constant 3.200000e+01 : f32
    %736 = vector.broadcast %cst_348 : f32 to vector<16x1xf32>
    %737 = arith.divf %735, %736 : vector<16x1xf32>
    %738 = vector.broadcast %730 : vector<16x1xf32> to vector<16x32xf32>
    %739 = arith.subf %722, %738 : vector<16x32xf32>
    %cst_349 = arith.constant 9.99999997E-7 : f32
    %740 = vector.broadcast %cst_349 : f32 to vector<16x1xf32>
    %741 = arith.addf %737, %740 : vector<16x1xf32>
    %742 = math.rsqrt %741 : vector<16x1xf32>
    %743 = vector.broadcast %742 : vector<16x1xf32> to vector<16x32xf32>
    %744 = arith.mulf %739, %743 : vector<16x32xf32>
    %745 = vector.broadcast %724 : vector<1x32xf32> to vector<16x32xf32>
    %746 = arith.mulf %744, %745 : vector<16x32xf32>
    %747 = vector.broadcast %726 : vector<1x32xf32> to vector<16x32xf32>
    %748 = arith.addf %746, %747 : vector<16x32xf32>
    %c0_350 = arith.constant 0 : index
    %c0_351 = arith.constant 0 : index
    %749 = vector.load %arg46[%c0_350, %c0_351] : memref<16x32xf32, #tpu.memory_space<vmem>>, vector<16x32xf32>
    tpu.vector_store %arg46[%c0_350, %c0_351], %748 {strides = array<i32>} : memref<16x32xf32, #tpu.memory_space<vmem>>, vector<16x32xf32>,
    return
  }
  func.func @transform_0(%arg0: i32) -> (i32, i32) {
    %c0_i32 = arith.constant 0 : i32
    %c0_i32_0 = arith.constant 0 : i32
    %c0_i32_1 = arith.constant 0 : i32
    return %c0_i32, %c0_i32_0 : i32, i32
  }
  func.func @transform_1(%arg0: i32) -> (i32, i32) {
    %c0_i32 = arith.constant 0 : i32
    %c0_i32_0 = arith.constant 0 : i32
    %c0_i32_1 = arith.constant 0 : i32
    return %c0_i32, %c0_i32_0 : i32, i32
  }
  func.func @transform_2(%arg0: i32) -> (i32, i32) {
    %c0_i32 = arith.constant 0 : i32
    %c0_i32_0 = arith.constant 0 : i32
    %c0_i32_1 = arith.constant 0 : i32
    return %c0_i32, %c0_i32_0 : i32, i32
  }
  func.func @transform_3(%arg0: i32) -> (i32, i32) {
    %c0_i32 = arith.constant 0 : i32
    %c0_i32_0 = arith.constant 0 : i32
    %c0_i32_1 = arith.constant 0 : i32
    return %c0_i32, %c0_i32_0 : i32, i32
  }
  func.func @transform_4(%arg0: i32) -> (i32, i32) {
    %c0_i32 = arith.constant 0 : i32
    %c0_i32_0 = arith.constant 0 : i32
    %c0_i32_1 = arith.constant 0 : i32
    return %c0_i32, %c0_i32_0 : i32, i32
  }
  func.func @transform_5(%arg0: i32) -> (i32, i32, i32) {
    %c0_i32 = arith.constant 0 : i32
    %c0_i32_0 = arith.constant 0 : i32
    %c0_i32_1 = arith.constant 0 : i32
    return %arg0, %c0_i32, %c0_i32_0 : i32, i32, i32
  }
  func.func @transform_6(%arg0: i32) -> (i32, i32, i32) {
    %c0_i32 = arith.constant 0 : i32
    %c0_i32_0 = arith.constant 0 : i32
    %c0_i32_1 = arith.constant 0 : i32
    return %arg0, %c0_i32, %c0_i32_0 : i32, i32, i32
  }
  func.func @transform_7(%arg0: i32) -> (i32, i32, i32) {
    %c0_i32 = arith.constant 0 : i32
    %c0_i32_0 = arith.constant 0 : i32
    %c0_i32_1 = arith.constant 0 : i32
    return %arg0, %c0_i32, %c0_i32_0 : i32, i32, i32
  }
  func.func @transform_8(%arg0: i32) -> (i32, i32, i32) {
    %c0_i32 = arith.constant 0 : i32
    %c0_i32_0 = arith.constant 0 : i32
    %c0_i32_1 = arith.constant 0 : i32
    return %arg0, %c0_i32, %c0_i32_0 : i32, i32, i32
  }
  func.func @transform_9(%arg0: i32) -> (i32, i32, i32) {
    %c0_i32 = arith.constant 0 : i32
    %c0_i32_0 = arith.constant 0 : i32
    %c0_i32_1 = arith.constant 0 : i32
    return %arg0, %c0_i32, %c0_i32_0 : i32, i32, i32
  }
  func.func @transform_10(%arg0: i32) -> (i32, i32, i32) {
    %c0_i32 = arith.constant 0 : i32
    %c0_i32_0 = arith.constant 0 : i32
    %c0_i32_1 = arith.constant 0 : i32
    return %arg0, %c0_i32, %c0_i32_0 : i32, i32, i32
  }
  func.func @transform_11(%arg0: i32) -> (i32, i32, i32) {
    %c0_i32 = arith.constant 0 : i32
    %c0_i32_0 = arith.constant 0 : i32
    %c0_i32_1 = arith.constant 0 : i32
    return %arg0, %c0_i32, %c0_i32_0 : i32, i32, i32
  }
  func.func @transform_12(%arg0: i32) -> (i32, i32, i32) {
    %c0_i32 = arith.constant 0 : i32
    %c0_i32_0 = arith.constant 0 : i32
    %c0_i32_1 = arith.constant 0 : i32
    return %arg0, %c0_i32, %c0_i32_0 : i32, i32, i32
  }
  func.func @transform_13(%arg0: i32) -> (i32, i32, i32) {
    %c0_i32 = arith.constant 0 : i32
    %c0_i32_0 = arith.constant 0 : i32
    %c0_i32_1 = arith.constant 0 : i32
    return %arg0, %c0_i32, %c0_i32_0 : i32, i32, i32
  }
  func.func @transform_14(%arg0: i32) -> (i32, i32, i32) {
    %c0_i32 = arith.constant 0 : i32
    %c0_i32_0 = arith.constant 0 : i32
    %c0_i32_1 = arith.constant 0 : i32
    return %arg0, %c0_i32, %c0_i32_0 : i32, i32, i32
  }
  func.func @transform_15(%arg0: i32) -> (i32, i32, i32) {
    %c0_i32 = arith.constant 0 : i32
    %c0_i32_0 = arith.constant 0 : i32
    %c0_i32_1 = arith.constant 0 : i32
    return %arg0, %c0_i32, %c0_i32_0 : i32, i32, i32
  }
  func.func @transform_16(%arg0: i32) -> (i32, i32, i32) {
    %c0_i32 = arith.constant 0 : i32
    %c0_i32_0 = arith.constant 0 : i32
    %c0_i32_1 = arith.constant 0 : i32
    return %arg0, %c0_i32, %c0_i32_0 : i32, i32, i32
  }
  func.func @transform_17(%arg0: i32) -> (i32, i32, i32) {
    %c0_i32 = arith.constant 0 : i32
    %c0_i32_0 = arith.constant 0 : i32
    %c0_i32_1 = arith.constant 0 : i32
    return %arg0, %c0_i32, %c0_i32_0 : i32, i32, i32
  }
  func.func @transform_18(%arg0: i32) -> (i32, i32, i32) {
    %c0_i32 = arith.constant 0 : i32
    %c0_i32_0 = arith.constant 0 : i32
    %c0_i32_1 = arith.constant 0 : i32
    return %arg0, %c0_i32, %c0_i32_0 : i32, i32, i32
  }
  func.func @transform_19(%arg0: i32) -> (i32, i32, i32) {
    %c0_i32 = arith.constant 0 : i32
    %c0_i32_0 = arith.constant 0 : i32
    %c0_i32_1 = arith.constant 0 : i32
    return %arg0, %c0_i32, %c0_i32_0 : i32, i32, i32
  }
  func.func @transform_20(%arg0: i32) -> (i32, i32, i32) {
    %c0_i32 = arith.constant 0 : i32
    %c0_i32_0 = arith.constant 0 : i32
    %c0_i32_1 = arith.constant 0 : i32
    return %arg0, %c0_i32, %c0_i32_0 : i32, i32, i32
  }
  func.func @transform_21(%arg0: i32) -> (i32, i32, i32) {
    %c0_i32 = arith.constant 0 : i32
    %c0_i32_0 = arith.constant 0 : i32
    %c0_i32_1 = arith.constant 0 : i32
    return %arg0, %c0_i32, %c0_i32_0 : i32, i32, i32
  }
  func.func @transform_22(%arg0: i32) -> (i32, i32, i32) {
    %c0_i32 = arith.constant 0 : i32
    %c0_i32_0 = arith.constant 0 : i32
    %c0_i32_1 = arith.constant 0 : i32
    return %arg0, %c0_i32, %c0_i32_0 : i32, i32, i32
  }
  func.func @transform_23(%arg0: i32) -> (i32, i32, i32) {
    %c0_i32 = arith.constant 0 : i32
    %c0_i32_0 = arith.constant 0 : i32
    %c0_i32_1 = arith.constant 0 : i32
    return %arg0, %c0_i32, %c0_i32_0 : i32, i32, i32
  }
  func.func @transform_24(%arg0: i32) -> (i32, i32, i32) {
    %c0_i32 = arith.constant 0 : i32
    %c0_i32_0 = arith.constant 0 : i32
    %c0_i32_1 = arith.constant 0 : i32
    return %arg0, %c0_i32, %c0_i32_0 : i32, i32, i32
  }
  func.func @transform_25(%arg0: i32) -> (i32, i32, i32) {
    %c0_i32 = arith.constant 0 : i32
    %c0_i32_0 = arith.constant 0 : i32
    %c0_i32_1 = arith.constant 0 : i32
    return %arg0, %c0_i32, %c0_i32_0 : i32, i32, i32
  }
  func.func @transform_26(%arg0: i32) -> (i32, i32, i32) {
    %c0_i32 = arith.constant 0 : i32
    %c0_i32_0 = arith.constant 0 : i32
    %c0_i32_1 = arith.constant 0 : i32
    return %arg0, %c0_i32, %c0_i32_0 : i32, i32, i32
  }
  func.func @transform_27(%arg0: i32) -> (i32, i32, i32) {
    %c0_i32 = arith.constant 0 : i32
    %c0_i32_0 = arith.constant 0 : i32
    %c0_i32_1 = arith.constant 0 : i32
    return %arg0, %c0_i32, %c0_i32_0 : i32, i32, i32
  }
  func.func @transform_28(%arg0: i32) -> (i32, i32, i32) {
    %c0_i32 = arith.constant 0 : i32
    %c0_i32_0 = arith.constant 0 : i32
    %c0_i32_1 = arith.constant 0 : i32
    return %arg0, %c0_i32, %c0_i32_0 : i32, i32, i32
  }
  func.func @transform_29(%arg0: i32) -> (i32, i32, i32) {
    %c0_i32 = arith.constant 0 : i32
    %c0_i32_0 = arith.constant 0 : i32
    %c0_i32_1 = arith.constant 0 : i32
    return %arg0, %c0_i32, %c0_i32_0 : i32, i32, i32
  }
  func.func @transform_30(%arg0: i32) -> (i32, i32, i32) {
    %c0_i32 = arith.constant 0 : i32
    %c0_i32_0 = arith.constant 0 : i32
    %c0_i32_1 = arith.constant 0 : i32
    return %arg0, %c0_i32, %c0_i32_0 : i32, i32, i32
  }
  func.func @transform_31(%arg0: i32) -> (i32, i32, i32) {
    %c0_i32 = arith.constant 0 : i32
    %c0_i32_0 = arith.constant 0 : i32
    %c0_i32_1 = arith.constant 0 : i32
    return %arg0, %c0_i32, %c0_i32_0 : i32, i32, i32
  }
  func.func @transform_32(%arg0: i32) -> (i32, i32, i32) {
    %c0_i32 = arith.constant 0 : i32
    %c0_i32_0 = arith.constant 0 : i32
    %c0_i32_1 = arith.constant 0 : i32
    return %arg0, %c0_i32, %c0_i32_0 : i32, i32, i32
  }
  func.func @transform_33(%arg0: i32) -> (i32, i32, i32) {
    %c0_i32 = arith.constant 0 : i32
    %c0_i32_0 = arith.constant 0 : i32
    %c0_i32_1 = arith.constant 0 : i32
    return %arg0, %c0_i32, %c0_i32_0 : i32, i32, i32
  }
  func.func @transform_34(%arg0: i32) -> (i32, i32, i32) {
    %c0_i32 = arith.constant 0 : i32
    %c0_i32_0 = arith.constant 0 : i32
    %c0_i32_1 = arith.constant 0 : i32
    return %arg0, %c0_i32, %c0_i32_0 : i32, i32, i32
  }
  func.func @transform_35(%arg0: i32) -> (i32, i32, i32) {
    %c0_i32 = arith.constant 0 : i32
    %c0_i32_0 = arith.constant 0 : i32
    %c0_i32_1 = arith.constant 0 : i32
    return %arg0, %c0_i32, %c0_i32_0 : i32, i32, i32
  }
  func.func @transform_36(%arg0: i32) -> (i32, i32, i32) {
    %c0_i32 = arith.constant 0 : i32
    %c0_i32_0 = arith.constant 0 : i32
    %c0_i32_1 = arith.constant 0 : i32
    return %arg0, %c0_i32, %c0_i32_0 : i32, i32, i32
  }
  func.func @transform_37(%arg0: i32) -> (i32, i32, i32) {
    %c0_i32 = arith.constant 0 : i32
    %c0_i32_0 = arith.constant 0 : i32
    %c0_i32_1 = arith.constant 0 : i32
    return %arg0, %c0_i32, %c0_i32_0 : i32, i32, i32
  }
  func.func @transform_38(%arg0: i32) -> (i32, i32, i32) {
    %c0_i32 = arith.constant 0 : i32
    %c0_i32_0 = arith.constant 0 : i32
    %c0_i32_1 = arith.constant 0 : i32
    return %arg0, %c0_i32, %c0_i32_0 : i32, i32, i32
  }
  func.func @transform_39(%arg0: i32) -> (i32, i32, i32) {
    %c0_i32 = arith.constant 0 : i32
    %c0_i32_0 = arith.constant 0 : i32
    %c0_i32_1 = arith.constant 0 : i32
    return %arg0, %c0_i32, %c0_i32_0 : i32, i32, i32
  }
  func.func @transform_40(%arg0: i32) -> (i32, i32, i32) {
    %c0_i32 = arith.constant 0 : i32
    %c0_i32_0 = arith.constant 0 : i32
    %c0_i32_1 = arith.constant 0 : i32
    return %arg0, %c0_i32, %c0_i32_0 : i32, i32, i32
  }
  func.func @transform_41(%arg0: i32) -> (i32, i32, i32) {
    %c0_i32 = arith.constant 0 : i32
    %c0_i32_0 = arith.constant 0 : i32
    %c0_i32_1 = arith.constant 0 : i32
    return %arg0, %c0_i32, %c0_i32_0 : i32, i32, i32
  }
  func.func @transform_42(%arg0: i32) -> (i32, i32, i32) {
    %c0_i32 = arith.constant 0 : i32
    %c0_i32_0 = arith.constant 0 : i32
    %c0_i32_1 = arith.constant 0 : i32
    return %arg0, %c0_i32, %c0_i32_0 : i32, i32, i32
  }
  func.func @transform_43(%arg0: i32) -> (i32, i32, i32) {
    %c0_i32 = arith.constant 0 : i32
    %c0_i32_0 = arith.constant 0 : i32
    %c0_i32_1 = arith.constant 0 : i32
    return %arg0, %c0_i32, %c0_i32_0 : i32, i32, i32
  }
  func.func @transform_44(%arg0: i32) -> (i32, i32, i32) {
    %c0_i32 = arith.constant 0 : i32
    %c0_i32_0 = arith.constant 0 : i32
    %c0_i32_1 = arith.constant 0 : i32
    return %arg0, %c0_i32, %c0_i32_0 : i32, i32, i32
  }
  func.func @transform_45(%arg0: i32) -> (i32, i32) {
    %c0_i32 = arith.constant 0 : i32
    %c0_i32_0 = arith.constant 0 : i32
    %c0_i32_1 = arith.constant 0 : i32
    return %c0_i32, %c0_i32_0 : i32, i32
  }
}

</mosaic_0001>

<bundles_post_ra>
// kernel: motion_transformer_forward.1
= control target key start
LH: loop header
LB: loop body
LE: loop exit
PB: predicated region body
PF: predicated region fallthrough
CT: control target
= control target key end

     0   :  { %s10006_s6 = smov 1   ;;  %s10007_s10 = smov 2   ;;  %s11846_s0 = inlined_call_operand.smem [shape: u32[46], index: -1, kind: input, shape index: {}] }
   0x1   :  { %s10107_s5 = sld [smem:[%s11846_s0]]   ;;  %s10008_s14 = smov 3  }
   0x2   :  { %s10112_s9 = sld [smem:[%s11846_s0 + %s10006_s6]]   ;;  %s10009_s18 = smov 4  }
   0x3   :  { %s10117_s13 = sld [smem:[%s11846_s0 + %s10007_s10]]   ;;  %s10010_s22 = smov 5  }
   0x4   :  { %s10122_s17 = sld [smem:[%s11846_s0 + %s10008_s14]]   ;;  %s10011_s26 = smov 6  }
   0x5   :  { %s10127_s21 = sld [smem:[%s11846_s0 + %s10009_s18]]   ;;  %s10012_s30 = smov 7  }
   0x6   :  { %s10132_s25 = sld [smem:[%s11846_s0 + %s10010_s22]]   ;;  %s10013_s4 = smov 8  }
   0x7   :  { %11923 = sst [smem:[#allocation69_spill]] %s10107_s5  ;;  %s10014_s10 = smov 9  }
   0x8   :  { %11924 = sst [smem:[#allocation70_spill]] %s10112_s9  ;;  %s10015_s15 = smov 10  }
   0x9   :  { %11925 = sst [smem:[#allocation71_spill]] %s10117_s13  ;;  %s10016_s20 = smov 11  }
   0xa   :  { %11926 = sst [smem:[#allocation72_spill]] %s10122_s17  ;;  %s10018_s1 = smov 13  }
   0xb   :  { %11927 = sst [smem:[#allocation73_spill]] %s10127_s21  ;;  %s10019_s7 = smov 14  }
   0xc   :  { %11928 = sst [smem:[#allocation74_spill]] %s10132_s25  ;;  %s10021_s22 = smov 16  }
   0xd   :  { %s10137_s29 = sld [smem:[%s11846_s0 + %s10011_s26]]   ;;  %s10017_s26 = smov 12  }
   0xe   :  { %s10142_s3 = sld [smem:[%s11846_s0 + %s10012_s30]]   ;;  %s10022_s28 = smov 17  }
   0xf   :  { %s10147_s8 = sld [smem:[%s11846_s0 + %s10013_s4]]  }
  0x10   :  { %s10152_s14 = sld [smem:[%s11846_s0 + %s10014_s10]]  }
  0x11   :  { %s10157_s19 = sld [smem:[%s11846_s0 + %s10015_s15]]   ;;  %s10020_s15 = smov 15  }
  0x12   :  { %s10162_s24 = sld [smem:[%s11846_s0 + %s10016_s20]]  }
  0x13   :  { %11929 = sst [smem:[#allocation75_spill]] %s10137_s29 }
  0x14   :  { %11930 = sst [smem:[#allocation76_spill]] %s10142_s3 }
  0x15   :  { %11931 = sst [smem:[#allocation77_spill]] %s10147_s8 }
  0x16   :  { %11932 = sst [smem:[#allocation78_spill]] %s10152_s14 }
  0x17   :  { %11933 = sst [smem:[#allocation79_spill]] %s10157_s19 }
  0x18   :  { %11934 = sst [smem:[#allocation80_spill]] %s10162_s24 }
  0x19   :  { %s10167_s30 = sld [smem:[%s11846_s0 + %s10017_s26]]  }
  0x1a   :  { %s10172_s6 = sld [smem:[%s11846_s0 + %s10018_s1]]  }
  0x1b   :  { %s10177_s12 = sld [smem:[%s11846_s0 + %s10019_s7]]   ;;  %s10023_s7 = smov 18  }
  0x1c   :  { %s10182_s20 = sld [smem:[%s11846_s0 + %s10020_s15]]   ;;  %s10024_s15 = smov 19  }
  0x1d   :  { %s10187_s27 = sld [smem:[%s11846_s0 + %s10021_s22]]   ;;  %s10025_s22 = smov 20  }
  0x1e   :  { %s10192_s4 = sld [smem:[%s11846_s0 + %s10022_s28]]   ;;  %s10026_s28 = smov 21  }
  0x1f   :  { %11935 = sst [smem:[#allocation81_spill]] %s10167_s30 }
  0x20   :  { %11936 = sst [smem:[#allocation82_spill]] %s10172_s6 }
  0x21   :  { %11937 = sst [smem:[#allocation83_spill]] %s10177_s12 }
  0x22   :  { %11938 = sst [smem:[#allocation84_spill]] %s10182_s20 }
  0x23   :  { %11939 = sst [smem:[#allocation85_spill]] %s10187_s27 }
  0x24   :  { %11940 = sst [smem:[#allocation86_spill]] %s10192_s4 }
  0x25   :  { %s10197_s21 = sld [smem:[%s11846_s0 + %s10023_s7]]   ;;  %s10027_s7 = smov 22  }
  0x26   :  { %s10202_s9 = sld [smem:[%s11846_s0 + %s10024_s15]]   ;;  %s10028_s15 = smov 23  }
  0x27   :  { %s10207_s13 = sld [smem:[%s11846_s0 + %s10025_s22]]   ;;  %s10029_s22 = smov 24  }
  0x28   :  { %s10212_s17 = sld [smem:[%s11846_s0 + %s10026_s28]]   ;;  %s10030_s28 = smov 25  }
  0x29   :  { %s10217_s5 = sld [smem:[%s11846_s0 + %s10027_s7]]   ;;  %s10031_s7 = smov 26  }
  0x2a   :  { %s10227_s4 = sld [smem:[%s11846_s0 + %s10029_s22]]   ;;  %s10033_s22 = smov 28  }
  0x2b   :  { %11941 = sst [smem:[#allocation87_spill]] %s10197_s21 }
  0x2c   :  { %11942 = sst [smem:[#allocation88_spill]] %s10202_s9 }
  0x2d   :  { %11943 = sst [smem:[#allocation89_spill]] %s10207_s13 }
  0x2e   :  { %11944 = sst [smem:[#allocation90_spill]] %s10212_s17 }
  0x2f   :  { %11945 = sst [smem:[#allocation91_spill]] %s10217_s5 }
  0x30   :  { %s10222_s9 = sld [smem:[%s11846_s0 + %s10028_s15]]   ;;  %s10032_s15 = smov 27  }
  0x31   :  { %11947 = sst [smem:[#allocation93_spill]] %s10227_s4 }
  0x32   :  { %s10232_s17 = sld [smem:[%s11846_s0 + %s10030_s28]]   ;;  %s10034_s28 = smov 29  }
  0x33   :  { %s10237_s6 = sld [smem:[%s11846_s0 + %s10031_s7]]   ;;  %s10035_s7 = smov 30  }
  0x34   :  { %s10247_s14 = sld [smem:[%s11846_s0 + %s10033_s22]]   ;;  %s10037_s22 = smov 32  }
  0x35   :  { %s10252_s3 = sld [smem:[%s11846_s0 + %s10034_s28]]   ;;  %s10038_s28 = smov 33  }
  0x36   :  { %11946 = sst [smem:[#allocation92_spill]] %s10222_s9 }
  0x37   :  { %s10242_s9 = sld [smem:[%s11846_s0 + %s10032_s15]]   ;;  %s10036_s15 = smov 31  }
  0x38   :  { %11948 = sst [smem:[#allocation94_spill]] %s10232_s17 }
  0x39   :  { %11949 = sst [smem:[#allocation95_spill]] %s10237_s6 }
  0x3a   :  { %11951 = sst [smem:[#allocation97_spill]] %s10247_s14 }
  0x3b   :  { %11952 = sst [smem:[#allocation98_spill]] %s10252_s3 }
  0x3c   :  { %s10257_s25 = sld [smem:[%s11846_s0 + %s10035_s7]]   ;;  %s10039_s7 = smov 34  }
  0x3d   :  { %11950 = sst [smem:[#allocation96_spill]] %s10242_s9 }
  0x3e   :  { %s10262_s9 = sld [smem:[%s11846_s0 + %s10036_s15]]   ;;  %s10040_s15 = smov 35  }
  0x3f   :  { %s10267_s17 = sld [smem:[%s11846_s0 + %s10037_s22]]   ;;  %s10041_s22 = smov 36  }
  0x40   :  { %s10272_s3 = sld [smem:[%s11846_s0 + %s10038_s28]]   ;;  %s10042_s28 = smov 37  }
  0x41   :  { %s10277_s5 = sld [smem:[%s11846_s0 + %s10039_s7]]   ;;  %s10043_s7 = smov 38  }
  0x42   :  { %11953 = sst [smem:[#allocation99_spill]] %s10257_s25 }
  0x43   :  { %s10292_s21 = sld [smem:[%s11846_s0 + %s10042_s28]]   ;;  %s10046_s28 = smov 41  }
  0x44   :  { %11954 = sst [smem:[#allocation100_spill]] %s10262_s9 }
  0x45   :  { %11955 = sst [smem:[#allocation101_spill]] %s10267_s17 }
  0x46   :  { %11956 = sst [smem:[#allocation102_spill]] %s10272_s3 }
  0x47   :  { %11957 = sst [smem:[#allocation103_spill]] %s10277_s5 }
  0x48   :  { %s10282_s9 = sld [smem:[%s11846_s0 + %s10040_s15]]   ;;  %s10044_s15 = smov 39  }
  0x49   :  { %s10287_s17 = sld [smem:[%s11846_s0 + %s10041_s22]]   ;;  %s10045_s22 = smov 40  }
  0x4a   :  { %11960 = sst [smem:[#allocation106_spill]] %s10292_s21 }
  0x4b   :  { %s10297_s5 = sld [smem:[%s11846_s0 + %s10043_s7]]   ;;  %s10047_s7 = smov 42  }
  0x4c   :  { %s10307_s20 = sld [smem:[%s11846_s0 + %s10045_s22]]   ;;  %s10049_s22 = smov 44  }
  0x4d   :  { %s10312_s21 = sld [smem:[%s11846_s0 + %s10046_s28]]   ;;  %s10050_s28 = smov 45  }
  0x4e   :  { %11958 = sst [smem:[#allocation104_spill]] %s10282_s9 }
  0x4f   :  { %11959 = sst [smem:[#allocation105_spill]] %s10287_s17 }
  0x50   :  { %s10302_s9 = sld [smem:[%s11846_s0 + %s10044_s15]]   ;;  %s10048_s15 = smov 43  }
  0x51   :  { %11961 = sst [smem:[#allocation107_spill]] %s10297_s5 }
  0x52   :  { %11963 = sst [smem:[#allocation109_spill]] %s10307_s20 }
  0x53   :  { %11964 = sst [smem:[#allocation110_spill]] %s10312_s21 }
  0x54   :  { %s10317_s30 = sld [smem:[%s11846_s0 + %s10047_s7]]  }
  0x55   :  { %s10327_s19 = sld [smem:[%s11846_s0 + %s10049_s22]]  }
  0x56   :  { %11962 = sst [smem:[#allocation108_spill]] %s10302_s9 }
  0x57   :  { %s10322_s9 = sld [smem:[%s11846_s0 + %s10048_s15]]  }
  0x58   :  { %s10332_s21 = sld [smem:[%s11846_s0 + %s10050_s28]]  }
  0x5a   :  { %11965 = sst [smem:[#allocation111_spill]] %s10317_s30 }
  0x5b   :  { %11967 = sst [smem:[#allocation113_spill]] %s10327_s19 }
  0x5d   :  { %11966 = sst [smem:[#allocation112_spill]] %s10322_s9 }
  0x5e   :  { %11968 = sst [smem:[#allocation114_spill]] %s10332_s21 }
  0x5f   :  { %96 = vsyncpa [#allocation5], 0 }
  0x60   :  { %98 = vsyncpa [#allocation5 + $0x1], 0 }
  0x61   :  { %99 = vsyncpa [#allocation8], 0 }
  0x62   :  { %101 = vsyncpa [#allocation8 + $0x1], 0 }
  0x63   :  { %102 = vsyncpa [#allocation11], 0 }
  0x64   :  { %104 = vsyncpa [#allocation11 + $0x1], 0 }
  0x65   :  { %105 = vsyncpa [#allocation14], 0 }
  0x66   :  { %107 = vsyncpa [#allocation14 + $0x1], 0 }
  0x67   :  { %108 = vsyncpa [#allocation17], 0 }
  0x68   :  { %110 = vsyncpa [#allocation17 + $0x1], 0 }
  0x69   :  { %111 = vsyncpa [#allocation20], 0 }
  0x6a   :  { %113 = vsyncpa [#allocation20 + $0x1], 0 }
  0x6b   :  { %114 = vsyncpa [#allocation23], 0 }
  0x6c   :  { %116 = vsyncpa [#allocation23 + $0x1], 0 }
  0x6d   :  { %117 = vsyncpa [#allocation26], 0 }
  0x6e   :  { %119 = vsyncpa [#allocation26 + $0x1], 0 }
  0x6f   :  { %120 = vsyncpa [#allocation29], 0 }
  0x70   :  { %122 = vsyncpa [#allocation29 + $0x1], 0 }
  0x71   :  { %123 = vsyncpa [#allocation32], 0 }
  0x72   :  { %125 = vsyncpa [#allocation32 + $0x1], 0 }
  0x73   :  { %126 = vsyncpa [#allocation35], 0 }
  0x74   :  { %128 = vsyncpa [#allocation35 + $0x1], 0 }
  0x75   :  { %129 = vsyncpa [#allocation38], 0 }
  0x76   :  { %131 = vsyncpa [#allocation38 + $0x1], 0 }
  0x77   :  { %132 = vsyncpa [#allocation41], 0 }
  0x78   :  { %134 = vsyncpa [#allocation41 + $0x1], 0 }
  0x79   :  { %135 = vsyncpa [#allocation44], 0 }
  0x7a   :  { %137 = vsyncpa [#allocation44 + $0x1], 0 }
  0x7b   :  { %138 = vsyncpa [#allocation47], 0 }
  0x7c   :  { %140 = vsyncpa [#allocation47 + $0x1], 0 }
  0x7d   :  { %141 = vsyncpa [#allocation50], 0 }
  0x7e   :  { %143 = vsyncpa [#allocation50 + $0x1], 0 }
  0x7f   :  { %144 = vsyncpa [#allocation6], 0  ;;  %s10334_s0 = smov 0   ;;  %s10336_s7 = smov 0  }
  0x80   :  { %s10338_s10 = smov 0   ;;  %s10340_s11 = smov 0  }
  0x81 LB: > { %s11969_s30 = sld [smem:[#allocation111_spill]]  ;;  %s11970_s29 = sld [smem:[#allocation75_spill]]  ;;  %s9992_s0 = sphi %s10334_s0, %s12082_s0   ;;  %s10004_s11 = sphi %s10340_s11, %s12079_s11   ;;  %s10000_s10 = sphi %s10338_s10, %s12081_s10   ;;  %s9996_s7 = sphi %s10336_s7, %s12083_s7  }
  0x82   : > { %s11971_s27 = sld [smem:[#allocation85_spill]]  ;;  %s11972_s25 = sld [smem:[#allocation99_spill]] }
  0x83   : > { %s11973_s24 = sld [smem:[#allocation80_spill]]  ;;  %s11974_s19 = sld [smem:[#allocation113_spill]] }
  0x84   : > { %s11975_s9 = sld [smem:[#allocation112_spill]]  ;;  %s11976_s20 = sld [smem:[#allocation109_spill]] }
  0x85   : > { %s11977_s17 = sld [smem:[#allocation105_spill]]  ;;  %s11978_s5 = sld [smem:[#allocation107_spill]] }
  0x86   : > { %s11979_s14 = sld [smem:[#allocation97_spill]]  ;;  %s11981_s12 = sld [smem:[#allocation83_spill]] }
  0x87   : > { %s11980_s13 = sld [smem:[#allocation89_spill]]  ;;  %s11982_s6 = sld [smem:[#allocation95_spill]] }
  0x88   : > { %s11983_s3 = sld [smem:[#allocation102_spill]]  ;;  %s11984_s4 = sld [smem:[#allocation93_spill]] }
  0x89   : > { %s11985_s8 = sld [smem:[#allocation77_spill]]  ;;  %11986 = sst [smem:[#allocation115_spill]] %s10000_s10 }
  0x8a   : > { %s10353_s15 = sadd.s32 4294967295, %s10004_s11   ;;  %s10356_s16 = sadd.s32 1, %s10004_s11  }
  0x8b   : > { %11987 = sst [smem:[#allocation116_spill]] %s10353_s15  ;;  %s285_s18 = ssub.s32 %s10004_s11, %s10356_s16 }
  0x8c   : > { %11988 = sst [smem:[#allocation117_spill]] %s10356_s16  ;;  %s288_s22 = sadd.s32 1, %s10000_s10 }
  0x8d   : > { %p286_p0 = scmp.eq.s32.totalorder %s285_s18, 0  ;;  %p295_p1 = scmp.ne.s32.totalorder %s10000_s10, %s9996_s7 }
  0x8e   : > { %p296_p2 = scmp.eq.s32.totalorder %s10004_s11, 0  ;;  %p301_p3 = scmp.ne.s32.totalorder %s9996_s7, %s9992_s0 }
  0x8f   : > { %s10366_s23 = scalar_select %p286_p0, %s10000_s10, %s288_s22  }
  0x90   : > { %p10368_p4 = por %p296_p2, %p295_p1  ;;  %p302_p5 = scmp.eq.s32.totalorder %s10353_s15, 0 }
  0x91   : > { %11989 = sst [smem:[#allocation118_spill]] %s10366_s23  ;;  %p7823_p7 = scmp.ge.s32.totalorder %s10004_s11, 2 }
  0x92   : > { %p10373_p6 = por %p302_p5, %p301_p3  ;;  %s10379_s1 = sand.u32 (!%p7823_p7), 1, %s10000_s10  }
  0x93   : > { %1345 = sbr.rel (%p7823_p7) target bundleno = 910 (0x38e), region = 36  ;;  %s10382_s2 = sshll.u32 (!%p7823_p7), %s10004_s11, 4 }
  0x94   : > { %s11991_s28 = scalar_select %p10373_p6, 1, 0 }
  0x95   : > { %s10385_s0 = sand.u32 (!%p7823_p7), 1, %s10004_s11   ;;  %s10389_s18 = scalar_lea.hbm (!%p7823_p7), %s11985_s8, %s10382_s2 }
  0x96   : > { %11992 = sst [smem:[#allocation119_spill]] %s11991_s28  ;;  %s1385_s22 = scalar_lea.vmem (!%p7823_p7), [#allocation7], %s10379_s1 }
  0x97   : > { %s1392_s23 = sshll.u32 (!%p7823_p7), %s1385_s22, 4  ;;  %s9040_s21 = scalar_lea.hbm (!%p7823_p7), %s10389_s18, 16  ;;  %s1393_s23 = int_to_ptr.vmem [resolvable:$true] %s1392_s23 }
  0x98   : > { %p9041_p8 = scmp.ne.s32.totalorder (!%p7823_p7), %s10389_s18, %s9040_s21  ;;  %s9044_s10 = scalar_lea.hbm (!%p7823_p7), %s11985_s8, 32 }
  0x99   : > { %p9045_p11 = scmp.lt.u32.totalorder (!%p7823_p7), %s10389_s18, %s11985_s8  ;;  %p9046_p12 = scmp.lt.u32.totalorder (!%p7823_p7), %s9044_s10, %s9040_s21 }
  0x9a   : > { %p9042_p9 = pnand %p9041_p8, %p10368_p4  ;;  %p9048_p0 = scmp.lt.u32.totalorder %s9040_s21, %s10389_s18 }
  0x9b   : > { %p9047_p13 = por %p9046_p12, %p9045_p11 }
  0x9c   : > { %p9043_p10 = pneg %p9042_p9 }
  0x9d   : > { %p9049_p1 = por %p9048_p0, %p9047_p13 }
  0x9f   : > { %p9050_p2 = pnand %p9049_p1, %p9043_p10 }
  0xa1   : > { %9053 = shalt.err (!%p9050_p2)
}
  0xa2   : > { %s9054_s15 = scalar_lea.vmem %s1393_s23, 16  ;;  %s10051_s22 = smov [#allocation7]  }
  0xa3   : > { %p9055_p3 = scmp.ne.s32.totalorder %s1393_s23, %s9054_s15  ;;  %s9058_s16 = sshll.u32 %s10051_s22, 4  ;;  %s9059_s16 = int_to_ptr.vmem [resolvable:$false] %s9058_s16 }
  0xa4   : > { %s9060_s28 = scalar_lea.vmem %s9059_s16, 32  ;;  %p9061_p8 = scmp.lt.s32.totalorder %s1393_s23, %s9059_s16 }
  0xa5   : > { %p9056_p5 = pnand %p9055_p3, %p10368_p4  ;;  %p9062_p9 = scmp.lt.s32.totalorder %s9060_s28, %s9054_s15 }
  0xa7   : > { %p9057_p7 = pneg %p9056_p5  ;;  %p9063_p6 = por %p9062_p9, %p9061_p8 }
  0xa9   : > { %p9064_p11 = pnand %p9063_p6, %p9057_p7 }
  0xab   : > { %9067 = shalt.err (!%p9064_p11)
}
  0xac   : > { %s11993_s21 = scalar_lea.sflag [#allocation8], %s10385_s0  ;;  %s10410_s10 = scalar_lea.hbm %s11973_s24, %s10382_s2 }
  0xad   : > { %8690 = dma.hbm_to_vmem [thread:$0]  (%p10368_p4), %s10389_s18, 16, %s1393_s23, %s11993_s21  }
  0xae   : > { %s1427_s15 = scalar_lea.vmem [#allocation10], %s10379_s1  ;;  %s11874_s28 = scalar_lea.sflag [#allocation11], %s10385_s0 }
  0xaf   : > { %s1434_s16 = sshll.u32 %s1427_s15, 4  ;;  %s9068_s22 = scalar_lea.hbm %s10410_s10, 16  ;;  %s1435_s16 = int_to_ptr.vmem [resolvable:$true] %s1434_s16 }
  0xb0   : > { %p9069_p6 = scmp.ne.s32.totalorder %s10410_s10, %s9068_s22  ;;  %s9072_s8 = scalar_lea.hbm %s11973_s24, 32 }
  0xb1   : > { %p9073_p13 = scmp.lt.u32.totalorder %s10410_s10, %s11973_s24  ;;  %p9074_p0 = scmp.lt.u32.totalorder %s9072_s8, %s9068_s22 }
  0xb2   : > { %p9070_p10 = pnand %p9069_p6, %p10368_p4  ;;  %p9076_p2 = scmp.lt.u32.totalorder %s9068_s22, %s10410_s10 }
  0xb3   : > { %p9075_p1 = por %p9074_p0, %p9073_p13 }
  0xb4   : > { %p9071_p12 = pneg %p9070_p10 }
  0xb5   : > { %p9077_p3 = por %p9076_p2, %p9075_p1 }
  0xb7   : > { %p9078_p5 = pnand %p9077_p3, %p9071_p12 }
  0xb9   : > { %9081 = shalt.err (!%p9078_p5)
}
  0xba   : > { %s9082_s23 = scalar_lea.vmem %s1435_s16, 16  ;;  %s10052_s18 = smov [#allocation10]  }
  0xbb   : > { %p9083_p7 = scmp.ne.s32.totalorder %s1435_s16, %s9082_s23  ;;  %s9086_s21 = sshll.u32 %s10052_s18, 4  ;;  %s9087_s21 = int_to_ptr.vmem [resolvable:$false] %s9086_s21 }
  0xbc   : > { %s9088_s15 = scalar_lea.vmem %s9087_s21, 32  ;;  %p9089_p11 = scmp.lt.s32.totalorder %s1435_s16, %s9087_s21 }
  0xbd   : > { %p9084_p8 = pnand %p9083_p7, %p10368_p4  ;;  %p9090_p6 = scmp.lt.s32.totalorder %s9088_s15, %s9082_s23 }
  0xbf   : > { %p9085_p9 = pneg %p9084_p8  ;;  %p9091_p10 = por %p9090_p6, %p9089_p11 }
  0xc1   : > { %p9092_p0 = pnand %p9091_p10, %p9085_p9 }
  0xc3   : > { %9095 = shalt.err (!%p9092_p0)
}
  0xc4   : > { %8692 = dma.hbm_to_vmem [thread:$0]  (%p10368_p4), %s10410_s10, 16, %s1435_s16, %s11874_s28  }
  0xc5   : > { %s10431_s8 = scalar_lea.hbm %s11981_s12, %s10382_s2  ;;  %s1469_s22 = scalar_lea.vmem [#allocation13], %s10379_s1 }
  0xc6   : > { %s1476_s23 = sshll.u32 %s1469_s22, 4  ;;  %s11875_s18 = scalar_lea.sflag [#allocation14], %s10385_s0  ;;  %s1477_s23 = int_to_ptr.vmem [resolvable:$true] %s1476_s23 }
  0xc7   : > { %s9096_s21 = scalar_lea.hbm %s10431_s8, 16  ;;  %s9100_s15 = scalar_lea.hbm %s11981_s12, 32 }
  0xc8   : > { %p9097_p12 = scmp.ne.s32.totalorder %s10431_s8, %s9096_s21  ;;  %p9101_p2 = scmp.lt.u32.totalorder %s10431_s8, %s11981_s12 }
  0xc9   : > { %p9102_p3 = scmp.lt.u32.totalorder %s9100_s15, %s9096_s21  ;;  %p9104_p7 = scmp.lt.u32.totalorder %s9096_s21, %s10431_s8 }
  0xca   : > { %p9098_p13 = pnand %p9097_p12, %p10368_p4 }
  0xcb   : > { %p9103_p5 = por %p9102_p3, %p9101_p2 }
  0xcc   : > { %p9099_p1 = pneg %p9098_p13 }
  0xcd   : > { %p9105_p8 = por %p9104_p7, %p9103_p5 }
  0xcf   : > { %p9106_p9 = pnand %p9105_p8, %p9099_p1 }
  0xd1   : > { %9109 = shalt.err (!%p9106_p9)
}
  0xd2   : > { %s9110_s10 = scalar_lea.vmem %s1477_s23, 16  ;;  %s10053_s16 = smov [#allocation13]  }
  0xd3   : > { %p9111_p11 = scmp.ne.s32.totalorder %s1477_s23, %s9110_s10  ;;  %s9114_s22 = sshll.u32 %s10053_s16, 4  ;;  %s9115_s22 = int_to_ptr.vmem [resolvable:$false] %s9114_s22 }
  0xd4   : > { %s9116_s28 = scalar_lea.vmem %s9115_s22, 32  ;;  %p9117_p0 = scmp.lt.s32.totalorder %s1477_s23, %s9115_s22 }
  0xd5   : > { %p9112_p6 = pnand %p9111_p11, %p10368_p4  ;;  %p9118_p12 = scmp.lt.s32.totalorder %s9116_s28, %s9110_s10 }
  0xd7   : > { %p9113_p10 = pneg %p9112_p6  ;;  %p9119_p13 = por %p9118_p12, %p9117_p0 }
  0xd9   : > { %p9120_p2 = pnand %p9119_p13, %p9113_p10 }
  0xdb   : > { %9123 = shalt.err (!%p9120_p2)
}
  0xdc   : > { %8694 = dma.hbm_to_vmem [thread:$0]  (%p10368_p4), %s10431_s8, 16, %s1477_s23, %s11875_s18  }
  0xdd   : > { %s10452_s21 = scalar_lea.hbm %s11971_s27, %s10382_s2  ;;  %s1503_s28 = scalar_lea.vmem [#allocation16], %s10379_s1 }
  0xde   : > { %s1510_s15 = sshll.u32 %s1503_s28, 4  ;;  %s11876_s10 = scalar_lea.sflag [#allocation17], %s10385_s0  ;;  %s1511_s15 = int_to_ptr.vmem [resolvable:$true] %s1510_s15 }
  0xdf   : > { %s9124_s16 = scalar_lea.hbm %s10452_s21, 16  ;;  %s9128_s22 = scalar_lea.hbm %s11971_s27, 32 }
  0xe0   : > { %p9125_p1 = scmp.ne.s32.totalorder %s10452_s21, %s9124_s16  ;;  %p9129_p7 = scmp.lt.u32.totalorder %s10452_s21, %s11971_s27 }
  0xe1   : > { %p9130_p8 = scmp.lt.u32.totalorder %s9128_s22, %s9124_s16  ;;  %p9132_p11 = scmp.lt.u32.totalorder %s9124_s16, %s10452_s21 }
  0xe2   : > { %p9126_p3 = pnand %p9125_p1, %p10368_p4 }
  0xe3   : > { %p9131_p9 = por %p9130_p8, %p9129_p7 }
  0xe4   : > { %p9127_p5 = pneg %p9126_p3 }
  0xe5   : > { %p9133_p6 = por %p9132_p11, %p9131_p9 }
  0xe7   : > { %p9134_p10 = pnand %p9133_p6, %p9127_p5 }
  0xe9   : > { %9137 = shalt.err (!%p9134_p10)
}
  0xea   : > { %s9138_s8 = scalar_lea.vmem %s1511_s15, 16  ;;  %s10054_s23 = smov [#allocation16]  }
  0xeb   : > { %p9139_p0 = scmp.ne.s32.totalorder %s1511_s15, %s9138_s8  ;;  %s9142_s28 = sshll.u32 %s10054_s23, 4  ;;  %s9143_s28 = int_to_ptr.vmem [resolvable:$false] %s9142_s28 }
  0xec   : > { %s9144_s18 = scalar_lea.vmem %s9143_s28, 32  ;;  %p9145_p2 = scmp.lt.s32.totalorder %s1511_s15, %s9143_s28 }
  0xed   : > { %p9140_p12 = pnand %p9139_p0, %p10368_p4  ;;  %p9146_p1 = scmp.lt.s32.totalorder %s9144_s18, %s9138_s8 }
  0xef   : > { %p9141_p13 = pneg %p9140_p12  ;;  %p9147_p3 = por %p9146_p1, %p9145_p2 }
  0xf1   : > { %p9148_p7 = pnand %p9147_p3, %p9141_p13 }
  0xf3   : > { %9151 = shalt.err (!%p9148_p7)
}
  0xf4   : > { %8696 = dma.hbm_to_vmem [thread:$0]  (%p10368_p4), %s10452_s21, 16, %s1511_s15, %s11876_s10  }
  0xf5   : > { %s10473_s16 = scalar_lea.hbm %s11980_s13, %s10382_s2  ;;  %s1553_s18 = scalar_lea.vmem [#allocation19], %s10379_s1 }
  0xf6   : > { %s1560_s22 = sshll.u32 %s1553_s18, 4  ;;  %s11877_s8 = scalar_lea.sflag [#allocation20], %s10385_s0  ;;  %s1561_s22 = int_to_ptr.vmem [resolvable:$true] %s1560_s22 }
  0xf7   : > { %s9152_s23 = scalar_lea.hbm %s10473_s16, 16  ;;  %s9156_s28 = scalar_lea.hbm %s11980_s13, 32 }
  0xf8   : > { %p9153_p5 = scmp.ne.s32.totalorder %s10473_s16, %s9152_s23  ;;  %p9157_p11 = scmp.lt.u32.totalorder %s10473_s16, %s11980_s13 }
  0xf9   : > { %p9158_p6 = scmp.lt.u32.totalorder %s9156_s28, %s9152_s23  ;;  %p9160_p0 = scmp.lt.u32.totalorder %s9152_s23, %s10473_s16 }
  0xfa   : > { %p9154_p8 = pnand %p9153_p5, %p10368_p4 }
  0xfb   : > { %p9159_p10 = por %p9158_p6, %p9157_p11 }
  0xfc   : > { %p9155_p9 = pneg %p9154_p8 }
  0xfd   : > { %p9161_p12 = por %p9160_p0, %p9159_p10 }
  0xff   : > { %p9162_p13 = pnand %p9161_p12, %p9155_p9 }
 0x101   : > { %9165 = shalt.err (!%p9162_p13)
}
 0x102   : > { %s9166_s21 = scalar_lea.vmem %s1561_s22, 16  ;;  %s10055_s15 = smov [#allocation19]  }
 0x103   : > { %p9167_p2 = scmp.ne.s32.totalorder %s1561_s22, %s9166_s21  ;;  %s9170_s18 = sshll.u32 %s10055_s15, 4  ;;  %s9171_s18 = int_to_ptr.vmem [resolvable:$false] %s9170_s18 }
 0x104   : > { %s9172_s10 = scalar_lea.vmem %s9171_s18, 32  ;;  %p9173_p7 = scmp.lt.s32.totalorder %s1561_s22, %s9171_s18 }
 0x105   : > { %p9168_p1 = pnand %p9167_p2, %p10368_p4  ;;  %p9174_p5 = scmp.lt.s32.totalorder %s9172_s10, %s9166_s21 }
 0x107   : > { %p9169_p3 = pneg %p9168_p1  ;;  %p9175_p8 = por %p9174_p5, %p9173_p7 }
 0x109   : > { %p9176_p6 = pnand %p9175_p8, %p9169_p3 }
 0x10b   : > { %9179 = shalt.err (!%p9176_p6)
}
 0x10c   : > { %8698 = dma.hbm_to_vmem [thread:$0]  (%p10368_p4), %s10473_s16, 16, %s1561_s22, %s11877_s8  }
 0x10d   : > { %s10494_s23 = scalar_lea.hbm %s11984_s4, %s10382_s2  ;;  %s1603_s10 = scalar_lea.vmem [#allocation22], %s10379_s1 }
 0x10e   : > { %s1610_s28 = sshll.u32 %s1603_s10, 4  ;;  %s11878_s21 = scalar_lea.sflag [#allocation23], %s10385_s0  ;;  %s1611_s28 = int_to_ptr.vmem [resolvable:$true] %s1610_s28 }
 0x10f   : > { %s9180_s15 = scalar_lea.hbm %s10494_s23, 16  ;;  %s9184_s18 = scalar_lea.hbm %s11984_s4, 32 }
 0x110   : > { %p9181_p9 = scmp.ne.s32.totalorder %s10494_s23, %s9180_s15  ;;  %p9185_p0 = scmp.lt.u32.totalorder %s10494_s23, %s11984_s4 }
 0x111   : > { %p9186_p12 = scmp.lt.u32.totalorder %s9184_s18, %s9180_s15  ;;  %p9188_p2 = scmp.lt.u32.totalorder %s9180_s15, %s10494_s23 }
 0x112   : > { %p9182_p11 = pnand %p9181_p9, %p10368_p4 }
 0x113   : > { %p9187_p13 = por %p9186_p12, %p9185_p0 }
 0x114   : > { %p9183_p10 = pneg %p9182_p11 }
 0x115   : > { %p9189_p1 = por %p9188_p2, %p9187_p13 }
 0x117   : > { %p9190_p3 = pnand %p9189_p1, %p9183_p10 }
 0x119   : > { %9193 = shalt.err (!%p9190_p3)
}
 0x11a   : > { %s9194_s16 = scalar_lea.vmem %s1611_s28, 16  ;;  %s10056_s22 = smov [#allocation22]  }
 0x11b   : > { %p9195_p7 = scmp.ne.s32.totalorder %s1611_s28, %s9194_s16  ;;  %s9198_s10 = sshll.u32 %s10056_s22, 4  ;;  %s9199_s10 = int_to_ptr.vmem [resolvable:$false] %s9198_s10 }
 0x11c   : > { %s9200_s8 = scalar_lea.vmem %s9199_s10, 32  ;;  %p9201_p6 = scmp.lt.s32.totalorder %s1611_s28, %s9199_s10 }
 0x11d   : > { %p9196_p5 = pnand %p9195_p7, %p10368_p4  ;;  %p9202_p9 = scmp.lt.s32.totalorder %s9200_s8, %s9194_s16 }
 0x11f   : > { %p9197_p8 = pneg %p9196_p5  ;;  %p9203_p11 = por %p9202_p9, %p9201_p6 }
 0x121   : > { %p9204_p0 = pnand %p9203_p11, %p9197_p8 }
 0x123   : > { %9207 = shalt.err (!%p9204_p0)
}
 0x124   : > { %8700 = dma.hbm_to_vmem [thread:$0]  (%p10368_p4), %s10494_s23, 16, %s1611_s28, %s11878_s21  }
 0x125   : > { %s10515_s15 = scalar_lea.hbm %s11982_s6, %s10382_s2  ;;  %s1637_s8 = scalar_lea.vmem [#allocation25], %s10379_s1 }
 0x126   : > { %s1644_s18 = sshll.u32 %s1637_s8, 4  ;;  %s11879_s16 = scalar_lea.sflag [#allocation26], %s10385_s0  ;;  %s1645_s18 = int_to_ptr.vmem [resolvable:$true] %s1644_s18 }
 0x127   : > { %s9208_s22 = scalar_lea.hbm %s10515_s15, 16  ;;  %s9212_s10 = scalar_lea.hbm %s11982_s6, 32 }
 0x128   : > { %p9209_p10 = scmp.ne.s32.totalorder %s10515_s15, %s9208_s22  ;;  %p9213_p2 = scmp.lt.u32.totalorder %s10515_s15, %s11982_s6 }
 0x129   : > { %p9214_p1 = scmp.lt.u32.totalorder %s9212_s10, %s9208_s22  ;;  %p9216_p7 = scmp.lt.u32.totalorder %s9208_s22, %s10515_s15 }
 0x12a   : > { %p9210_p12 = pnand %p9209_p10, %p10368_p4 }
 0x12b   : > { %p9215_p3 = por %p9214_p1, %p9213_p2 }
 0x12c   : > { %p9211_p13 = pneg %p9210_p12 }
 0x12d   : > { %p9217_p5 = por %p9216_p7, %p9215_p3 }
 0x12f   : > { %p9218_p8 = pnand %p9217_p5, %p9211_p13 }
 0x131   : > { %9221 = shalt.err (!%p9218_p8)
}
 0x132   : > { %s9222_s23 = scalar_lea.vmem %s1645_s18, 16  ;;  %s10057_s28 = smov [#allocation25]  }
 0x133   : > { %p9223_p6 = scmp.ne.s32.totalorder %s1645_s18, %s9222_s23  ;;  %s9226_s8 = sshll.u32 %s10057_s28, 4  ;;  %s9227_s8 = int_to_ptr.vmem [resolvable:$false] %s9226_s8 }
 0x134   : > { %s9228_s21 = scalar_lea.vmem %s9227_s8, 32  ;;  %p9229_p0 = scmp.lt.s32.totalorder %s1645_s18, %s9227_s8 }
 0x135   : > { %p9224_p9 = pnand %p9223_p6, %p10368_p4  ;;  %p9230_p10 = scmp.lt.s32.totalorder %s9228_s21, %s9222_s23 }
 0x137   : > { %p9225_p11 = pneg %p9224_p9  ;;  %p9231_p12 = por %p9230_p10, %p9229_p0 }
 0x139   : > { %p9232_p1 = pnand %p9231_p12, %p9225_p11 }
 0x13b   : > { %9235 = shalt.err (!%p9232_p1)
}
 0x13c   : > { %8702 = dma.hbm_to_vmem [thread:$0]  (%p10368_p4), %s10515_s15, 16, %s1645_s18, %s11879_s16  }
 0x13d   : > { %s10536_s22 = scalar_lea.hbm %s11979_s14, %s10382_s2  ;;  %s1675_s21 = scalar_lea.vmem [#allocation28], %s10379_s1 }
 0x13e   : > { %s1682_s10 = sshll.u32 %s1675_s21, 4  ;;  %s11880_s23 = scalar_lea.sflag [#allocation29], %s10385_s0  ;;  %s1683_s10 = int_to_ptr.vmem [resolvable:$true] %s1682_s10 }
 0x13f   : > { %s9236_s28 = scalar_lea.hbm %s10536_s22, 16  ;;  %s9240_s8 = scalar_lea.hbm %s11979_s14, 32 }
 0x140   : > { %p9237_p13 = scmp.ne.s32.totalorder %s10536_s22, %s9236_s28  ;;  %p9241_p7 = scmp.lt.u32.totalorder %s10536_s22, %s11979_s14 }
 0x141   : > { %p9242_p5 = scmp.lt.u32.totalorder %s9240_s8, %s9236_s28  ;;  %p9244_p6 = scmp.lt.u32.totalorder %s9236_s28, %s10536_s22 }
 0x142   : > { %p9238_p2 = pnand %p9237_p13, %p10368_p4 }
 0x143   : > { %p9243_p8 = por %p9242_p5, %p9241_p7 }
 0x144   : > { %p9239_p3 = pneg %p9238_p2 }
 0x145   : > { %p9245_p9 = por %p9244_p6, %p9243_p8 }
 0x147   : > { %p9246_p11 = pnand %p9245_p9, %p9239_p3 }
 0x149   : > { %9249 = shalt.err (!%p9246_p11)
}
 0x14a   : > { %s9250_s15 = scalar_lea.vmem %s1683_s10, 16  ;;  %s10058_s18 = smov [#allocation28]  }
 0x14b   : > { %p9251_p0 = scmp.ne.s32.totalorder %s1683_s10, %s9250_s15  ;;  %s9254_s21 = sshll.u32 %s10058_s18, 4  ;;  %s9255_s21 = int_to_ptr.vmem [resolvable:$false] %s9254_s21 }
 0x14c   : > { %s9256_s16 = scalar_lea.vmem %s9255_s21, 32  ;;  %p9257_p1 = scmp.lt.s32.totalorder %s1683_s10, %s9255_s21 }
 0x14d   : > { %p9252_p10 = pnand %p9251_p0, %p10368_p4  ;;  %p9258_p13 = scmp.lt.s32.totalorder %s9256_s16, %s9250_s15 }
 0x14f   : > { %p9253_p12 = pneg %p9252_p10  ;;  %p9259_p2 = por %p9258_p13, %p9257_p1 }
 0x151   : > { %p9260_p5 = pnand %p9259_p2, %p9253_p12 }
 0x153   : > { %9263 = shalt.err (!%p9260_p5)
}
 0x154   : > { %8704 = dma.hbm_to_vmem [thread:$0]  (%p10368_p4), %s10536_s22, 16, %s1683_s10, %s11880_s23  }
 0x155   : > { %s10557_s28 = scalar_lea.hbm %s11972_s25, %s10382_s2  ;;  %s1709_s16 = scalar_lea.vmem [#allocation31], %s10379_s1 }
 0x156   : > { %s1716_s8 = sshll.u32 %s1709_s16, 4  ;;  %s11882_s15 = scalar_lea.sflag [#allocation32], %s10385_s0  ;;  %s1717_s8 = int_to_ptr.vmem [resolvable:$true] %s1716_s8 }
 0x157   : > { %s9264_s18 = scalar_lea.hbm %s10557_s28, 16  ;;  %s9268_s21 = scalar_lea.hbm %s11972_s25, 32 }
 0x158   : > { %p9265_p3 = scmp.ne.s32.totalorder %s10557_s28, %s9264_s18  ;;  %p9269_p6 = scmp.lt.u32.totalorder %s10557_s28, %s11972_s25 }
 0x159   : > { %p9270_p9 = scmp.lt.u32.totalorder %s9268_s21, %s9264_s18  ;;  %p9272_p0 = scmp.lt.u32.totalorder %s9264_s18, %s10557_s28 }
 0x15a   : > { %p9266_p7 = pnand %p9265_p3, %p10368_p4 }
 0x15b   : > { %p9271_p11 = por %p9270_p9, %p9269_p6 }
 0x15c   : > { %p9267_p8 = pneg %p9266_p7 }
 0x15d   : > { %p9273_p10 = por %p9272_p0, %p9271_p11 }
 0x15f   : > { %p9274_p12 = pnand %p9273_p10, %p9267_p8 }
 0x161   : > { %9277 = shalt.err (!%p9274_p12)
}
 0x162   : > { %s9278_s22 = scalar_lea.vmem %s1717_s8, 16  ;;  %s10059_s10 = smov [#allocation31]  }
 0x163   : > { %p9279_p1 = scmp.ne.s32.totalorder %s1717_s8, %s9278_s22  ;;  %s9282_s16 = sshll.u32 %s10059_s10, 4  ;;  %s9283_s16 = int_to_ptr.vmem [resolvable:$false] %s9282_s16 }
 0x164   : > { %s9284_s23 = scalar_lea.vmem %s9283_s16, 32  ;;  %p9285_p5 = scmp.lt.s32.totalorder %s1717_s8, %s9283_s16 }
 0x165   : > { %p9280_p13 = pnand %p9279_p1, %p10368_p4  ;;  %p9286_p3 = scmp.lt.s32.totalorder %s9284_s23, %s9278_s22 }
 0x167   : > { %p9281_p2 = pneg %p9280_p13  ;;  %p9287_p7 = por %p9286_p3, %p9285_p5 }
 0x169   : > { %p9288_p6 = pnand %p9287_p7, %p9281_p2 }
 0x16b   : > { %9291 = shalt.err (!%p9288_p6)
}
 0x16c   : > { %8706 = dma.hbm_to_vmem [thread:$0]  (%p10368_p4), %s10557_s28, 16, %s1717_s8, %s11882_s15  }
 0x16d   : > { %s11883_s18 = sshll.u32 %s10379_s1, 5  ;;  %s8009_s23 = sshll.u32 %s10004_s11, 9 }
 0x16e   : > { %s10581_s21 = scalar_lea.hbm %s11983_s3, %s8009_s23  ;;  %s1752_s22 = scalar_lea.vmem [#allocation34], %s11883_s18 }
 0x16f   : > { %s1759_s10 = sshll.u32 %s1752_s22, 4  ;;  %s11893_s16 = scalar_lea.sflag [#allocation35], %s10385_s0  ;;  %s10585_s10 = int_to_ptr.vmem [resolvable:$true] %s1759_s10 }
 0x170   : > { %s9292_s4 = scalar_lea.hbm %s10581_s21, 512  ;;  %s9296_s28 = scalar_lea.hbm %s11983_s3, 1024 }
 0x171   : > { %p9293_p8 = scmp.ne.s32.totalorder %s10581_s21, %s9292_s4  ;;  %p9297_p0 = scmp.lt.u32.totalorder %s10581_s21, %s11983_s3 }
 0x172   : > { %p9298_p10 = scmp.lt.u32.totalorder %s9296_s28, %s9292_s4  ;;  %p9300_p1 = scmp.lt.u32.totalorder %s9292_s4, %s10581_s21 }
 0x173   : > { %p9294_p9 = pnand %p9293_p8, %p10368_p4 }
 0x174   : > { %p9299_p12 = por %p9298_p10, %p9297_p0 }
 0x175   : > { %p9295_p11 = pneg %p9294_p9 }
 0x176   : > { %p9301_p13 = por %p9300_p1, %p9299_p12 }
 0x178   : > { %p9302_p2 = pnand %p9301_p13, %p9295_p11 }
 0x17a   : > { %9305 = shalt.err (!%p9302_p2)
}
 0x17b   : > { %s9306_s8 = scalar_lea.vmem %s10585_s10, 512  ;;  %s10060_s22 = smov [#allocation34]  }
 0x17c   : > { %p9307_p5 = scmp.ne.s32.totalorder %s10585_s10, %s9306_s8  ;;  %s9310_s15 = sshll.u32 %s10060_s22, 4  ;;  %s9311_s15 = int_to_ptr.vmem [resolvable:$false] %s9310_s15 }
 0x17d   : > { %s9312_s18 = scalar_lea.vmem %s9311_s15, 1024  ;;  %p9313_p6 = scmp.lt.s32.totalorder %s10585_s10, %s9311_s15 }
 0x17e   : > { %p9308_p3 = pnand %p9307_p5, %p10368_p4  ;;  %p9314_p8 = scmp.lt.s32.totalorder %s9312_s18, %s9306_s8 }
 0x180   : > { %p9309_p7 = pneg %p9308_p3  ;;  %p9315_p9 = por %p9314_p8, %p9313_p6 }
 0x182   : > { %p9316_p0 = pnand %p9315_p9, %p9309_p7 }
 0x184   : > { %9319 = shalt.err (!%p9316_p0)
}
 0x185   : > { %s11894_s4 = smov 128   ;;  %s11896_s15 = smov 8  }
 0x186   : > { %8708 = dma.hbm_to_vmem [thread:$0]  (%p10368_p4), %s10581_s21, 512, %s10585_s10, %s11893_s16, %s11894_s4, %s11894_s4, %s11896_s15  }
 0x187   : > { %s10613_s18 = scalar_lea.hbm %s11975_s9, %s8009_s23  ;;  %s11994_s28 = sshll.u32 %s10379_s1, 5 }
 0x188   : > { %s10617_s8 = scalar_lea.vmem [#allocation48], %s11994_s28  ;;  %s10622_s3 = scalar_lea.hbm %s11977_s17, %s10382_s2 }
 0x189   : > { %s1797_s6 = scalar_lea.vmem [#allocation37], %s10379_s1  ;;  %s11892_s13 = scalar_lea.sflag [#allocation38], %s10385_s0 }
 0x18a   : > { %s1804_s12 = sshll.u32 %s1797_s6, 4  ;;  %s9320_s14 = scalar_lea.hbm %s10622_s3, 16  ;;  %s1805_s12 = int_to_ptr.vmem [resolvable:$true] %s1804_s12 }
 0x18b   : > { %p9321_p11 = scmp.ne.s32.totalorder %s10622_s3, %s9320_s14  ;;  %s9324_s23 = scalar_lea.hbm %s11977_s17, 32 }
 0x18c   : > { %p9325_p1 = scmp.lt.u32.totalorder %s10622_s3, %s11977_s17  ;;  %p9326_p13 = scmp.lt.u32.totalorder %s9324_s23, %s9320_s14 }
 0x18d   : > { %p9322_p10 = pnand %p9321_p11, %p10368_p4  ;;  %p9328_p5 = scmp.lt.u32.totalorder %s9320_s14, %s10622_s3 }
 0x18e   : > { %p9327_p2 = por %p9326_p13, %p9325_p1 }
 0x18f   : > { %p9323_p12 = pneg %p9322_p10 }
 0x190   : > { %p9329_p3 = por %p9328_p5, %p9327_p2 }
 0x192   : > { %p9330_p7 = pnand %p9329_p3, %p9323_p12 }
 0x194   : > { %9333 = shalt.err (!%p9330_p7)
}
 0x195   : > { %s9334_s21 = scalar_lea.vmem %s1805_s12, 16  ;;  %s10063_s6 = smov [#allocation37]  }
 0x196   : > { %p9335_p6 = scmp.ne.s32.totalorder %s1805_s12, %s9334_s21  ;;  %s9338_s10 = sshll.u32 %s10063_s6, 4  ;;  %s9339_s10 = int_to_ptr.vmem [resolvable:$false] %s9338_s10 }
 0x197   : > { %s9340_s28 = scalar_lea.vmem %s9339_s10, 32  ;;  %p9341_p0 = scmp.lt.s32.totalorder %s1805_s12, %s9339_s10 }
 0x198   : > { %p9336_p8 = pnand %p9335_p6, %p10368_p4  ;;  %p9342_p11 = scmp.lt.s32.totalorder %s9340_s28, %s9334_s21 }
 0x19a   : > { %p9337_p9 = pneg %p9336_p8  ;;  %p9343_p10 = por %p9342_p11, %p9341_p0 }
 0x19c   : > { %p9344_p1 = pnand %p9343_p10, %p9337_p9 }
 0x19e   : > { %9347 = shalt.err (!%p9344_p1)
}
 0x19f   : > { %8710 = dma.hbm_to_vmem [thread:$0]  (%p10368_p4), %s10622_s3, 16, %s1805_s12, %s11892_s13  }
 0x1a0   : > { %s10643_s14 = scalar_lea.hbm %s11978_s5, %s10382_s2  ;;  %s1831_s23 = scalar_lea.vmem [#allocation40], %s10379_s1 }
 0x1a1   : > { %s1838_s21 = sshll.u32 %s1831_s23, 4  ;;  %s11889_s6 = scalar_lea.sflag [#allocation41], %s10385_s0  ;;  %s1839_s21 = int_to_ptr.vmem [resolvable:$true] %s1838_s21 }
 0x1a2   : > { %s9348_s10 = scalar_lea.hbm %s10643_s14, 16  ;;  %s9352_s28 = scalar_lea.hbm %s11978_s5, 32 }
 0x1a3   : > { %p9349_p12 = scmp.ne.s32.totalorder %s10643_s14, %s9348_s10  ;;  %p9353_p5 = scmp.lt.u32.totalorder %s10643_s14, %s11978_s5 }
 0x1a4   : > { %p9354_p3 = scmp.lt.u32.totalorder %s9352_s28, %s9348_s10  ;;  %p9356_p6 = scmp.lt.u32.totalorder %s9348_s10, %s10643_s14 }
 0x1a5   : > { %p9350_p13 = pnand %p9349_p12, %p10368_p4 }
 0x1a6   : > { %p9355_p7 = por %p9354_p3, %p9353_p5 }
 0x1a7   : > { %p9351_p2 = pneg %p9350_p13 }
 0x1a8   : > { %p9357_p8 = por %p9356_p6, %p9355_p7 }
 0x1aa   : > { %p9358_p9 = pnand %p9357_p8, %p9351_p2 }
 0x1ac   : > { %9361 = shalt.err (!%p9358_p9)
}
 0x1ad   : > { %s9362_s3 = scalar_lea.vmem %s1839_s21, 16  ;;  %s10064_s12 = smov [#allocation40]  }
 0x1ae   : > { %p9363_p0 = scmp.ne.s32.totalorder %s1839_s21, %s9362_s3  ;;  %s9366_s23 = sshll.u32 %s10064_s12, 4  ;;  %s9367_s23 = int_to_ptr.vmem [resolvable:$false] %s9366_s23 }
 0x1af   : > { %s9368_s22 = scalar_lea.vmem %s9367_s23, 32  ;;  %p9369_p1 = scmp.lt.s32.totalorder %s1839_s21, %s9367_s23 }
 0x1b0   : > { %p9364_p11 = pnand %p9363_p0, %p10368_p4  ;;  %p9370_p12 = scmp.lt.s32.totalorder %s9368_s22, %s9362_s3 }
 0x1b2   : > { %p9365_p10 = pneg %p9364_p11  ;;  %p9371_p13 = por %p9370_p12, %p9369_p1 }
 0x1b4   : > { %p9372_p3 = pnand %p9371_p13, %p9365_p10 }
 0x1b6   : > { %9375 = shalt.err (!%p9372_p3)
}
 0x1b7   : > { %8712 = dma.hbm_to_vmem [thread:$0]  (%p10368_p4), %s10643_s14, 16, %s1839_s21, %s11889_s6  }
 0x1b8   : > { %s10664_s10 = scalar_lea.hbm %s11976_s20, %s10382_s2  ;;  %s1869_s22 = scalar_lea.vmem [#allocation43], %s10379_s1 }
 0x1b9   : > { %s1876_s28 = sshll.u32 %s1869_s22, 4  ;;  %s11890_s3 = scalar_lea.sflag [#allocation44], %s10385_s0  ;;  %s1877_s28 = int_to_ptr.vmem [resolvable:$true] %s1876_s28 }
 0x1ba   : > { %s9376_s12 = scalar_lea.hbm %s10664_s10, 16  ;;  %s9380_s23 = scalar_lea.hbm %s11976_s20, 32 }
 0x1bb   : > { %p9377_p2 = scmp.ne.s32.totalorder %s10664_s10, %s9376_s12  ;;  %p9381_p6 = scmp.lt.u32.totalorder %s10664_s10, %s11976_s20 }
 0x1bc   : > { %p9382_p8 = scmp.lt.u32.totalorder %s9380_s23, %s9376_s12  ;;  %p9384_p0 = scmp.lt.u32.totalorder %s9376_s12, %s10664_s10 }
 0x1bd   : > { %p9378_p5 = pnand %p9377_p2, %p10368_p4 }
 0x1be   : > { %p9383_p9 = por %p9382_p8, %p9381_p6 }
 0x1bf   : > { %p9379_p7 = pneg %p9378_p5 }
 0x1c0   : > { %p9385_p11 = por %p9384_p0, %p9383_p9 }
 0x1c2   : > { %p9386_p10 = pnand %p9385_p11, %p9379_p7 }
 0x1c4   : > { %9389 = shalt.err (!%p9386_p10)
}
 0x1c5   : > { %s9390_s14 = scalar_lea.vmem %s1877_s28, 16  ;;  %s10065_s21 = smov [#allocation43]  }
 0x1c6   : > { %p9391_p1 = scmp.ne.s32.totalorder %s1877_s28, %s9390_s14  ;;  %s9394_s22 = sshll.u32 %s10065_s21, 4  ;;  %s9395_s22 = int_to_ptr.vmem [resolvable:$false] %s9394_s22 }
 0x1c7   : > { %s9396_s6 = scalar_lea.vmem %s9395_s22, 32  ;;  %p9397_p3 = scmp.lt.s32.totalorder %s1877_s28, %s9395_s22 }
 0x1c8   : > { %p9392_p12 = pnand %p9391_p1, %p10368_p4  ;;  %p9398_p2 = scmp.lt.s32.totalorder %s9396_s6, %s9390_s14 }
 0x1ca   : > { %p9393_p13 = pneg %p9392_p12  ;;  %p9399_p5 = por %p9398_p2, %p9397_p3 }
 0x1cc   : > { %p9400_p6 = pnand %p9399_p5, %p9393_p13 }
 0x1ce   : > { %9403 = shalt.err (!%p9400_p6)
}
 0x1cf   : > { %8714 = dma.hbm_to_vmem [thread:$0]  (%p10368_p4), %s10664_s10, 16, %s1877_s28, %s11890_s3  }
 0x1d0   : > { %s10685_s12 = scalar_lea.hbm %s11969_s30, %s10382_s2  ;;  %s1903_s6 = scalar_lea.vmem [#allocation46], %s10379_s1 }
 0x1d1   : > { %s1910_s23 = sshll.u32 %s1903_s6, 4  ;;  %s11891_s14 = scalar_lea.sflag [#allocation47], %s10385_s0  ;;  %s1911_s23 = int_to_ptr.vmem [resolvable:$true] %s1910_s23 }
 0x1d2   : > { %s9404_s21 = scalar_lea.hbm %s10685_s12, 16  ;;  %s9408_s22 = scalar_lea.hbm %s11969_s30, 32 }
 0x1d3   : > { %p9405_p7 = scmp.ne.s32.totalorder %s10685_s12, %s9404_s21  ;;  %p9409_p0 = scmp.lt.u32.totalorder %s10685_s12, %s11969_s30 }
 0x1d4   : > { %p9410_p11 = scmp.lt.u32.totalorder %s9408_s22, %s9404_s21  ;;  %p9412_p1 = scmp.lt.u32.totalorder %s9404_s21, %s10685_s12 }
 0x1d5   : > { %p9406_p8 = pnand %p9405_p7, %p10368_p4 }
 0x1d6   : > { %p9411_p10 = por %p9410_p11, %p9409_p0 }
 0x1d7   : > { %p9407_p9 = pneg %p9406_p8 }
 0x1d8   : > { %p9413_p12 = por %p9412_p1, %p9411_p10 }
 0x1da   : > { %p9414_p13 = pnand %p9413_p12, %p9407_p9 }
 0x1dc   : > { %9417 = shalt.err (!%p9414_p13)
}
 0x1dd   : > { %s9418_s10 = scalar_lea.vmem %s1911_s23, 16  ;;  %s10066_s28 = smov [#allocation46]  }
 0x1de   : > { %p9419_p3 = scmp.ne.s32.totalorder %s1911_s23, %s9418_s10  ;;  %s9422_s6 = sshll.u32 %s10066_s28, 4  ;;  %s9423_s6 = int_to_ptr.vmem [resolvable:$false] %s9422_s6 }
 0x1df   : > { %s9424_s3 = scalar_lea.vmem %s9423_s6, 32  ;;  %p9425_p6 = scmp.lt.s32.totalorder %s1911_s23, %s9423_s6 }
 0x1e0   : > { %p9420_p2 = pnand %p9419_p3, %p10368_p4  ;;  %p9426_p7 = scmp.lt.s32.totalorder %s9424_s3, %s9418_s10 }
 0x1e2   : > { %p9421_p5 = pneg %p9420_p2  ;;  %p9427_p8 = por %p9426_p7, %p9425_p6 }
 0x1e4   : > { %p9428_p0 = pnand %p9427_p8, %p9421_p5 }
 0x1e6   : > { %9431 = shalt.err (!%p9428_p0)
}
 0x1e7   : > { %8716 = dma.hbm_to_vmem [thread:$0]  (%p10368_p4), %s10685_s12, 16, %s1911_s23, %s11891_s14  }
 0x1e8   : > { %s10706_s21 = scalar_lea.hbm %s11970_s29, %s10382_s2  ;;  %s1360_s3 = scalar_lea.vmem [#allocation4], %s10379_s1 }
 0x1e9   : > { %s1367_s22 = sshll.u32 %s1360_s3, 4  ;;  %s1358_s10 = scalar_lea.sflag [#allocation5], %s10379_s1  ;;  %s1368_s22 = int_to_ptr.vmem [resolvable:$true] %s1367_s22 }
 0x1ea   : > { %s9432_s28 = scalar_lea.hbm %s10706_s21, 16  ;;  %s9436_s6 = scalar_lea.hbm %s11970_s29, 32 }
 0x1eb   : > { %p9433_p9 = scmp.ne.s32.totalorder %s10706_s21, %s9432_s28  ;;  %p9437_p1 = scmp.lt.u32.totalorder %s10706_s21, %s11970_s29 }
 0x1ec   : > { %p9438_p12 = scmp.lt.u32.totalorder %s9436_s6, %s9432_s28  ;;  %p9440_p3 = scmp.lt.u32.totalorder %s9432_s28, %s10706_s21 }
 0x1ed   : > { %p9434_p11 = pnand %p9433_p9, %p10368_p4 }
 0x1ee   : > { %p9439_p13 = por %p9438_p12, %p9437_p1 }
 0x1ef   : > { %p9435_p10 = pneg %p9434_p11 }
 0x1f0   : > { %p9441_p2 = por %p9440_p3, %p9439_p13 }
 0x1f2   : > { %p9442_p5 = pnand %p9441_p2, %p9435_p10 }
 0x1f4   : > { %9445 = shalt.err (!%p9442_p5)
}
 0x1f5   : > { %s9446_s12 = scalar_lea.vmem %s1368_s22, 16  ;;  %s10067_s23 = smov [#allocation4]  }
 0x1f6   : > { %p9447_p6 = scmp.ne.s32.totalorder %s1368_s22, %s9446_s12  ;;  %s9450_s3 = sshll.u32 %s10067_s23, 4  ;;  %s9451_s3 = int_to_ptr.vmem [resolvable:$false] %s9450_s3 }
 0x1f7   : > { %s9452_s14 = scalar_lea.vmem %s9451_s3, 32  ;;  %p9453_p0 = scmp.lt.s32.totalorder %s1368_s22, %s9451_s3 }
 0x1f8   : > { %p9448_p7 = pnand %p9447_p6, %p10368_p4  ;;  %p9454_p9 = scmp.lt.s32.totalorder %s9452_s14, %s9446_s12 }
 0x1fa   : > { %p9449_p8 = pneg %p9448_p7  ;;  %p9455_p11 = por %p9454_p9, %p9453_p0 }
 0x1fc   : > { %p9456_p1 = pnand %p9455_p11, %p9449_p8 }
 0x1fe   : > { %9459 = shalt.err (!%p9456_p1)
}
 0x1ff   : > { %s11995_s28 = sld [smem:[#allocation79_spill]]  ;;  %s1410_s14 = scalar_lea.vmem [#allocation9], %s10379_s1 }
 0x200   : > { %8689 = dma.hbm_to_vmem [thread:$0]  (%p10368_p4), %s10706_s21, 16, %s1368_s22, %s1358_s10  }
 0x201   : > { %s1417_s12 = sshll.u32 %s1410_s14, 4  ;;  %s1418_s12 = int_to_ptr.vmem [resolvable:$true] %s1417_s12 }
 0x205   : > { %s10725_s6 = scalar_lea.hbm %s11995_s28, %s10382_s2  ;;  %s9464_s3 = scalar_lea.hbm %s11995_s28, 32 }
 0x206   : > { %s9460_s23 = scalar_lea.hbm %s10725_s6, 16  ;;  %p9465_p3 = scmp.lt.u32.totalorder %s10725_s6, %s11995_s28 }
 0x207   : > { %p9461_p10 = scmp.ne.s32.totalorder %s10725_s6, %s9460_s23  ;;  %p9466_p2 = scmp.lt.u32.totalorder %s9464_s3, %s9460_s23 }
 0x208   : > { %p9468_p6 = scmp.lt.u32.totalorder %s9460_s23, %s10725_s6 }
 0x209   : > { %p9462_p12 = pnand %p9461_p10, %p10368_p4  ;;  %p9467_p5 = por %p9466_p2, %p9465_p3 }
 0x20b   : > { %p9463_p13 = pneg %p9462_p12  ;;  %p9469_p7 = por %p9468_p6, %p9467_p5 }
 0x20d   : > { %p9470_p8 = pnand %p9469_p7, %p9463_p13 }
 0x20f   : > { %9473 = shalt.err (!%p9470_p8)
}
 0x210   : > { %s9474_s21 = scalar_lea.vmem %s1418_s12, 16  ;;  %s10068_s22 = smov [#allocation9]  }
 0x211   : > { %p9475_p0 = scmp.ne.s32.totalorder %s1418_s12, %s9474_s21  ;;  %s9478_s10 = sshll.u32 %s10068_s22, 4  ;;  %s9479_s10 = int_to_ptr.vmem [resolvable:$false] %s9478_s10 }
 0x212   : > { %s9480_s14 = scalar_lea.vmem %s9479_s10, 32  ;;  %p9481_p1 = scmp.lt.s32.totalorder %s1418_s12, %s9479_s10 }
 0x213   : > { %p9476_p9 = pnand %p9475_p0, %p10368_p4  ;;  %p9482_p10 = scmp.lt.s32.totalorder %s9480_s14, %s9474_s21 }
 0x215   : > { %p9477_p11 = pneg %p9476_p9  ;;  %p9483_p12 = por %p9482_p10, %p9481_p1 }
 0x217   : > { %p9484_p2 = pnand %p9483_p12, %p9477_p11 }
 0x219   : > { %9487 = shalt.err (!%p9484_p2)
}
 0x21a   : > { %s11996_s23 = scalar_lea.sflag [#allocation8], %s10385_s0  ;;  %s11997_s3 = sld [smem:[#allocation81_spill]] }
 0x21b   : > { %8691 = dma.hbm_to_vmem [thread:$0]  (%p10368_p4), %s10725_s6, 16, %s1418_s12, %s11996_s23  }
 0x21c   : > { %s1444_s21 = scalar_lea.vmem [#allocation12], %s10379_s1 }
 0x21d   : > { %s1451_s10 = sshll.u32 %s1444_s21, 4  ;;  %s1452_s10 = int_to_ptr.vmem [resolvable:$true] %s1451_s10 }
 0x220   : > { %s10745_s22 = scalar_lea.hbm %s11997_s3, %s10382_s2  ;;  %s9492_s13 = scalar_lea.hbm %s11997_s3, 32 }
 0x221   : > { %s9488_s14 = scalar_lea.hbm %s10745_s22, 16  ;;  %p9493_p6 = scmp.lt.u32.totalorder %s10745_s22, %s11997_s3 }
 0x222   : > { %p9489_p13 = scmp.ne.s32.totalorder %s10745_s22, %s9488_s14  ;;  %p9494_p7 = scmp.lt.u32.totalorder %s9492_s13, %s9488_s14 }
 0x223   : > { %p9496_p0 = scmp.lt.u32.totalorder %s9488_s14, %s10745_s22 }
 0x224   : > { %p9490_p3 = pnand %p9489_p13, %p10368_p4  ;;  %p9495_p8 = por %p9494_p7, %p9493_p6 }
 0x226   : > { %p9491_p5 = pneg %p9490_p3  ;;  %p9497_p9 = por %p9496_p0, %p9495_p8 }
 0x228   : > { %p9498_p11 = pnand %p9497_p9, %p9491_p5 }
 0x22a   : > { %9501 = shalt.err (!%p9498_p11)
}
 0x22b   : > { %s9502_s6 = scalar_lea.vmem %s1452_s10, 16  ;;  %s10069_s12 = smov [#allocation12]  }
 0x22c   : > { %p9503_p1 = scmp.ne.s32.totalorder %s1452_s10, %s9502_s6  ;;  %s9506_s23 = sshll.u32 %s10069_s12, 4  ;;  %s9507_s23 = int_to_ptr.vmem [resolvable:$false] %s9506_s23 }
 0x22d   : > { %s9508_s21 = scalar_lea.vmem %s9507_s23, 32  ;;  %p9509_p2 = scmp.lt.s32.totalorder %s1452_s10, %s9507_s23 }
 0x22e   : > { %p9504_p10 = pnand %p9503_p1, %p10368_p4  ;;  %p9510_p13 = scmp.lt.s32.totalorder %s9508_s21, %s9502_s6 }
 0x230   : > { %p9505_p12 = pneg %p9504_p10  ;;  %p9511_p3 = por %p9510_p13, %p9509_p2 }
 0x232   : > { %p9512_p6 = pnand %p9511_p3, %p9505_p12 }
 0x234   : > { %9515 = shalt.err (!%p9512_p6)
}
 0x235   : > { %s11998_s13 = scalar_lea.sflag [#allocation11], %s10385_s0  ;;  %s11999_s14 = sld [smem:[#allocation84_spill]] }
 0x236   : > { %8693 = dma.hbm_to_vmem [thread:$0]  (%p10368_p4), %s10745_s22, 16, %s1452_s10, %s11998_s13  }
 0x237   : > { %s1486_s6 = scalar_lea.vmem [#allocation15], %s10379_s1 }
 0x238   : > { %s1493_s23 = sshll.u32 %s1486_s6, 4  ;;  %s1494_s23 = int_to_ptr.vmem [resolvable:$true] %s1493_s23 }
 0x23b   : > { %s10765_s12 = scalar_lea.hbm %s11999_s14, %s10382_s2  ;;  %s9520_s16 = scalar_lea.hbm %s11999_s14, 32 }
 0x23c   : > { %s9516_s21 = scalar_lea.hbm %s10765_s12, 16  ;;  %p9521_p0 = scmp.lt.u32.totalorder %s10765_s12, %s11999_s14 }
 0x23d   : > { %p9517_p5 = scmp.ne.s32.totalorder %s10765_s12, %s9516_s21  ;;  %p9522_p9 = scmp.lt.u32.totalorder %s9520_s16, %s9516_s21 }
 0x23e   : > { %p9524_p1 = scmp.lt.u32.totalorder %s9516_s21, %s10765_s12 }
 0x23f   : > { %p9518_p7 = pnand %p9517_p5, %p10368_p4  ;;  %p9523_p11 = por %p9522_p9, %p9521_p0 }
 0x241   : > { %p9519_p8 = pneg %p9518_p7  ;;  %p9525_p10 = por %p9524_p1, %p9523_p11 }
 0x243   : > { %p9526_p12 = pnand %p9525_p10, %p9519_p8 }
 0x245   : > { %9529 = shalt.err (!%p9526_p12)
}
 0x246   : > { %s9530_s22 = scalar_lea.vmem %s1494_s23, 16  ;;  %s10070_s10 = smov [#allocation15]  }
 0x247   : > { %p9531_p2 = scmp.ne.s32.totalorder %s1494_s23, %s9530_s22  ;;  %s9534_s13 = sshll.u32 %s10070_s10, 4  ;;  %s9535_s13 = int_to_ptr.vmem [resolvable:$false] %s9534_s13 }
 0x248   : > { %s9536_s6 = scalar_lea.vmem %s9535_s13, 32  ;;  %p9537_p6 = scmp.lt.s32.totalorder %s1494_s23, %s9535_s13 }
 0x249   : > { %p9532_p13 = pnand %p9531_p2, %p10368_p4  ;;  %p9538_p5 = scmp.lt.s32.totalorder %s9536_s6, %s9530_s22 }
 0x24b   : > { %p9533_p3 = pneg %p9532_p13  ;;  %p9539_p7 = por %p9538_p5, %p9537_p6 }
 0x24d   : > { %p9540_p0 = pnand %p9539_p7, %p9533_p3 }
 0x24f   : > { %9543 = shalt.err (!%p9540_p0)
}
 0x250   : > { %s12000_s16 = scalar_lea.sflag [#allocation14], %s10385_s0  ;;  %s12001_s21 = sld [smem:[#allocation87_spill]] }
 0x251   : > { %8695 = dma.hbm_to_vmem [thread:$0]  (%p10368_p4), %s10765_s12, 16, %s1494_s23, %s12000_s16  }
 0x252   : > { %s1528_s22 = scalar_lea.vmem [#allocation18], %s10379_s1 }
 0x253   : > { %s1535_s13 = sshll.u32 %s1528_s22, 4  ;;  %s1536_s13 = int_to_ptr.vmem [resolvable:$true] %s1535_s13 }
 0x256   : > { %s10785_s10 = scalar_lea.hbm %s12001_s21, %s10382_s2  ;;  %s9548_s4 = scalar_lea.hbm %s12001_s21, 32 }
 0x257   : > { %s9544_s6 = scalar_lea.hbm %s10785_s10, 16  ;;  %p9549_p1 = scmp.lt.u32.totalorder %s10785_s10, %s12001_s21 }
 0x258   : > { %p9545_p8 = scmp.ne.s32.totalorder %s10785_s10, %s9544_s6  ;;  %p9550_p10 = scmp.lt.u32.totalorder %s9548_s4, %s9544_s6 }
 0x259   : > { %p9552_p2 = scmp.lt.u32.totalorder %s9544_s6, %s10785_s10 }
 0x25a   : > { %p9546_p9 = pnand %p9545_p8, %p10368_p4  ;;  %p9551_p12 = por %p9550_p10, %p9549_p1 }
 0x25c   : > { %p9547_p11 = pneg %p9546_p9  ;;  %p9553_p13 = por %p9552_p2, %p9551_p12 }
 0x25e   : > { %p9554_p3 = pnand %p9553_p13, %p9547_p11 }
 0x260   : > { %9557 = shalt.err (!%p9554_p3)
}
 0x261   : > { %s9558_s12 = scalar_lea.vmem %s1536_s13, 16  ;;  %s10071_s23 = smov [#allocation18]  }
 0x262   : > { %p9559_p6 = scmp.ne.s32.totalorder %s1536_s13, %s9558_s12  ;;  %s9562_s16 = sshll.u32 %s10071_s23, 4  ;;  %s9563_s16 = int_to_ptr.vmem [resolvable:$false] %s9562_s16 }
 0x263   : > { %s9564_s22 = scalar_lea.vmem %s9563_s16, 32  ;;  %p9565_p0 = scmp.lt.s32.totalorder %s1536_s13, %s9563_s16 }
 0x264   : > { %p9560_p5 = pnand %p9559_p6, %p10368_p4  ;;  %p9566_p8 = scmp.lt.s32.totalorder %s9564_s22, %s9558_s12 }
 0x266   : > { %p9561_p7 = pneg %p9560_p5  ;;  %p9567_p9 = por %p9566_p8, %p9565_p0 }
 0x268   : > { %p9568_p1 = pnand %p9567_p9, %p9561_p7 }
 0x26a   : > { %9571 = shalt.err (!%p9568_p1)
}
 0x26b   : > { %s12002_s4 = scalar_lea.sflag [#allocation17], %s10385_s0  ;;  %s12003_s6 = sld [smem:[#allocation91_spill]] }
 0x26c   : > { %8697 = dma.hbm_to_vmem [thread:$0]  (%p10368_p4), %s10785_s10, 16, %s1536_s13, %s12002_s4  }
 0x26d   : > { %s1578_s12 = scalar_lea.vmem [#allocation21], %s10379_s1 }
 0x26e   : > { %s1585_s16 = sshll.u32 %s1578_s12, 4  ;;  %s1586_s16 = int_to_ptr.vmem [resolvable:$true] %s1585_s16 }
 0x271   : > { %s10805_s23 = scalar_lea.hbm %s12003_s6, %s10382_s2  ;;  %s9576_s15 = scalar_lea.hbm %s12003_s6, 32 }
 0x272   : > { %s9572_s22 = scalar_lea.hbm %s10805_s23, 16  ;;  %p9577_p2 = scmp.lt.u32.totalorder %s10805_s23, %s12003_s6 }
 0x273   : > { %p9573_p11 = scmp.ne.s32.totalorder %s10805_s23, %s9572_s22  ;;  %p9578_p13 = scmp.lt.u32.totalorder %s9576_s15, %s9572_s22 }
 0x274   : > { %p9580_p6 = scmp.lt.u32.totalorder %s9572_s22, %s10805_s23 }
 0x275   : > { %p9574_p10 = pnand %p9573_p11, %p10368_p4  ;;  %p9579_p3 = por %p9578_p13, %p9577_p2 }
 0x277   : > { %p9575_p12 = pneg %p9574_p10  ;;  %p9581_p5 = por %p9580_p6, %p9579_p3 }
 0x279   : > { %p9582_p7 = pnand %p9581_p5, %p9575_p12 }
 0x27b   : > { %9585 = shalt.err (!%p9582_p7)
}
 0x27c   : > { %s9586_s10 = scalar_lea.vmem %s1586_s16, 16  ;;  %s10072_s13 = smov [#allocation21]  }
 0x27d   : > { %p9587_p0 = scmp.ne.s32.totalorder %s1586_s16, %s9586_s10  ;;  %s9590_s4 = sshll.u32 %s10072_s13, 4  ;;  %s9591_s4 = int_to_ptr.vmem [resolvable:$false] %s9590_s4 }
 0x27e   : > { %s9592_s12 = scalar_lea.vmem %s9591_s4, 32  ;;  %p9593_p1 = scmp.lt.s32.totalorder %s1586_s16, %s9591_s4 }
 0x27f   : > { %p9588_p8 = pnand %p9587_p0, %p10368_p4  ;;  %p9594_p11 = scmp.lt.s32.totalorder %s9592_s12, %s9586_s10 }
 0x281   : > { %p9589_p9 = pneg %p9588_p8  ;;  %p9595_p10 = por %p9594_p11, %p9593_p1 }
 0x283   : > { %p9596_p2 = pnand %p9595_p10, %p9589_p9 }
 0x285   : > { %9599 = shalt.err (!%p9596_p2)
}
 0x286   : > { %s12004_s15 = scalar_lea.sflag [#allocation20], %s10385_s0  ;;  %s12005_s22 = sld [smem:[#allocation94_spill]] }
 0x287   : > { %8699 = dma.hbm_to_vmem [thread:$0]  (%p10368_p4), %s10805_s23, 16, %s1586_s16, %s12004_s15  }
 0x288   : > { %s1620_s10 = scalar_lea.vmem [#allocation24], %s10379_s1  ;;  %s11902_s12 = sshll.u32 %s10379_s1, 4 }
 0x289   : > { %s1627_s4 = sshll.u32 %s1620_s10, 4  ;;  %s1628_s4 = int_to_ptr.vmem [resolvable:$true] %s1627_s4 }
 0x28c   : > { %s10825_s13 = scalar_lea.hbm %s12005_s22, %s10382_s2  ;;  %s9604_s5 = scalar_lea.hbm %s12005_s22, 32 }
 0x28d   : > { %s9600_s3 = scalar_lea.hbm %s10825_s13, 16  ;;  %p9605_p6 = scmp.lt.u32.totalorder %s10825_s13, %s12005_s22 }
 0x28e   : > { %p9601_p12 = scmp.ne.s32.totalorder %s10825_s13, %s9600_s3  ;;  %p9606_p5 = scmp.lt.u32.totalorder %s9604_s5, %s9600_s3 }
 0x28f   : > { %p9608_p0 = scmp.lt.u32.totalorder %s9600_s3, %s10825_s13 }
 0x290   : > { %p9602_p13 = pnand %p9601_p12, %p10368_p4  ;;  %p9607_p7 = por %p9606_p5, %p9605_p6 }
 0x292   : > { %p9603_p3 = pneg %p9602_p13  ;;  %p9609_p8 = por %p9608_p0, %p9607_p7 }
 0x294   : > { %p9610_p9 = pnand %p9609_p8, %p9603_p3 }
 0x296   : > { %9613 = shalt.err (!%p9610_p9)
}
 0x297   : > { %s9614_s23 = scalar_lea.vmem %s1628_s4, 16  ;;  %s10073_s16 = smov [#allocation24]  }
 0x298   : > { %p9615_p1 = scmp.ne.s32.totalorder %s1628_s4, %s9614_s23  ;;  %s9618_s15 = sshll.u32 %s10073_s16, 4  ;;  %s9619_s15 = int_to_ptr.vmem [resolvable:$false] %s9618_s15 }
 0x299   : > { %s9620_s10 = scalar_lea.vmem %s9619_s15, 32  ;;  %p9621_p2 = scmp.lt.s32.totalorder %s1628_s4, %s9619_s15 }
 0x29a   : > { %p9616_p11 = pnand %p9615_p1, %p10368_p4  ;;  %p9622_p12 = scmp.lt.s32.totalorder %s9620_s10, %s9614_s23 }
 0x29c   : > { %p9617_p10 = pneg %p9616_p11  ;;  %p9623_p13 = por %p9622_p12, %p9621_p2 }
 0x29e   : > { %p9624_p5 = pnand %p9623_p13, %p9617_p10 }
 0x2a0   : > { %9627 = shalt.err (!%p9624_p5)
}
 0x2a1   : > { %s12006_s5 = scalar_lea.sflag [#allocation23], %s10385_s0  ;;  %s12007_s3 = sld [smem:[#allocation96_spill]] }
 0x2a2   : > { %8701 = dma.hbm_to_vmem [thread:$0]  (%p10368_p4), %s10825_s13, 16, %s1628_s4, %s12006_s5  }
 0x2a3   : > { %s11903_s16 = sshll.u32 %s10004_s11, 8  ;;  %s1655_s23 = scalar_lea.vmem [#allocation27], %s11902_s12 }
 0x2a4   : > { %s1662_s10 = sshll.u32 %s1655_s23, 4  ;;  %s10852_s10 = int_to_ptr.vmem [resolvable:$true] %s1662_s10 }
 0x2a7   : > { %s10848_s15 = scalar_lea.hbm %s12007_s3, %s11903_s16  ;;  %s9632_s14 = scalar_lea.hbm %s12007_s3, 512 }
 0x2a8   : > { %s9628_s6 = scalar_lea.hbm %s10848_s15, 256  ;;  %p9633_p0 = scmp.lt.u32.totalorder %s10848_s15, %s12007_s3 }
 0x2a9   : > { %p9629_p3 = scmp.ne.s32.totalorder %s10848_s15, %s9628_s6  ;;  %p9634_p8 = scmp.lt.u32.totalorder %s9632_s14, %s9628_s6 }
 0x2aa   : > { %p9636_p1 = scmp.lt.u32.totalorder %s9628_s6, %s10848_s15 }
 0x2ab   : > { %p9630_p6 = pnand %p9629_p3, %p10368_p4  ;;  %p9635_p9 = por %p9634_p8, %p9633_p0 }
 0x2ad   : > { %p9631_p7 = pneg %p9630_p6  ;;  %p9637_p11 = por %p9636_p1, %p9635_p9 }
 0x2af   : > { %p9638_p10 = pnand %p9637_p11, %p9631_p7 }
 0x2b1   : > { %9641 = shalt.err (!%p9638_p10)
}
 0x2b2   : > { %s9642_s13 = scalar_lea.vmem %s10852_s10, 256  ;;  %s10074_s4 = smov [#allocation27]  }
 0x2b3   : > { %p9643_p2 = scmp.ne.s32.totalorder %s10852_s10, %s9642_s13  ;;  %s9646_s5 = sshll.u32 %s10074_s4, 4  ;;  %s9647_s5 = int_to_ptr.vmem [resolvable:$false] %s9646_s5 }
 0x2b4   : > { %s9648_s23 = scalar_lea.vmem %s9647_s5, 512  ;;  %p9649_p5 = scmp.lt.s32.totalorder %s10852_s10, %s9647_s5 }
 0x2b5   : > { %p9644_p12 = pnand %p9643_p2, %p10368_p4  ;;  %p9650_p3 = scmp.lt.s32.totalorder %s9648_s23, %s9642_s13 }
 0x2b7   : > { %p9645_p13 = pneg %p9644_p12  ;;  %p9651_p6 = por %p9650_p3, %p9649_p5 }
 0x2b9   : > { %p9652_p0 = pnand %p9651_p6, %p9645_p13 }
 0x2bb   : > { %9655 = shalt.err (!%p9652_p0)
}
 0x2bc   : > { %s12008_s14 = smov 8   ;;  %s12009_s6 = smov 128  }
 0x2bd   : > { %s12010_s12 = scalar_lea.sflag [#allocation26], %s10385_s0  ;;  %s12011_s16 = sld [smem:[#allocation98_spill]] }
 0x2be   : > { %8703 = dma.hbm_to_vmem [thread:$0]  (%p10368_p4), %s10848_s15, 256, %s10852_s10, %s12010_s12, %s12009_s6, %s12009_s6, %s12008_s14  }
 0x2bf   : > { %s1692_s4 = scalar_lea.vmem [#allocation30], %s10379_s1 }
 0x2c0   : > { %s1699_s5 = sshll.u32 %s1692_s4, 4  ;;  %s1700_s5 = int_to_ptr.vmem [resolvable:$true] %s1699_s5 }
 0x2c3   : > { %s10878_s13 = scalar_lea.hbm %s12011_s16, %s10382_s2  ;;  %s9660_s3 = scalar_lea.hbm %s12011_s16, 32 }
 0x2c4   : > { %s9656_s23 = scalar_lea.hbm %s10878_s13, 16  ;;  %p9661_p1 = scmp.lt.u32.totalorder %s10878_s13, %s12011_s16 }
 0x2c5   : > { %p9657_p7 = scmp.ne.s32.totalorder %s10878_s13, %s9656_s23  ;;  %p9662_p11 = scmp.lt.u32.totalorder %s9660_s3, %s9656_s23 }
 0x2c6   : > { %p9664_p2 = scmp.lt.u32.totalorder %s9656_s23, %s10878_s13 }
 0x2c7   : > { %p9658_p8 = pnand %p9657_p7, %p10368_p4  ;;  %p9663_p10 = por %p9662_p11, %p9661_p1 }
 0x2c9   : > { %p9659_p9 = pneg %p9658_p8  ;;  %p9665_p12 = por %p9664_p2, %p9663_p10 }
 0x2cb   : > { %p9666_p13 = pnand %p9665_p12, %p9659_p9 }
 0x2cd   : > { %9669 = shalt.err (!%p9666_p13)
}
 0x2ce   : > { %s9670_s12 = scalar_lea.vmem %s1700_s5, 16  ;;  %s10075_s15 = smov [#allocation30]  }
 0x2cf   : > { %p9671_p5 = scmp.ne.s32.totalorder %s1700_s5, %s9670_s12  ;;  %s9674_s10 = sshll.u32 %s10075_s15, 4  ;;  %s9675_s10 = int_to_ptr.vmem [resolvable:$false] %s9674_s10 }
 0x2d0   : > { %s9676_s4 = scalar_lea.vmem %s9675_s10, 32  ;;  %p9677_p0 = scmp.lt.s32.totalorder %s1700_s5, %s9675_s10 }
 0x2d1   : > { %p9672_p3 = pnand %p9671_p5, %p10368_p4  ;;  %p9678_p7 = scmp.lt.s32.totalorder %s9676_s4, %s9670_s12 }
 0x2d3   : > { %p9673_p6 = pneg %p9672_p3  ;;  %p9679_p8 = por %p9678_p7, %p9677_p0 }
 0x2d5   : > { %p9680_p1 = pnand %p9679_p8, %p9673_p6 }
 0x2d7   : > { %9683 = shalt.err (!%p9680_p1)
}
 0x2d8   : > { %s12012_s3 = scalar_lea.sflag [#allocation29], %s10385_s0  ;;  %s12013_s23 = sld [smem:[#allocation101_spill]] }
 0x2d9   : > { %8705 = dma.hbm_to_vmem [thread:$0]  (%p10368_p4), %s10878_s13, 16, %s1700_s5, %s12012_s3  }
 0x2da   : > { %s1734_s12 = scalar_lea.vmem [#allocation33], %s10379_s1 }
 0x2db   : > { %s1741_s10 = sshll.u32 %s1734_s12, 4  ;;  %s1742_s10 = int_to_ptr.vmem [resolvable:$true] %s1741_s10 }
 0x2de   : > { %s10898_s15 = scalar_lea.hbm %s12013_s23, %s10382_s2  ;;  %s9688_s16 = scalar_lea.hbm %s12013_s23, 32 }
 0x2df   : > { %s9684_s4 = scalar_lea.hbm %s10898_s15, 16  ;;  %p9689_p2 = scmp.lt.u32.totalorder %s10898_s15, %s12013_s23 }
 0x2e0   : > { %p9685_p9 = scmp.ne.s32.totalorder %s10898_s15, %s9684_s4  ;;  %p9690_p12 = scmp.lt.u32.totalorder %s9688_s16, %s9684_s4 }
 0x2e1   : > { %p9692_p5 = scmp.lt.u32.totalorder %s9684_s4, %s10898_s15 }
 0x2e2   : > { %p9686_p11 = pnand %p9685_p9, %p10368_p4  ;;  %p9691_p13 = por %p9690_p12, %p9689_p2 }
 0x2e4   : > { %p9687_p10 = pneg %p9686_p11  ;;  %p9693_p3 = por %p9692_p5, %p9691_p13 }
 0x2e6   : > { %p9694_p6 = pnand %p9693_p3, %p9687_p10 }
 0x2e8   : > { %9697 = shalt.err (!%p9694_p6)
}
 0x2e9   : > { %s9698_s13 = scalar_lea.vmem %s1742_s10, 16  ;;  %s10076_s5 = smov [#allocation33]  }
 0x2ea   : > { %p9699_p0 = scmp.ne.s32.totalorder %s1742_s10, %s9698_s13  ;;  %s9702_s3 = sshll.u32 %s10076_s5, 4  ;;  %s9703_s3 = int_to_ptr.vmem [resolvable:$false] %s9702_s3 }
 0x2eb   : > { %s9704_s12 = scalar_lea.vmem %s9703_s3, 32  ;;  %p9705_p1 = scmp.lt.s32.totalorder %s1742_s10, %s9703_s3 }
 0x2ec   : > { %p9700_p7 = pnand %p9699_p0, %p10368_p4  ;;  %p9706_p9 = scmp.lt.s32.totalorder %s9704_s12, %s9698_s13 }
 0x2ee   : > { %p9701_p8 = pneg %p9700_p7  ;;  %p9707_p11 = por %p9706_p9, %p9705_p1 }
 0x2f0   : > { %p9708_p2 = pnand %p9707_p11, %p9701_p8 }
 0x2f2   : > { %9711 = shalt.err (!%p9708_p2)
}
 0x2f3   : > { %s12014_s16 = scalar_lea.sflag [#allocation32], %s10385_s0  ;;  %s12015_s4 = sld [smem:[#allocation103_spill]] }
 0x2f4   : > { %8707 = dma.hbm_to_vmem [thread:$0]  (%p10368_p4), %s10898_s15, 16, %s1742_s10, %s12014_s16  }
 0x2f5   : > { %s1772_s13 = scalar_lea.vmem [#allocation36], %s10379_s1 }
 0x2f6   : > { %s1779_s3 = sshll.u32 %s1772_s13, 4  ;;  %s1780_s3 = int_to_ptr.vmem [resolvable:$true] %s1779_s3 }
 0x2f9   : > { %s10918_s5 = scalar_lea.hbm %s12015_s4, %s10382_s2  ;;  %s9716_s17 = scalar_lea.hbm %s12015_s4, 32 }
 0x2fa   : > { %s9712_s12 = scalar_lea.hbm %s10918_s5, 16  ;;  %p9717_p5 = scmp.lt.u32.totalorder %s10918_s5, %s12015_s4 }
 0x2fb   : > { %p9713_p10 = scmp.ne.s32.totalorder %s10918_s5, %s9712_s12  ;;  %p9718_p3 = scmp.lt.u32.totalorder %s9716_s17, %s9712_s12 }
 0x2fc   : > { %p9720_p0 = scmp.lt.u32.totalorder %s9712_s12, %s10918_s5 }
 0x2fd   : > { %p9714_p12 = pnand %p9713_p10, %p10368_p4  ;;  %p9719_p6 = por %p9718_p3, %p9717_p5 }
 0x2ff   : > { %p9715_p13 = pneg %p9714_p12  ;;  %p9721_p7 = por %p9720_p0, %p9719_p6 }
 0x301   : > { %p9722_p8 = pnand %p9721_p7, %p9715_p13 }
 0x303   : > { %9725 = shalt.err (!%p9722_p8)
}
 0x304   : > { %s9726_s15 = scalar_lea.vmem %s1780_s3, 16  ;;  %s10077_s10 = smov [#allocation36]  }
 0x305   : > { %p9727_p1 = scmp.ne.s32.totalorder %s1780_s3, %s9726_s15  ;;  %s9730_s16 = sshll.u32 %s10077_s10, 4  ;;  %s9731_s16 = int_to_ptr.vmem [resolvable:$false] %s9730_s16 }
 0x306   : > { %s9732_s13 = scalar_lea.vmem %s9731_s16, 32  ;;  %p9733_p2 = scmp.lt.s32.totalorder %s1780_s3, %s9731_s16 }
 0x307   : > { %p9728_p9 = pnand %p9727_p1, %p10368_p4  ;;  %p9734_p10 = scmp.lt.s32.totalorder %s9732_s13, %s9726_s15 }
 0x309   : > { %p9729_p11 = pneg %p9728_p9  ;;  %p9735_p12 = por %p9734_p10, %p9733_p2 }
 0x30b   : > { %p9736_p3 = pnand %p9735_p12, %p9729_p11 }
 0x30d   : > { %9739 = shalt.err (!%p9736_p3)
}
 0x30e   : > { %s12016_s17 = scalar_lea.sflag [#allocation35], %s10385_s0  ;;  %s12017_s12 = sld [smem:[#allocation106_spill]] }
 0x30f   : > { %8709 = dma.hbm_to_vmem [thread:$0]  (%p10368_p4), %s10918_s5, 16, %s1780_s3, %s12016_s17  }
 0x310   : > { %s1814_s15 = scalar_lea.vmem [#allocation39], %s10379_s1 }
 0x311   : > { %s1821_s16 = sshll.u32 %s1814_s15, 4  ;;  %s1822_s16 = int_to_ptr.vmem [resolvable:$true] %s1821_s16 }
 0x314   : > { %s10938_s10 = scalar_lea.hbm %s12017_s12, %s10382_s2  ;;  %s9744_s4 = scalar_lea.hbm %s12017_s12, 32 }
 0x315   : > { %s9740_s13 = scalar_lea.hbm %s10938_s10, 16  ;;  %p9745_p0 = scmp.lt.u32.totalorder %s10938_s10, %s12017_s12 }
 0x316   : > { %p9741_p13 = scmp.ne.s32.totalorder %s10938_s10, %s9740_s13  ;;  %p9746_p7 = scmp.lt.u32.totalorder %s9744_s4, %s9740_s13 }
 0x317   : > { %p9748_p1 = scmp.lt.u32.totalorder %s9740_s13, %s10938_s10 }
 0x318   : > { %p9742_p5 = pnand %p9741_p13, %p10368_p4  ;;  %p9747_p8 = por %p9746_p7, %p9745_p0 }
 0x31a   : > { %p9743_p6 = pneg %p9742_p5  ;;  %p9749_p9 = por %p9748_p1, %p9747_p8 }
 0x31c   : > { %p9750_p11 = pnand %p9749_p9, %p9743_p6 }
 0x31e   : > { %9753 = shalt.err (!%p9750_p11)
}
 0x31f   : > { %s9754_s5 = scalar_lea.vmem %s1822_s16, 16  ;;  %s10078_s3 = smov [#allocation39]  }
 0x320   : > { %p9755_p2 = scmp.ne.s32.totalorder %s1822_s16, %s9754_s5  ;;  %s9758_s17 = sshll.u32 %s10078_s3, 4  ;;  %s9759_s17 = int_to_ptr.vmem [resolvable:$false] %s9758_s17 }
 0x321   : > { %s9760_s15 = scalar_lea.vmem %s9759_s17, 32  ;;  %p9761_p3 = scmp.lt.s32.totalorder %s1822_s16, %s9759_s17 }
 0x322   : > { %p9756_p10 = pnand %p9755_p2, %p10368_p4  ;;  %p9762_p13 = scmp.lt.s32.totalorder %s9760_s15, %s9754_s5 }
 0x324   : > { %p9757_p12 = pneg %p9756_p10  ;;  %p9763_p5 = por %p9762_p13, %p9761_p3 }
 0x326   : > { %p9764_p0 = pnand %p9763_p5, %p9757_p12 }
 0x328   : > { %9767 = shalt.err (!%p9764_p0)
}
 0x329   : > { %s12018_s4 = scalar_lea.sflag [#allocation38], %s10385_s0  ;;  %s12019_s13 = sld [smem:[#allocation108_spill]] }
 0x32a   : > { %8711 = dma.hbm_to_vmem [thread:$0]  (%p10368_p4), %s10938_s10, 16, %s1822_s16, %s12018_s4  }
 0x32b   : > { %s12020_s3 = sshll.u32 %s10004_s11, 8  ;;  %s12021_s17 = sshll.u32 %s10379_s1, 4 }
 0x32c   : > { %s1849_s5 = scalar_lea.vmem [#allocation42], %s12021_s17 }
 0x32d   : > { %s1856_s15 = sshll.u32 %s1849_s5, 4  ;;  %s10963_s15 = int_to_ptr.vmem [resolvable:$true] %s1856_s15 }
 0x32f   : > { %s10959_s12 = scalar_lea.hbm %s12019_s13, %s12020_s3  ;;  %s9772_s21 = scalar_lea.hbm %s12019_s13, 512 }
 0x330   : > { %s9768_s20 = scalar_lea.hbm %s10959_s12, 256  ;;  %p9773_p1 = scmp.lt.u32.totalorder %s10959_s12, %s12019_s13 }
 0x331   : > { %p9769_p6 = scmp.ne.s32.totalorder %s10959_s12, %s9768_s20  ;;  %p9774_p9 = scmp.lt.u32.totalorder %s9772_s21, %s9768_s20 }
 0x332   : > { %p9776_p2 = scmp.lt.u32.totalorder %s9768_s20, %s10959_s12 }
 0x333   : > { %p9770_p7 = pnand %p9769_p6, %p10368_p4  ;;  %p9775_p11 = por %p9774_p9, %p9773_p1 }
 0x335   : > { %p9771_p8 = pneg %p9770_p7  ;;  %p9777_p10 = por %p9776_p2, %p9775_p11 }
 0x337   : > { %p9778_p12 = pnand %p9777_p10, %p9771_p8 }
 0x339   : > { %9781 = shalt.err (!%p9778_p12)
}
 0x33a   : > { %s9782_s10 = scalar_lea.vmem %s10963_s15, 256  ;;  %s10079_s16 = smov [#allocation42]  }
 0x33b   : > { %p9783_p3 = scmp.ne.s32.totalorder %s10963_s15, %s9782_s10  ;;  %s9786_s4 = sshll.u32 %s10079_s16, 4  ;;  %s9787_s4 = int_to_ptr.vmem [resolvable:$false] %s9786_s4 }
 0x33c   : > { %s9788_s3 = scalar_lea.vmem %s9787_s4, 512  ;;  %p9789_p0 = scmp.lt.s32.totalorder %s10963_s15, %s9787_s4 }
 0x33d   : > { %p9784_p13 = pnand %p9783_p3, %p10368_p4  ;;  %p9790_p6 = scmp.lt.s32.totalorder %s9788_s3, %s9782_s10 }
 0x33f   : > { %p9785_p5 = pneg %p9784_p13  ;;  %p9791_p7 = por %p9790_p6, %p9789_p0 }
 0x341   : > { %p9792_p1 = pnand %p9791_p7, %p9785_p5 }
 0x343   : > { %9795 = shalt.err (!%p9792_p1)
}
 0x344   : > { %s12022_s20 = scalar_lea.sflag [#allocation41], %s10385_s0  ;;  %s12023_s21 = sld [smem:[#allocation110_spill]] }
 0x345   : > { %8713 = dma.hbm_to_vmem [thread:$0]  (%p10368_p4), %s10959_s12, 256, %s10963_s15, %s12022_s20, %s12009_s6, %s12009_s6, %s12008_s14  }
 0x346   : > { %s1886_s5 = scalar_lea.vmem [#allocation45], %s10379_s1  ;;  %s12024_s16 = sshll.u32 %s10617_s8, 4  ;;  %s10994_s16 = int_to_ptr.vmem [resolvable:$true] %s12024_s16 }
 0x347   : > { %s1893_s10 = sshll.u32 %s1886_s5, 4  ;;  %s1894_s10 = int_to_ptr.vmem [resolvable:$true] %s1893_s10 }
 0x34a   : > { %s10989_s17 = scalar_lea.hbm %s12023_s21, %s10382_s2  ;;  %s9800_s3 = scalar_lea.hbm %s12023_s21, 32 }
 0x34b   : > { %s9796_s4 = scalar_lea.hbm %s10989_s17, 16  ;;  %p9801_p2 = scmp.lt.u32.totalorder %s10989_s17, %s12023_s21 }
 0x34c   : > { %p9797_p8 = scmp.ne.s32.totalorder %s10989_s17, %s9796_s4  ;;  %p9802_p10 = scmp.lt.u32.totalorder %s9800_s3, %s9796_s4 }
 0x34d   : > { %p9804_p3 = scmp.lt.u32.totalorder %s9796_s4, %s10989_s17 }
 0x34e   : > { %p9798_p9 = pnand %p9797_p8, %p10368_p4  ;;  %p9803_p12 = por %p9802_p10, %p9801_p2 }
 0x350   : > { %p9799_p11 = pneg %p9798_p9  ;;  %p9805_p13 = por %p9804_p3, %p9803_p12 }
 0x352   : > { %p9806_p5 = pnand %p9805_p13, %p9799_p11 }
 0x354   : > { %9809 = shalt.err (!%p9806_p5)
}
 0x355   : > { %s9810_s12 = scalar_lea.vmem %s1894_s10, 16  ;;  %s10080_s8 = smov [#allocation45]  }
 0x356   : > { %p9811_p0 = scmp.ne.s32.totalorder %s1894_s10, %s9810_s12  ;;  %s9814_s15 = sshll.u32 %s10080_s8, 4  ;;  %s9815_s15 = int_to_ptr.vmem [resolvable:$false] %s9814_s15 }
 0x357   : > { %s9816_s20 = scalar_lea.vmem %s9815_s15, 32  ;;  %p9817_p1 = scmp.lt.s32.totalorder %s1894_s10, %s9815_s15 }
 0x358   : > { %p9812_p6 = pnand %p9811_p0, %p10368_p4  ;;  %p9818_p8 = scmp.lt.s32.totalorder %s9816_s20, %s9810_s12 }
 0x35a   : > { %p9813_p7 = pneg %p9812_p6  ;;  %p9819_p9 = por %p9818_p8, %p9817_p1 }
 0x35c   : > { %p9820_p2 = pnand %p9819_p9, %p9813_p7 }
 0x35e   : > { %9823 = shalt.err (!%p9820_p2)
}
 0x35f   : > { %s12025_s5 = scalar_lea.sflag [#allocation44], %s10385_s0  ;;  %s9824_s4 = scalar_lea.hbm %s10613_s18, 512 }
 0x360   : > { %8715 = dma.hbm_to_vmem [thread:$0]  (%p10368_p4), %s10989_s17, 16, %s1894_s10, %s12025_s5  }
 0x361   : > { %p9825_p11 = scmp.ne.s32.totalorder %s10613_s18, %s9824_s4  ;;  %s9828_s3 = scalar_lea.hbm %s11975_s9, 1024 }
 0x362   : > { %p9829_p3 = scmp.lt.u32.totalorder %s10613_s18, %s11975_s9  ;;  %p9830_p13 = scmp.lt.u32.totalorder %s9828_s3, %s9824_s4 }
 0x363   : > { %p9826_p10 = pnand %p9825_p11, %p10368_p4  ;;  %p9832_p0 = scmp.lt.u32.totalorder %s9824_s4, %s10613_s18 }
 0x364   : > { %p9831_p5 = por %p9830_p13, %p9829_p3 }
 0x365   : > { %p9827_p12 = pneg %p9826_p10 }
 0x366   : > { %p9833_p6 = por %p9832_p0, %p9831_p5 }
 0x368   : > { %p9834_p7 = pnand %p9833_p6, %p9827_p12 }
 0x36a   : > { %9837 = shalt.err (!%p9834_p7)
}
 0x36b   : > { %s9838_s12 = scalar_lea.vmem %s10994_s16, 512  ;;  %s10081_s17 = smov [#allocation48]  }
 0x36c   : > { %p9839_p1 = scmp.ne.s32.totalorder %s10994_s16, %s9838_s12  ;;  %s9842_s10 = sshll.u32 %s10081_s17, 4  ;;  %s9843_s10 = int_to_ptr.vmem [resolvable:$false] %s9842_s10 }
 0x36d   : > { %s9844_s8 = scalar_lea.vmem %s9843_s10, 1024  ;;  %p9845_p2 = scmp.lt.s32.totalorder %s10994_s16, %s9843_s10 }
 0x36e   : > { %p9840_p8 = pnand %p9839_p1, %p10368_p4  ;;  %p9846_p11 = scmp.lt.s32.totalorder %s9844_s8, %s9838_s12 }
 0x370   : > { %p9841_p9 = pneg %p9840_p8  ;;  %p9847_p10 = por %p9846_p11, %p9845_p2 }
 0x372   : > { %p9848_p3 = pnand %p9847_p10, %p9841_p9 }
 0x374   : > { %9851 = shalt.err (!%p9848_p3)
}
 0x375   : > { %s12026_s15 = scalar_lea.sflag [#allocation47], %s10385_s0  ;;  %s11035_s20 = scalar_lea.hbm %s11974_s19, %s10382_s2 }
 0x376   : > { %8717 = dma.hbm_to_vmem [thread:$0]  (%p10368_p4), %s10613_s18, 512, %s10994_s16, %s12026_s15, %s12009_s6, %s12009_s6, %s12008_s14  }
 0x377   : > { %s1941_s5 = scalar_lea.vmem [#allocation49], %s10379_s1  ;;  %s1939_s0 = scalar_lea.sflag [#allocation50], %s10379_s1 }
 0x378   : > { %s1948_s4 = sshll.u32 %s1941_s5, 4  ;;  %s9852_s3 = scalar_lea.hbm %s11035_s20, 16  ;;  %s1949_s4 = int_to_ptr.vmem [resolvable:$true] %s1948_s4 }
 0x379   : > { %p9853_p12 = scmp.ne.s32.totalorder %s11035_s20, %s9852_s3  ;;  %s9856_s12 = scalar_lea.hbm %s11974_s19, 32 }
 0x37a   : > { %p9857_p0 = scmp.lt.u32.totalorder %s11035_s20, %s11974_s19  ;;  %p9858_p6 = scmp.lt.u32.totalorder %s9856_s12, %s9852_s3 }
 0x37b   : > { %p9854_p13 = pnand %p9853_p12, %p10368_p4  ;;  %p9860_p1 = scmp.lt.u32.totalorder %s9852_s3, %s11035_s20 }
 0x37c   : > { %p9859_p7 = por %p9858_p6, %p9857_p0 }
 0x37d   : > { %p9855_p5 = pneg %p9854_p13 }
 0x37e   : > { %p9861_p8 = por %p9860_p1, %p9859_p7 }
 0x380   : > { %p9862_p9 = pnand %p9861_p8, %p9855_p5 }
 0x382   : > { %9865 = shalt.err (!%p9862_p9)
}
 0x383   : > { %s9866_s2 = scalar_lea.vmem %s1949_s4, 16  ;;  %s10082_s1 = smov [#allocation49]  }
 0x384   : > { %p9867_p2 = scmp.ne.s32.totalorder %s1949_s4, %s9866_s2  ;;  %s9870_s18 = sshll.u32 %s10082_s1, 4  ;;  %s9871_s18 = int_to_ptr.vmem [resolvable:$false] %s9870_s18 }
 0x385   : > { %s9872_s14 = scalar_lea.vmem %s9871_s18, 32  ;;  %p9873_p3 = scmp.lt.s32.totalorder %s1949_s4, %s9871_s18 }
 0x386   : > { %p9868_p11 = pnand %p9867_p2, %p10368_p4  ;;  %p9874_p12 = scmp.lt.s32.totalorder %s9872_s14, %s9866_s2 }
 0x388   : > { %p9869_p10 = pneg %p9868_p11  ;;  %p9875_p13 = por %p9874_p12, %p9873_p3 }
 0x38a   : > { %p9876_p0 = pnand %p9875_p13, %p9869_p10 }
 0x38c   : > { %9879 = shalt.err (!%p9876_p0)
}
 0x38d   : > { %8718 = dma.hbm_to_vmem [thread:$0]  (%p10368_p4), %s11035_s20, 16, %s1949_s4, %s1939_s0  }
 0x38e PF: > { %p7862_p5 = scmp.ge.s32.totalorder %s10004_s11, 1  ;;  %p1953_p6 = scmp.lt.s32.totalorder %s10004_s11, 3 }
 0x390   : > { %p1954_p7 = pnand %p7862_p5, %p1953_p6 }
 0x391   : > { %s12027_s6 = sld [smem:[#allocation119_spill]] (!%p1954_p7)  ;;  %s11055_s16 = sand.u32 (!%p1954_p7), 1, %s9996_s7  }
 0x392   : > { %1957 = sbr.rel (%p1954_p7) target bundleno = 9735 (0x2607), region = 200  ;;  %s1960_s17 = scalar_lea.sflag (!%p1954_p7), [#allocation5], %s11055_s16 }
 0x397   : > { %p12028_p1 = scmp.ne.s32.totalorder (!%p1954_p7), %s12027_s6, 0 }
 0x399   : > { %9923 = dma.done.wait (%p12028_p1), %s1960_s17, 16  }
 0x39a   : > { %9925 = vsyncadd (%p12028_p1), %s1960_s17, 4294967280  ;;  %s12029_s26 = sld [smem:[#allocation116_spill]] }
 0x3a0   : > { %s11064_s8 = sand.u32 1, %s12029_s26  }
 0x3a1   : > { %s1968_s11 = scalar_lea.sflag [#allocation8], %s11064_s8 }
 0x3a2   : > { %9927 = dma.done.wait (%p12028_p1), %s1968_s11, 32  }
 0x3a3   : > { %9929 = vsyncadd (%p12028_p1), %s1968_s11, 4294967264  ;;  %s1984_s5 = scalar_lea.sflag [#allocation11], %s11064_s8 }
 0x3a4   : > { %9931 = dma.done.wait (%p12028_p1), %s1984_s5, 32  }
 0x3a5   : > { %9933 = vsyncadd (%p12028_p1), %s1984_s5, 4294967264  ;;  %s2000_s3 = scalar_lea.sflag [#allocation14], %s11064_s8 }
 0x3a6   : > { %9935 = dma.done.wait (%p12028_p1), %s2000_s3, 32  }
 0x3a7   : > { %9937 = vsyncadd (%p12028_p1), %s2000_s3, 4294967264  ;;  %s2016_s1 = scalar_lea.sflag [#allocation17], %s11064_s8 }
 0x3a8   : > { %9939 = dma.done.wait (%p12028_p1), %s2016_s1, 32  }
 0x3a9   : > { %9941 = vsyncadd (%p12028_p1), %s2016_s1, 4294967264  ;;  %s2032_s17 = scalar_lea.sflag [#allocation20], %s11064_s8 }
 0x3aa   : > { %9943 = dma.done.wait (%p12028_p1), %s2032_s17, 32  }
 0x3ab   : > { %9945 = vsyncadd (%p12028_p1), %s2032_s17, 4294967264  ;;  %s2048_s3 = scalar_lea.sflag [#allocation23], %s11064_s8 }
 0x3ac   : > { %9947 = dma.done.wait (%p12028_p1), %s2048_s3, 32  }
 0x3ad   : > { %9949 = vsyncadd (%p12028_p1), %s2048_s3, 4294967264  ;;  %s2064_s11 = scalar_lea.sflag [#allocation26], %s11064_s8 }
 0x3ae   : > { %9951 = dma.done.wait (%p12028_p1), %s2064_s11, 272  }
 0x3af   : > { %9953 = vsyncadd (%p12028_p1), %s2064_s11, 4294967024  ;;  %s7863_s17 = sshll.u32 %s11055_s16, 4  ;;  %s2081_s3 = scalar_lea.sflag [#allocation29], %s11064_s8 }
 0x3b0   : > { %s11115_s0 = scalar_lea.vmem [#allocation27], %s7863_s17 }
 0x3b1   : > { %9955 = dma.done.wait (%p12028_p1), %s2081_s3, 32  }
 0x3b2   : > { %9957 = vsyncadd (%p12028_p1), %s2081_s3, 4294967264  ;;  %s2097_s11 = scalar_lea.sflag [#allocation32], %s11064_s8 }
 0x3b3   : > { %9959 = dma.done.wait (%p12028_p1), %s2097_s11, 32  }
 0x3b4   : > { %9961 = vsyncadd (%p12028_p1), %s2097_s11, 4294967264  ;;  %s7864_s5 = sshll.u32 %s11055_s16, 5  ;;  %s2113_s18 = scalar_lea.sflag [#allocation35], %s11064_s8 }
 0x3b5   : > { %s11133_s3 = scalar_lea.vmem [#allocation34], %s7864_s5 }
 0x3b6   : > { %9963 = dma.done.wait (%p12028_p1), %s2113_s18, 528  }
 0x3b7   : > { %9965 = vsyncadd (%p12028_p1), %s2113_s18, 4294966768  ;;  %s2130_s11 = scalar_lea.sflag [#allocation38], %s11064_s8 }
 0x3b8   : > { %9967 = dma.done.wait (%p12028_p1), %s2130_s11, 32  }
 0x3b9   : > { %9969 = vsyncadd (%p12028_p1), %s2130_s11, 4294967264  ;;  %s2146_s2 = scalar_lea.sflag [#allocation41], %s11064_s8 }
 0x3ba   : > { %9971 = dma.done.wait (%p12028_p1), %s2146_s2, 272  }
 0x3bb   : > { %9973 = vsyncadd (%p12028_p1), %s2146_s2, 4294967024  ;;  %s11153_s18 = scalar_lea.vmem [#allocation42], %s7863_s17  ;;  %s2163_s4 = scalar_lea.sflag [#allocation44], %s11064_s8 }
 0x3bc   : > { %9975 = dma.done.wait (%p12028_p1), %s2163_s4, 32  }
 0x3bd   : > { %9977 = vsyncadd (%p12028_p1), %s2163_s4, 4294967264  ;;  %s2179_s12 = scalar_lea.sflag [#allocation47], %s11064_s8 }
 0x3be   : > { %9979 = dma.done.wait (%p12028_p1), %s2179_s12, 528  }
 0x3bf   : > { %9981 = vsyncadd (%p12028_p1), %s2179_s12, 4294966768  ;;  %s11168_s2 = scalar_lea.vmem [#allocation48], %s7864_s5  ;;  %s2196_s17 = scalar_lea.sflag [#allocation50], %s11055_s16 }
 0x3c0   : > { %9983 = dma.done.wait (%p12028_p1), %s2196_s17, 16  }
 0x3c1   : > { %9985 = vsyncadd (%p12028_p1), %s2196_s17, 4294967280  ;;  %s12030_s8 = sld [smem:[#allocation74_spill]]  ;;  %s12031_s4 = sld [smem:[#allocation76_spill]] }
 0x3c2   : > { %s12032_s14 = sld [smem:[#allocation78_spill]]  ;;  %s12033_s11 = sld [smem:[#allocation82_spill]] }
 0x3c3   : > { %s12034_s20 = sld [smem:[#allocation86_spill]]  ;;  %s12035_s12 = sld [smem:[#allocation88_spill]] }
 0x3c4   : > { %s12036_s10 = sld [smem:[#allocation90_spill]]  ;;  %s12037_s15 = sld [smem:[#allocation92_spill]] }
 0x3c5   : > { %s12038_s9 = sld [smem:[#allocation100_spill]]  ;;  %s12039_s5 = sld [smem:[#allocation104_spill]] }
 0x3c6   : > { %p2469_p4 = scmp.lt.s32.totalorder %s12029_s26, 1  ;;  %p7887_p8 = scmp.ne.s32.totalorder %s12029_s26, 0 }
 0x3c7   : > { %vm2525_vm0 = vcmask (!%p7887_p8), 261120  }
 0x3c8   : > { %s2470_s13 = scalar_select %p2469_p4, %s12029_s26, 1 }
 0x3ca   : > { %s8012_s1 = sshll.u32 %s2470_s13, 5  ;;  %s8015_s19 = sshll.u32 %s2470_s13, 4 }
 0x3cb   : > { %s2473_s21 = scalar_lea.vmem %s12030_s8, %s8012_s1  ;;  %s2478_s22 = scalar_lea.vmem %s12031_s4, %s8012_s1 }
 0x3cc   : > { %s11181_s6 = scalar_lea.vmem %s12032_s14, %s8012_s1  ;;  %s11184_s17 = scalar_lea.vmem %s12033_s11, %s8015_s19 }
 0x3cd   : > { %s11187_s23 = scalar_lea.vmem %s12034_s20, %s8012_s1  ;;  %s11190_s24 = scalar_lea.vmem %s12035_s12, %s8012_s1 }
 0x3ce   : > { %s11193_s25 = scalar_lea.vmem %s12036_s10, %s8012_s1  ;;  %s11196_s27 = scalar_lea.vmem %s12037_s15, %s8012_s1 }
 0x3cf   : > { %s11199_s28 = scalar_lea.vmem %s12038_s9, %s8012_s1  ;;  %s8021_s29 = sshll.u32 %s2470_s13, 6 }
 0x3d0   : > { %s11202_s30 = scalar_lea.vmem %s12039_s5, %s8021_s29  ;;  %2522 = sbr.rel (%p7887_p8) target bundleno = 985 (0x3d9), region = 324 }
 0x3d1   : > { %s12040_s14 = sld [smem:[#allocation69_spill]] (!%p7887_p8) }
 0x3d7   : > { %v2523_v0 = vld [vmem:[%s12040_s14] sm:$0xff]  ;;  %v2524_v1 = vld [vmem:[%s12040_s14 + $0x8] sm:$0xff] }
 0x3d8   : > { %2526 = vst.msk [vmem:[#allocation51] sm:$0xff] %vm2525_vm0, %v2523_v0  ;;  %2527 = vst.msk [vmem:[#allocation51 + $0x8] sm:$0xff] %vm2525_vm0, %v2524_v1 }
 0x3d9 PF: > { %v2638_v2 = vld [vmem:[%s2478_s22] sm:$0xff]  ;;  %v2639_v3 = vld [vmem:[%s2478_s22 + $0x8] sm:$0xff]  ;;  %vm2556_vm1 = vcmask 261120   ;;  %v2640_v7 = vld [vmem:[%s2478_s22 + $0x10] sm:$0xff]  ;;  %v10083_v16 = vmov 0.0   ;;  %vm10084_vm2 = vmmov 0  }
 0x3da   : > { %v2545_v4 = vld [vmem:[%s2473_s21] sm:$0xff]  ;;  %v8536_v5 = vpack.c.bf16 %v2639_v3, %v2638_v2  ;;  %v2546_v6 = vld [vmem:[%s2473_s21 + $0x8] sm:$0xff]  ;;  %v2641_v8 = vld [vmem:[%s2478_s22 + $0x18] sm:$0xff]  ;;  %s12041_s9 = scalar_lea.vmem [#allocation7], %s11055_s16  ;;  %s12042_s29 = scalar_lea.vmem [#allocation4], %s11055_s16  ;;  %vm2724_vm3 = vcmask 64512  }
 0x3db   : > { %v8528_v9 = vpack.c.bf16 %v2546_v6, %v2545_v4  ;;  %v8540_v10 = vpack.c.bf16 %v2641_v8, %v2640_v7  ;;  %v2547_v11 = vld [vmem:[%s2473_s21 + $0x10] sm:$0xff]  ;;  %v2548_v12 = vld [vmem:[%s2473_s21 + $0x18] sm:$0xff]  ;;  %v7892_v17 = vld [vmem:[%s12041_s9] ss:$0 sm:$0xff]  ;;  %s10085_s19 = smov 112   ;;  %s10086_s22 = smov 120  }
 0x3dc   : > { %8537 = vmatprep.subr.bf16.mxu1 %v8536_v5  ;;  %v8532_v14 = vpack.c.bf16 %v2548_v12, %v2547_v11  ;;  %v7889_v21 = vld [vmem:[%s12042_s29] ss:$0 sm:$0xff]  ;;  %s10087_s13 = smov 104   ;;  %s10088_s21 = smov 88   ;;  %vm4197_vm6 = vcmask 130048   ;;  %vm3063_vm7 = vcmask 130112   ;;  %vm11477_vm10 = vmpackc.low %vm2724_vm3, %vm2724_vm3 }
 0x3dd   : > { %8539 = vmatpush3.bf16.msra.mxu1 %v8536_v5  ;;  %8529 = vmatprep.subr.bf16.mxu0 %v8528_v9  ;;  %s10089_s10 = smov 96   ;;  %s12043_s26 = sld [smem:[#allocation72_spill]]  ;;  %vm3236_vm8 = vcmask 195712   ;;  %vm3409_vm9 = vcmask 261312   ;;  %vm6658_vm14 = vcmask 523264  }
 0x3de   : > { %8531 = vmatpush3.bf16.msra.mxu0 %v8528_v9  ;;  %8541 = vmatprep.subr.bf16.mxu1 %v8540_v10  ;;  %s10090_s15 = smov 72   ;;  %s10091_s20 = smov 80  }
 0x3df   : > { %v11207_v13 = vld [vmem:[#allocation51] sm:$0xff]  ;;  %8533 = vmatprep.subr.bf16.mxu0 %v8532_v14  ;;  %v11213_v15 = vld [vmem:[#allocation51 + $0x8] sm:$0xff]  ;;  %s10092_s1 = smov 8   ;;  %s10093_s11 = smov 16  }
 0x3e0   : > { %8202 = vmatprep.mubr.msk.f32.mxu1 %vm2556_vm1, %v11207_v13  ;;  %8191 = vmatprep.mubr.msk.f32.mxu0 %vm2556_vm1, %v11207_v13  ;;  %s10094_s8 = smov 24   ;;  %s12044_s4 = sld [smem:[#allocation71_spill]] }
 0x3e1   : > { %8543 = vmatpush3.bf16.msra.mxu1 %v8540_v10  ;;  %s12045_s12 = scalar_lea.vmem [#allocation9], %s11055_s16  ;;  %s12046_s5 = scalar_lea.vmem [#allocation13], %s11055_s16 }
 0x3e2   : > { %8535 = vmatpush3.bf16.msra.mxu0 %v8532_v14  ;;  %8210 = vmatprep.subr.mxu1 %v10083_v16  ;;  %s12050_s9 = sld [smem:[#allocation70_spill]]  ;;  %s12053_s29 = scalar_lea.vmem [#allocation21], %s11055_s16 }
 0x3e3   : > { %8205 = vmatprep.subr.mxu0 %v10083_v16  ;;  %v2540_v40 = vld [vmem:[%s12043_s26] sm:$0xff]  ;;  %v2541_v59 = vld [vmem:[%s12043_s26 + $0x8] sm:$0xff] }
 0x3e4   : > { %8203 = vmatmul.mubr.msk.f32.vlgmr.msra.gmra.mrb[0].mxu1 %vm2556_vm1, %v11213_v15  ;;  %vm2802_vm4 = vcmp.eq.f32.partialorder %v2540_v40, 0.0  ;;  %vm3488_vm5 = vcmp.eq.f32.partialorder %v2541_v59, 0.0 }
 0x3e5   : > { %8192 = vmatmul.mubr.msk.f32.vlgmr.msra.gmra.mrb[0].mxu0 %vm2556_vm1, %v11213_v15  ;;  %8212 = vmatprep.mubr.msk.f32.mxu1 %vm10084_vm2, %v10083_v16 }
 0x3e6   : > { %8207 = vmatprep.mubr.msk.f32.mxu0 %vm10084_vm2, %v10083_v16 }
 0x4b7   : > { %v8204_v18 = vpop.f32.mrb[0].mxu1 }
 0x4b8   : > { %v2715_v19 = vpop.f32.mrb[1].mxu1  ;;  %v8193_v20 = vpop.f32.mrb[0].mxu0  ;;  %v11246_v26 = vadd.f32 %v8204_v18, %v7892_v17 }
 0x4b9   : > { %v11229_v22 = vadd.f32 %v7892_v17, %v2715_v19  ;;  %v2629_v23 = vpop.f32.mrb[1].mxu0  ;;  %v2635_v25 = vadd.f32 %v8193_v20, %v7889_v21 }
 0x4ba   : > { %v2630_v24 = vadd.f32 %v7889_v21, %v2629_v23 }
 0x4bb   : > { %3067 = vrot.lane.b32.xlu1 %v11229_v22, %s10085_s19  ;;  %2894 = vrot.lane.b32.xlu0 %v11229_v22, %s10086_s22 }
 0x4bc   : > { %8206 = vmatpush3.xpose.msk.msra.mxu0 %vm2724_vm3, %v11229_v22 }
 0x4bd   : > { %8215 = vmatprep.subr.mxu0 %v10083_v16 }
 0x4bf   : > { %8208 = vmatmul.mubr.msk.f32.vlgmr.msra.gmra.mrb[2].mxu0 %vm2724_vm3, %v2630_v24  ;;  %3065 = vrot.lane.b32.xlu1 %v2630_v24, %s10085_s19 }
 0x4c0   : > { %2892 = vrot.lane.b32.xlu0 %v2630_v24, %s10086_s22  ;;  %8217 = vmatprep.mubr.msk.f32.mxu0 %vm10084_vm2, %v10083_v16 }
 0x4c3   : > { %3238 = vrot.lane.b32.xlu1 %v2630_v24, %s10087_s13 }
 0x4c4   : > { %3240 = vrot.lane.b32.xlu0 %v11229_v22, %s10087_s13 }
 0x4c7   : > { %3578 = vrot.lane.b32.xlu1 %v2635_v25, %s10086_s22 }
 0x4c8   : > { %3580 = vrot.lane.b32.xlu0 %v11246_v26, %s10086_s22 }
 0x4cb   : > { %3750 = vrot.lane.b32.xlu1 %v2635_v25, %s10085_s19 }
 0x4cc   : > { %3752 = vrot.lane.b32.xlu0 %v11246_v26, %s10085_s19 }
 0x4cf   : > { %3922 = vrot.lane.b32.xlu1 %v2635_v25, %s10087_s13 }
 0x4d0   : > { %3924 = vrot.lane.b32.xlu0 %v11246_v26, %s10087_s13 }
 0x4d3   : > { %2983 = vrot.lane.b32.xlu1 %v11229_v22, %s10088_s21 }
 0x4d4   : > { %2815 = vrot.lane.b32.xlu0 %v11229_v22, %s10089_s10 }
 0x52d   : > { %v3068_v27 = vpop.permute.xlu1 %3067  ;;  %v2895_v28 = vpop.permute.xlu0 %2894 }
 0x52e   : > { %8216 = vmatpush3.xpose.msk.msra.mxu0 %vm2724_vm3, %v2895_v28 }
 0x52f   : > { %8225 = vmatprep.subr.mxu0 %v10083_v16 }
 0x531   : > { %v3066_v29 = vpop.permute.xlu1 %3065 }
 0x532   : > { %v2893_v30 = vpop.permute.xlu0 %2892 }
 0x533   : > { %8218 = vmatmul.mubr.msk.f32.vlgmr.msra.gmra.mrb[4].mxu0 %vm2724_vm3, %v2893_v30 }
 0x534   : > { %8226 = vmatpush3.xpose.msk.msra.mxu0 %vm2724_vm3, %v3068_v27  ;;  %8227 = vmatprep.mubr.msk.f32.mxu0 %vm10084_vm2, %v10083_v16 }
 0x535   : > { %8235 = vmatprep.subr.mxu0 %v10083_v16  ;;  %v3239_v32 = vpop.permute.xlu1 %3238 }
 0x536   : > { %v3241_v31 = vpop.permute.xlu0 %3240 }
 0x537   : > { %8228 = vmatmul.mubr.msk.f32.vlgmr.msra.gmra.mrb[6].mxu0 %vm2724_vm3, %v3066_v29 }
 0x538   : > { %8236 = vmatpush3.xpose.msk.msra.mxu0 %vm2724_vm3, %v3241_v31  ;;  %8237 = vmatprep.mubr.msk.f32.mxu0 %vm10084_vm2, %v10083_v16 }
 0x539   : > { %8245 = vmatprep.subr.mxu0 %v10083_v16  ;;  %v3579_v34 = vpop.permute.xlu1 %3578 }
 0x53a   : > { %v3581_v33 = vpop.permute.xlu0 %3580 }
 0x53b   : > { %8238 = vmatmul.mubr.msk.f32.vlgmr.msra.gmra.mrb[8].mxu0 %vm2724_vm3, %v3239_v32 }
 0x53c   : > { %8246 = vmatpush3.xpose.msk.msra.mxu0 %vm2724_vm3, %v11246_v26  ;;  %8247 = vmatprep.mubr.msk.f32.mxu0 %vm10084_vm2, %v10083_v16 }
 0x53d   : > { %8255 = vmatprep.subr.mxu0 %v10083_v16  ;;  %v3751_v37 = vpop.permute.xlu1 %3750 }
 0x53e   : > { %v3753_v35 = vpop.permute.xlu0 %3752 }
 0x53f   : > { %8248 = vmatmul.mubr.msk.f32.vlgmr.msra.gmra.mrb[10].mxu0 %vm2724_vm3, %v2635_v25 }
 0x540   : > { %8256 = vmatpush3.xpose.msk.msra.mxu0 %vm2724_vm3, %v3581_v33  ;;  %8257 = vmatprep.mubr.msk.f32.mxu0 %vm10084_vm2, %v10083_v16 }
 0x541   : > { %8265 = vmatprep.subr.mxu0 %v10083_v16  ;;  %v3923_v39 = vpop.permute.xlu1 %3922 }
 0x542   : > { %v3925_v36 = vpop.permute.xlu0 %3924 }
 0x543   : > { %8258 = vmatmul.mubr.msk.f32.vlgmr.msra.gmra.mrb[12].mxu0 %vm2724_vm3, %v3579_v34 }
 0x544   : > { %8266 = vmatpush3.xpose.msk.msra.mxu0 %vm2724_vm3, %v3753_v35  ;;  %8267 = vmatprep.mubr.msk.f32.mxu0 %vm10084_vm2, %v10083_v16 }
 0x545   : > { %8275 = vmatprep.subr.mxu0 %v10083_v16  ;;  %v2984_v28 = vpop.permute.xlu1 %2983 }
 0x546   : > { %v2816_v38 = vpop.permute.xlu0 %2815 }
 0x547   : > { %8211 = vmatpush3.msra.mxu1 %v2816_v38  ;;  %8268 = vmatmul.mubr.msk.f32.vlgmr.msra.gmra.mrb[14].mxu0 %vm2724_vm3, %v3751_v37 }
 0x548   : > { %8276 = vmatpush3.xpose.msk.msra.mxu0 %vm2724_vm3, %v3925_v36  ;;  %8277 = vmatprep.mubr.msk.f32.mxu0 %vm10084_vm2, %v10083_v16 }
 0x549   : > { %8220 = vmatprep.subr.mxu1 %v10083_v16 }
 0x54b   : > { %8278 = vmatmul.mubr.msk.f32.vlgmr.msra.gmra.mrb[16].mxu0 %vm2724_vm3, %v3923_v39 }
 0x592   : > { %v2797_v41 = vpop.f32.mrb[2].mxu0 }
 0x593   : > { %v2801_v42 = vmul.f32 0.35355338, %v2797_v41  ;;  %v8209_v43 = vpop.f32.mrb[3].mxu0 }
 0x595   : > { %v2803_v44 = vsel %vm2802_vm4, -1e+09, %v2801_v42 }
 0x596   : > { %v2804_v45 = vsel %vm2724_vm3, %v2803_v44, -inf }
 0x597   : > { %2805 = vmax.xlane.f32.xlu0 %v2804_v45 }
 0x606   : > { %v2966_v46 = vpop.f32.mrb[4].mxu0 }
 0x607   : > { %v2970_v47 = vmul.f32 0.35355338, %v2966_v46  ;;  %v8219_v48 = vpop.f32.mrb[5].mxu0 }
 0x609   : > { %v2971_v49 = vsel %vm2802_vm4, -1e+09, %v2970_v47 }
 0x60a   : > { %v3139_v50 = vpop.f32.mrb[6].mxu0  ;;  %v2972_v51 = vsel %vm2724_vm3, %v2971_v49, -inf }
 0x60b   : > { %v3143_v52 = vmul.f32 0.35355338, %v3139_v50  ;;  %v8229_v53 = vpop.f32.mrb[7].mxu0  ;;  %2973 = vmax.xlane.f32.xlu1 %v2972_v51 }
 0x60d   : > { %v3144_v54 = vsel %vm2802_vm4, -1e+09, %v3143_v52 }
 0x60e   : > { %v3312_v55 = vpop.f32.mrb[8].mxu0  ;;  %v3145_v56 = vsel %vm2724_vm3, %v3144_v54, -inf }
 0x60f   : > { %v3316_v57 = vmul.f32 0.35355338, %v3312_v55  ;;  %v8239_v58 = vpop.f32.mrb[9].mxu0  ;;  %3146 = vmax.xlane.f32.xlu0 %v3145_v56 }
 0x611   : > { %v3317_v60 = vsel %vm2802_vm4, -1e+09, %v3316_v57 }
 0x612   : > { %v3483_v61 = vpop.f32.mrb[10].mxu0  ;;  %v3318_v62 = vsel %vm2724_vm3, %v3317_v60, -inf }
 0x613   : > { %v3487_v63 = vmul.f32 0.35355338, %v3483_v61  ;;  %v8249_v0 = vpop.f32.mrb[11].mxu0  ;;  %3319 = vmax.xlane.f32.xlu0 %v3318_v62 }
 0x615   : > { %v3489_v1 = vsel %vm3488_vm5, -1e+09, %v3487_v63 }
 0x616   : > { %v3652_v2 = vpop.f32.mrb[12].mxu0  ;;  %v3490_v3 = vsel %vm2724_vm3, %v3489_v1, -inf }
 0x617   : > { %v3656_v4 = vmul.f32 0.35355338, %v3652_v2  ;;  %v8259_v5 = vpop.f32.mrb[13].mxu0  ;;  %3491 = vmax.xlane.f32.xlu1 %v3490_v3 }
 0x619   : > { %v3657_v6 = vsel %vm3488_vm5, -1e+09, %v3656_v4 }
 0x61a   : > { %v3824_v7 = vpop.f32.mrb[14].mxu0  ;;  %v3658_v8 = vsel %vm2724_vm3, %v3657_v6, -inf }
 0x61b   : > { %v3828_v9 = vmul.f32 0.35355338, %v3824_v7  ;;  %v8269_v10 = vpop.f32.mrb[15].mxu0  ;;  %3659 = vmax.xlane.f32.xlu0 %v3658_v8 }
 0x61d   : > { %v3829_v11 = vsel %vm3488_vm5, -1e+09, %v3828_v9 }
 0x61e   : > { %v3996_v12 = vpop.f32.mrb[16].mxu0  ;;  %v3830_v14 = vsel %vm2724_vm3, %v3829_v11, -inf }
 0x61f   : > { %v4000_v17 = vmul.f32 0.35355338, %v3996_v12  ;;  %v8279_v18 = vpop.f32.mrb[17].mxu0  ;;  %3831 = vmax.xlane.f32.xlu1 %v3830_v14 }
 0x621   : > { %v4001_v19 = vsel %vm3488_vm5, -1e+09, %v4000_v17 }
 0x622   : > { %v4002_v20 = vsel %vm2724_vm3, %v4001_v19, -inf }
 0x623   : > { %4003 = vmax.xlane.f32.xlu0 %v4002_v20 }
 0x624   : > { %v2806_v21 = vpop.xlane.xlu0 %2805 }
 0x625   : > { %v2807_v23 = vsub.f32 %v2803_v44, %v2806_v21 }
 0x627   : > { %v2808_v24 = vmul.f32 1.442695, %v2807_v23 }
 0x629   : > { %8920 = vpow2.f32 %v2808_v24 }
 0x630   : > { %3329 = vrot.lane.b32.xlu1 %v11229_v22, %s10090_s15 }
 0x633   : > { %v8921_v25 = vpop.eup %8920 }
 0x634   : > { %v2810_v27 = vsel %vm2724_vm3, %v8921_v25, 0.0 }
 0x639   : > { %3156 = vrot.lane.b32.xlu0 %v11229_v22, %s10091_s20 }
 0x654   : > { %2811 = vadd.xlane.f32.xlu1 %v2810_v27 }
 0x698   : > { %v2974_v29 = vpop.xlane.xlu1 %2973 }
 0x699   : > { %v2975_v30 = vsub.f32 %v2971_v49, %v2974_v29 }
 0x69b   : > { %v2976_v31 = vmul.f32 1.442695, %v2975_v30 }
 0x69c   : > { %v3147_v32 = vpop.xlane.xlu0 %3146 }
 0x69d   : > { %8922 = vpow2.f32 %v2976_v31  ;;  %v3148_v33 = vsub.f32 %v3144_v54, %v3147_v32 }
 0x69f   : > { %v3149_v34 = vmul.f32 1.442695, %v3148_v33 }
 0x6a0   : > { %v3320_v35 = vpop.xlane.xlu0 %3319 }
 0x6a1   : > { %8924 = vpow2.f32 %v3149_v34  ;;  %v3321_v36 = vsub.f32 %v3317_v60, %v3320_v35 }
 0x6a3   : > { %v3322_v22 = vmul.f32 1.442695, %v3321_v36 }
 0x6a4   : > { %v3492_v43 = vpop.xlane.xlu1 %3491 }
 0x6a5   : > { %8926 = vpow2.f32 %v3322_v22  ;;  %v3493_v44 = vsub.f32 %v3489_v1, %v3492_v43 }
 0x6a7   : > { %v8923_v37 = vpop.eup %8922  ;;  %v3494_v48 = vmul.f32 1.442695, %v3493_v44 }
 0x6a8   : > { %v2978_v38 = vsel %vm2724_vm3, %v8923_v37, 0.0  ;;  %v3660_v45 = vpop.xlane.xlu0 %3659 }
 0x6a9   : > { %2979 = vadd.xlane.f32.xlu0 %v2978_v38  ;;  %v3661_v47 = vsub.f32 %v3657_v6, %v3660_v45  ;;  %8928 = vpow2.f32 %v3494_v48  ;;  %v4098_v45 = vld [vmem:[%s11181_s6 + $0x10] sm:$0xff] }
 0x6ab   : > { %v8925_v39 = vpop.eup %8924  ;;  %v3662_v51 = vmul.f32 1.442695, %v3661_v47 }
 0x6ac   : > { %v3151_v40 = vsel %vm2724_vm3, %v8925_v39, 0.0  ;;  %v3832_v46 = vpop.xlane.xlu1 %3831 }
 0x6ad   : > { %3152 = vadd.xlane.f32.xlu1 %v3151_v40  ;;  %v3833_v49 = vsub.f32 %v3829_v11, %v3832_v46  ;;  %8930 = vpow2.f32 %v3662_v51  ;;  %v4096_v40 = vld [vmem:[%s11181_s6] sm:$0xff]  ;;  %v4099_v46 = vld [vmem:[%s11181_s6 + $0x18] sm:$0xff] }
 0x6ae   : > { %v8548_v47 = vpack.c.bf16 %v4099_v46, %v4098_v45  ;;  %v4188_v51 = vld [vmem:[%s11184_s17] sm:$0xff] }
 0x6af   : > { %v11320_v41 = vpop.eup %8926  ;;  %v3834_v52 = vmul.f32 1.442695, %v3833_v49 }
 0x6b0   : > { %v3324_v42 = vsel %vm2724_vm3, %v11320_v41, 0.0  ;;  %v4004_v50 = vpop.xlane.xlu0 %4003  ;;  %v3330_v55 = vpop.permute.xlu1 %3329 }
 0x6b1   : > { %3325 = vadd.xlane.f32.xlu0 %v3324_v42  ;;  %v4005_v53 = vsub.f32 %v4001_v19, %v4004_v50  ;;  %8932 = vpow2.f32 %v3834_v52  ;;  %v4189_v52 = vld [vmem:[%s11184_s17 + $0x8] sm:$0xff]  ;;  %s12049_s17 = scalar_lea.vmem [#allocation18], %s11055_s16 }
 0x6b3   : > { %v4006_v54 = vmul.f32 1.442695, %v4005_v53  ;;  %v8929_v56 = vpop.eup %8928  ;;  %v2528_v53 = vld [vmem:[%s12044_s4] sm:$0x3]  ;;  %s12056_s4 = scalar_lea.vmem [#allocation19], %s11055_s16 }
 0x6b4   : > { %v3496_v59 = vsel %vm2724_vm3, %v8929_v56, 0.0  ;;  %v3157_v3 = vpop.permute.xlu0 %3156 }
 0x6b5   : > { %8934 = vpow2.f32 %v4006_v54 }
 0x6b7   : > { %v11328_v57 = vpop.eup %8930 }
 0x6b8   : > { %v3664_v62 = vsel %vm2724_vm3, %v11328_v57, 0.0 }
 0x6bb   : > { %v11331_v60 = vpop.eup %8932 }
 0x6bc   : > { %v3836_v61 = vsel %vm2724_vm3, %v11331_v60, 0.0 }
 0x6be   : > { %3669 = vrot.lane.b32.xlu1 %v11246_v26, %s10088_s21 }
 0x6bf   : > { %v11337_v63 = vpop.eup %8934 }
 0x6c0   : > { %v4008_v0 = vsel %vm2724_vm3, %v11337_v63, 0.0 }
 0x6c7   : > { %3501 = vrot.lane.b32.xlu0 %v11246_v26, %s10089_s10 }
 0x6e1   : > { %v2812_v58 = vpop.xlane.xlu1 %2811 }
 0x6e2   : > { %8936 = vrcp.f32 %v2812_v58  ;;  %3497 = vadd.xlane.f32.xlu1 %v3496_v59 }
 0x6e6   : > { %3837 = vadd.xlane.f32.xlu1 %v3836_v61  ;;  %3665 = vadd.xlane.f32.xlu0 %v3664_v62 }
 0x6ea   : > { %4009 = vadd.xlane.f32.xlu1 %v4008_v0 }
 0x6ec   : > { %v8937_v1 = vpop.eup %8936 }
 0x6ed   : > { %v2814_v2 = vmul.f32 %v8937_v1, %v8921_v25 }
 0x6ef   : > { %8213 = vmatmul.mubr.msk.f32.vlgmr.msra.gmra.mrb[2].mxu1 %vm2724_vm3, %v2814_v2 }
 0x6f0   : > { %8221 = vmatpush3.msra.mxu1 %v2984_v28  ;;  %8222 = vmatprep.mubr.msk.f32.mxu1 %vm10084_vm2, %v10083_v16 }
 0x6f1   : > { %8230 = vmatprep.subr.mxu1 %v10083_v16 }
 0x6fb   : > { %4013 = vrot.lane.b32.xlu1 %v11246_v26, %s10090_s15 }
 0x6fc   : > { %3841 = vrot.lane.b32.xlu0 %v11246_v26, %s10091_s20 }
 0x736   : > { %v2980_v4 = vpop.xlane.xlu0 %2979 }
 0x737   : > { %8938 = vrcp.f32 %v2980_v4 }
 0x73a   : > { %v3153_v5 = vpop.xlane.xlu1 %3152 }
 0x73b   : > { %8940 = vrcp.f32 %v3153_v5 }
 0x73e   : > { %v3326_v6 = vpop.xlane.xlu0 %3325  ;;  %v3670_v14 = vpop.permute.xlu1 %3669 }
 0x73f   : > { %8942 = vrcp.f32 %v3326_v6 }
 0x741   : > { %v8939_v7 = vpop.eup %8938 }
 0x742   : > { %v2982_v8 = vmul.f32 %v8939_v7, %v8923_v37  ;;  %v3502_v12 = vpop.permute.xlu0 %3501 }
 0x744   : > { %8223 = vmatmul.mubr.msk.f32.vlgmr.msra.gmra.mrb[4].mxu1 %vm2724_vm3, %v2982_v8  ;;  %v7919_v8 = vld [vmem:[%s12045_s12] ss:$0 sm:$0xff]  ;;  %s12057_s12 = sld [smem:[#allocation73_spill]] }
 0x745   : > { %v8941_v9 = vpop.eup %8940  ;;  %8231 = vmatpush3.msra.mxu1 %v3157_v3  ;;  %8232 = vmatprep.mubr.msk.f32.mxu1 %vm10084_vm2, %v10083_v16 }
 0x746   : > { %v3155_v10 = vmul.f32 %v8941_v9, %v8925_v39  ;;  %8240 = vmatprep.subr.mxu1 %v10083_v16 }
 0x748   : > { %8233 = vmatmul.mubr.msk.f32.vlgmr.msra.gmra.mrb[6].mxu1 %vm2724_vm3, %v3155_v10 }
 0x749   : > { %v8943_v26 = vpop.eup %8942  ;;  %8241 = vmatpush3.msra.mxu1 %v3330_v55  ;;  %8242 = vmatprep.mubr.msk.f32.mxu1 %vm10084_vm2, %v10083_v16  ;;  %v10095_v55 = vmov 0.0|0.0  }
 0x74a   : > { %v3328_v11 = vmul.f32 %v8943_v26, %v11320_v41  ;;  %8250 = vmatprep.subr.mxu1 %v10083_v16  ;;  %v4097_v41 = vld [vmem:[%s11181_s6 + $0x8] sm:$0xff]  ;;  %s12047_s6 = scalar_lea.vmem [#allocation15], %s11055_s16 }
 0x74b   : > { %v8544_v43 = vpack.c.bf16 %v4097_v41, %v4096_v40  ;;  %v4365_v40 = vld [vmem:[%s11187_s23 + $0x10] sm:$0xff] }
 0x74c   : > { %8243 = vmatmul.mubr.msk.f32.vlgmr.msra.gmra.mrb[8].mxu1 %vm2724_vm3, %v3328_v11 }
 0x74d   : > { %8251 = vmatpush3.msra.mxu1 %v3502_v12  ;;  %8252 = vmatprep.mubr.msk.f32.mxu1 %vm10084_vm2, %v10083_v16 }
 0x74e   : > { %8260 = vmatprep.subr.mxu1 %v10083_v16  ;;  %8545 = vmatprep.subr.bf16.mxu0 %v8544_v43 }
 0x74f   : > { %8547 = vmatpush3.bf16.msra.mxu0 %v8544_v43 }
 0x750   : > { %8549 = vmatprep.subr.bf16.mxu0 %v8548_v47 }
 0x753   : > { %8551 = vmatpush3.bf16.msra.mxu0 %v8548_v47 }
 0x76f   : > { %v3498_v17 = vpop.xlane.xlu1 %3497 }
 0x770   : > { %8944 = vrcp.f32 %v3498_v17  ;;  %v7922_v17 = vld [vmem:[%s12046_s5] ss:$0 sm:$0xff]  ;;  %s10097_s5 = smov [#allocation51]  }
 0x773   : > { %v3838_v18 = vpop.xlane.xlu1 %3837  ;;  %v3666_v19 = vpop.xlane.xlu0 %3665 }
 0x774   : > { %8946 = vrcp.f32 %v3666_v19  ;;  %v4317_v19 = vlaneseq }
 0x775   : > { %8948 = vrcp.f32 %v3838_v18 }
 0x777   : > { %v4010_v20 = vpop.xlane.xlu1 %4009  ;;  %v3842_v28 = vpop.permute.xlu0 %3841 }
 0x778   : > { %8950 = vrcp.f32 %v4010_v20 }
 0x77a   : > { %v8945_v21 = vpop.eup %8944 }
 0x77b   : > { %v3500_v23 = vmul.f32 %v8945_v21, %v8929_v56  ;;  %v4014_v31 = vpop.permute.xlu1 %4013  ;;  %v8553_v56 = vpack.c.bf16 %v4189_v52, %v4188_v51  ;;  %v7924_v51 = vld [vmem:[%s12047_s6] ss:$0 sm:$0xff]  ;;  %s7056_s6 = sshll.u32 %s10097_s5, 4  ;;  %s7057_s6 = int_to_ptr.vmem [resolvable:$true] %s7056_s6 }
 0x77c   : > { %p9887_p3 = scmp.lt.s32.totalorder %s7057_s6, %s7057_s6 }
 0x77d   : > { %8253 = vmatmul.mubr.msk.f32.vlgmr.msra.gmra.mrb[10].mxu1 %vm2724_vm3, %v3500_v23  ;;  %v4318_v23 = vshrl.u32 %v4317_v19, 7 }
 0x77e   : > { %8261 = vmatpush3.msra.mxu1 %v3670_v14  ;;  %8262 = vmatprep.mubr.msk.f32.mxu1 %vm10084_vm2, %v10083_v16  ;;  %v8947_v24 = vpop.eup %8946 }
 0x77f   : > { %8270 = vmatprep.subr.mxu1 %v10083_v16  ;;  %v3668_v25 = vmul.f32 %v8947_v24, %v11328_v57  ;;  %v8949_v27 = vpop.eup %8948  ;;  %v7888_v57 = vmul.f32 -1.442695, %v2528_v53  ;;  %v11413_v24 = vsub.s32 0, %v4318_v23 }
 0x780   : > { %v3840_v29 = vmul.f32 %v8949_v27, %v11331_v60 }
 0x781   : > { %8263 = vmatmul.mubr.msk.f32.vlgmr.msra.gmra.mrb[12].mxu1 %vm2724_vm3, %v3668_v25  ;;  %8952 = vpow2.f32 %v7888_v57 }
 0x782   : > { %8271 = vmatpush3.msra.mxu1 %v3842_v28  ;;  %8272 = vmatprep.mubr.msk.f32.mxu1 %vm10084_vm2, %v10083_v16  ;;  %v8951_v30 = vpop.eup %8950 }
 0x783   : > { %8280 = vmatprep.subr.mxu1 %v10083_v16  ;;  %v4012_v32 = vmul.f32 %v8951_v30, %v11337_v63 }
 0x785   : > { %8273 = vmatmul.mubr.msk.f32.vlgmr.msra.gmra.mrb[14].mxu1 %vm2724_vm3, %v3840_v29 }
 0x786   : > { %8281 = vmatpush3.msra.mxu1 %v4014_v31  ;;  %8282 = vmatprep.mubr.msk.f32.mxu1 %vm10084_vm2, %v10083_v16 }
 0x787   : > { %8552 = vmatprep.subr.bf16.mxu1 %v10095_v55 }
 0x789   : > { %8283 = vmatmul.mubr.msk.f32.vlgmr.msra.gmra.mrb[16].mxu1 %vm2724_vm3, %v4012_v32 }
 0x78a   : > { %8300 = vmatprep.mubr.msk.f32.mxu1 %vm10084_vm2, %v10083_v16  ;;  %8554 = vmatpush3.bf16.msra.mxu1 %v8553_v56 }
 0x78b   : > { %v8953_v60 = vpop.eup %8952 }
 0x78c   : > { %v2532_v61 = vadd.f32 1.0, %v8953_v60 }
 0x78e   : > { %8954 = vrcp.f32 %v2532_v61 }
 0x798   : > { %v8955_v62 = vpop.eup %8954 }
 0x799   : > { %v11395_v63 = vmul.f32 %v8955_v62, %v2528_v53 }
 0x79b   : > { %8301 = vmatmul.mubr.msk.f32.vlgmr.msra.gmra.mrb[18].mxu1 %vm4197_vm6, %v11395_v63 }
 0x7c2   : > { %v2887_v33 = vpop.f32.mrb[2].mxu1 }
 0x7c3   : > { %2891 = vst.msk [vmem:[#allocation2] sm:$0xff] %vm2724_vm3, %v2887_v33  ;;  %v8214_v34 = vpop.f32.mrb[3].mxu1 }
 0x817   : > { %v3055_v35 = vpop.f32.mrb[4].mxu1 }
 0x818   : > { %3060 = vrot.lane.b32.xlu0 %v3055_v35, %s10092_s1  ;;  %v8224_v36 = vpop.f32.mrb[5].mxu1 }
 0x81b   : > { %v3228_v22 = vpop.f32.mrb[6].mxu1 }
 0x81c   : > { %3233 = vrot.lane.b32.xlu1 %v3228_v22, %s10093_s11  ;;  %v8234_v37 = vpop.f32.mrb[7].mxu1  ;;  %v11419_v22 = vsub.s32 1, %v4318_v23 }
 0x81f   : > { %v3401_v38 = vpop.f32.mrb[8].mxu1 }
 0x820   : > { %3406 = vrot.lane.b32.xlu1 %v3401_v38, %s10094_s8  ;;  %v8244_v39 = vpop.f32.mrb[9].mxu1  ;;  %v4363_v38 = vld [vmem:[%s11187_s23] sm:$0xff] }
 0x821   : > { %v4364_v39 = vld [vmem:[%s11187_s23 + $0x8] sm:$0xff] }
 0x822   : > { %v8555_v41 = vpack.c.bf16 %v4364_v39, %v4363_v38 }
 0x824   : > { %8556 = vmatprep.subr.bf16.mxu1 %v8555_v41 }
 0x825   : > { %8558 = vmatpush3.bf16.msra.mxu1 %v8555_v41 }
 0x850   : > { %v3573_v42 = vpop.f32.mrb[10].mxu1 }
 0x851   : > { %3577 = vst.msk [vmem:[#allocation2 + $0x8] sm:$0xff] %vm2724_vm3, %v3573_v42  ;;  %v8254_v44 = vpop.f32.mrb[11].mxu1  ;;  %v4366_v42 = vld [vmem:[%s11187_s23 + $0x18] sm:$0xff]  ;;  %s12048_s23 = scalar_lea.vmem [#allocation16], %s11055_s16 }
 0x852   : > { %v8559_v43 = vpack.c.bf16 %v4366_v42, %v4365_v40 }
 0x854   : > { %v3741_v48 = vpop.f32.mrb[12].mxu1  ;;  %8560 = vmatprep.subr.bf16.mxu1 %v8559_v43 }
 0x855   : > { %3746 = vrot.lane.b32.xlu0 %v3741_v48, %s10092_s1  ;;  %v8264_v49 = vpop.f32.mrb[13].mxu1  ;;  %8562 = vmatpush3.bf16.msra.mxu1 %v8559_v43 }
 0x858   : > { %v3913_v50 = vpop.f32.mrb[14].mxu1 }
 0x859   : > { %3918 = vrot.lane.b32.xlu0 %v3913_v50, %s10093_s11  ;;  %v8274_v54 = vpop.f32.mrb[15].mxu1 }
 0x85a   : > { %v7925_v54 = vld [vmem:[%s12048_s23] ss:$0 sm:$0xff]  ;;  %s9880_s23 = scalar_lea.vmem %s7057_s6, 256 }
 0x85b   : > { %p9881_p2 = scmp.ne.s32.totalorder %s7057_s6, %s9880_s23  ;;  %p9888_p12 = scmp.lt.s32.totalorder %s9880_s23, %s9880_s23 }
 0x85c   : > { %v4085_v58 = vpop.f32.mrb[16].mxu1 }
 0x85d   : > { %4090 = vrot.lane.b32.xlu1 %v4085_v58, %s10094_s8  ;;  %v8284_v59 = vpop.f32.mrb[17].mxu1  ;;  %p9889_p13 = por %p9888_p12, %p9887_p3 }
 0x86e   : > { %v4267_v18 = vpop.f32.mrb[18].mxu1 }
 0x86f   : > { %v8302_v20 = vpop.f32.mrb[19].mxu1  ;;  %v4268_v21 = vadd.f32 %v7922_v17, %v4267_v18 }
 0x871   : > { %v4325_v25 = vrot.slane %v4268_v21, %v11413_v24  ;;  %v4340_v37 = vrot.slane %v4268_v21, %v11419_v22  ;;  %v4316_v52 = vadd.f32 1.0, %v4268_v21  ;;  %v7928_v21 = vld [vmem:[%s12049_s17] ss:$0 sm:$0xff] }
 0x873   : > { %v4320_v59 = vrot.slane %v4316_v52, %v11413_v24 }
 0x88a   : > { %v3061_v0 = vpop.permute.xlu0 %3060 }
 0x88b   : > { %3064 = vst.msk [vmem:[#allocation2] sm:$0xff] %vm3063_vm7, %v3061_v0 }
 0x88e   : > { %v3234_v1 = vpop.permute.xlu1 %3233 }
 0x88f   : > { %3237 = vst.msk [vmem:[#allocation2] sm:$0xff] %vm3236_vm8, %v3234_v1 }
 0x892   : > { %v3407_v2 = vpop.permute.xlu1 %3406 }
 0x893   : > { %3410 = vst.msk [vmem:[#allocation2] sm:$0xff] %vm3409_vm9, %v3407_v2 }
 0x89a   : > { %v4094_v3 = vld [vmem:[#allocation2] sm:$0xff] }
 0x89b   : > { %8293 = vmatprep.mubr.msk.f32.mxu0 %vm2556_vm1, %v4094_v3  ;;  %v4335_v3 = vrot.slane %v4316_v52, %v11419_v22  ;;  %v4503_v52 = vld [vmem:[%s11190_s24 + $0x10] sm:$0xff] }
 0x8c7   : > { %v3747_v4 = vpop.permute.xlu0 %3746 }
 0x8c8   : > { %3749 = vst.msk [vmem:[#allocation2 + $0x8] sm:$0xff] %vm3063_vm7, %v3747_v4 }
 0x8cb   : > { %v3919_v5 = vpop.permute.xlu0 %3918 }
 0x8cc   : > { %3921 = vst.msk [vmem:[#allocation2 + $0x8] sm:$0xff] %vm3236_vm8, %v3919_v5 }
 0x8cf   : > { %v4091_v6 = vpop.permute.xlu1 %4090 }
 0x8d0   : > { %4093 = vst.msk [vmem:[#allocation2 + $0x8] sm:$0xff] %vm3409_vm9, %v4091_v6 }
 0x8d7   : > { %v4095_v7 = vld [vmem:[#allocation2 + $0x8] sm:$0xff] }
 0x8d8   : > { %8294 = vmatmul.mubr.msk.f32.vlgmr.msra.gmra.mrb[18].mxu0 %vm2556_vm1, %v4095_v7 }
 0x9ab   : > { %v8295_v9 = vpop.f32.mrb[18].mxu0 }
 0x9ac   : > { %v4185_v10 = vadd.f32 %v8295_v9, %v7919_v8  ;;  %v4179_v26 = vpop.f32.mrb[19].mxu0 }
 0x9ad   : > { %v4180_v11 = vadd.f32 %v7919_v8, %v4179_v26 }
 0x9ae   : > { %v4276_v12 = vsel %vm2556_vm1, %v4185_v10, 0.0 }
 0x9af   : > { %4277 = vadd.xlane.f32.xlu1 %v4276_v12  ;;  %v4273_v14 = vsel %vm2556_vm1, %v4180_v11, 0.0 }
 0x9b0   : > { %4274 = vadd.xlane.f32.xlu0 %v4273_v14 }
 0x9c0   : > { %4327 = vrot.lane.b32.xlu1 %v4325_v25, %s10089_s10 }
 0xa3c   : > { %v4278_v27 = vpop.xlane.xlu1 %4277 }
 0xa3d   : > { %v4281_v28 = vmul.f32 0.03125, %v4278_v27  ;;  %v4275_v29 = vpop.xlane.xlu0 %4274 }
 0xa3e   : > { %v4280_v30 = vmul.f32 0.03125, %v4275_v29 }
 0xa3f   : > { %v4283_v31 = vsub.f32 %v4185_v10, %v4281_v28 }
 0xa40   : > { %v4282_v32 = vsub.f32 %v4180_v11, %v4280_v30  ;;  %v4328_v61 = vpop.permute.xlu1 %4327 }
 0xa41   : > { %v4285_v35 = vmul.f32 %v4283_v31, %v4283_v31 }
 0xa42   : > { %v4284_v33 = vmul.f32 %v4282_v32, %v4282_v32 }
 0xa43   : > { %v4289_v36 = vsel %vm2556_vm1, %v4285_v35, 0.0 }
 0xa44   : > { %v4286_v34 = vsel %vm2556_vm1, %v4284_v33, 0.0  ;;  %v4593_v33 = vld [vmem:[%s11193_s25] sm:$0xff] }
 0xa45   : > { %4287 = vadd.xlane.f32.xlu0 %v4286_v34  ;;  %v4594_v34 = vld [vmem:[%s11193_s25 + $0x8] sm:$0xff] }
 0xa46   : > { %v8571_v35 = vpack.c.bf16 %v4594_v34, %v4593_v33 }
 0xa48   : > { %8572 = vmatprep.subr.bf16.mxu1 %v8571_v35 }
 0xa49   : > { %4290 = vadd.xlane.f32.xlu0 %v4289_v36 }
 0xa5f   : > { %4342 = vrot.lane.b32.xlu0 %v4340_v37, %s10089_s10 }
 0xad2   : > { %v4288_v44 = vpop.xlane.xlu0 %4287 }
 0xad3   : > { %v4292_v45 = vmul.f32 0.03125, %v4288_v44  ;;  %v4595_v44 = vld [vmem:[%s11193_s25 + $0x10] sm:$0xff] }
 0xad5   : > { %v4294_v46 = vadd.f32 1e-05, %v4292_v45  ;;  %v4596_v45 = vld [vmem:[%s11193_s25 + $0x18] sm:$0xff]  ;;  %s12051_s25 = scalar_lea.vmem [#allocation10], %s11055_s16 }
 0xad6   : > { %v4291_v47 = vpop.xlane.xlu0 %4290 }
 0xad7   : > { %8956 = vrsqrt.f32 %v4294_v46  ;;  %v4293_v48 = vmul.f32 0.03125, %v4291_v47  ;;  %v8575_v46 = vpack.c.bf16 %v4596_v45, %v4595_v44  ;;  %v2536_v47 = vld [vmem:[%s12050_s9] sm:$0xff]  ;;  %v10096_v44 = vmov 0  }
 0xad9   : > { %v4295_v49 = vadd.f32 1e-05, %v4293_v48  ;;  %v2537_v48 = vld [vmem:[%s12050_s9 + $0x8] sm:$0xff] }
 0xada   : > { %v4343_v4 = vpop.permute.xlu0 %4342 }
 0xadb   : > { %8958 = vrsqrt.f32 %v4295_v49  ;;  %v4501_v49 = vld [vmem:[%s11190_s24] sm:$0xff] }
 0xae1   : > { %v8957_v50 = vpop.eup %8956 }
 0xae2   : > { %v4298_v53 = vmul.f32 %v8957_v50, %v4282_v32  ;;  %v4502_v50 = vld [vmem:[%s11190_s24 + $0x8] sm:$0xff] }
 0xae4   : > { %v4306_v56 = vmul.f32 %v7924_v51, %v4298_v53  ;;  %v4504_v53 = vld [vmem:[%s11190_s24 + $0x18] sm:$0xff]  ;;  %s12052_s24 = scalar_lea.vmem [#allocation12], %s11055_s16 }
 0xae5   : > { %v8959_v57 = vpop.eup %8958 }
 0xae6   : > { %v4314_v58 = vadd.f32 %v7925_v54, %v4306_v56  ;;  %v4299_v60 = vmul.f32 %v8959_v57, %v4283_v31 }
 0xae8   : > { %v4321_v62 = vmul.f32 %v4320_v59, %v4314_v58  ;;  %v4307_v0 = vmul.f32 %v7924_v51, %v4299_v60  ;;  %v8563_v51 = vpack.c.bf16 %v4502_v50, %v4501_v49 }
 0xaea   : > { %v4330_v1 = vadd.f32 %v4328_v61, %v4321_v62  ;;  %v4315_v2 = vadd.f32 %v7925_v54, %v4307_v0  ;;  %8564 = vmatprep.subr.bf16.mxu0 %v8563_v51  ;;  %v8567_v54 = vpack.c.bf16 %v4504_v53, %v4503_v52  ;;  %v7931_v0 = vld [vmem:[%s12051_s25] ss:$0 sm:$0xff] }
 0xaeb   : > { %8566 = vmatpush3.bf16.msra.mxu0 %v8563_v51 }
 0xaec   : > { %4331 = vst.msk [vmem:[#allocation3] sm:$0xff] %vm2556_vm1, %v4330_v1  ;;  %v4336_v5 = vmul.f32 %v4335_v3, %v4315_v2  ;;  %8568 = vmatprep.subr.bf16.mxu0 %v8567_v54 }
 0xaee   : > { %v4345_v6 = vadd.f32 %v4343_v4, %v4336_v5  ;;  %v7932_v4 = vld [vmem:[%s12052_s24] ss:$0 sm:$0xff] }
 0xaef   : > { %8570 = vmatpush3.bf16.msra.mxu0 %v8567_v54 }
 0xaf0   : > { %4346 = vst.msk [vmem:[#allocation3 + $0x8] sm:$0xff] %vm2556_vm1, %v4345_v6  ;;  %8579 = vmatprep.subr.bf16.mxu0 %v10095_v55 }
 0xaf3   : > { %v4347_v7 = vld [vmem:[#allocation3] sm:$0xff] }
 0xaf4   : > { %v7926_v8 = vmul.f32 -1.442695, %v4347_v7 }
 0xaf6   : > { %8960 = vpow2.f32 %v7926_v8 }
 0xaf7   : > { %v4348_v9 = vld [vmem:[#allocation3 + $0x8] sm:$0xff] }
 0xaf8   : > { %v7927_v10 = vmul.f32 -1.442695, %v4348_v9 }
 0xafa   : > { %8962 = vpow2.f32 %v7927_v10 }
 0xb00   : > { %v8961_v26 = vpop.eup %8960 }
 0xb01   : > { %v4355_v11 = vadd.f32 1.0, %v8961_v26 }
 0xb03   : > { %8964 = vrcp.f32 %v4355_v11 }
 0xb04   : > { %v8963_v12 = vpop.eup %8962 }
 0xb05   : > { %v4356_v14 = vadd.f32 1.0, %v8963_v12 }
 0xb07   : > { %8966 = vrcp.f32 %v4356_v14 }
 0xb0d   : > { %v8965_v17 = vpop.eup %8964 }
 0xb0e   : > { %v4361_v18 = vmul.f32 %v8965_v17, %v4347_v7 }
 0xb10   : > { %8311 = vmatprep.mubr.msk.f32.mxu1 %vm2556_vm1, %v4361_v18 }
 0xb11   : > { %v8967_v19 = vpop.eup %8966 }
 0xb12   : > { %v4362_v20 = vmul.f32 %v8967_v19, %v4348_v9  ;;  %v7936_v9 = vld [vmem:[%s12053_s29] ss:$0 sm:$0xff]  ;;  %v2538_v19 = vld [vmem:[%s12050_s9 + $0x10] sm:$0xff] }
 0xb14   : > { %8312 = vmatmul.mubr.msk.f32.vlgmr.msra.gmra.mrb[20].mxu1 %vm2556_vm1, %v4362_v20  ;;  %v2539_v20 = vld [vmem:[%s12050_s9 + $0x18] sm:$0xff] }
 0xb15   : > { %8574 = vmatpush3.bf16.msra.mxu1 %v8571_v35  ;;  %8333 = vmatprep.mubr.msk.f32.mxu1 %vm2556_vm1, %v2536_v47 }
 0xb16   : > { %8576 = vmatprep.subr.bf16.mxu1 %v8575_v46 }
 0xb19   : > { %8578 = vmatpush3.bf16.msra.mxu1 %v8575_v46 }
 0xb1a   : > { %8586 = vmatprep.subr.bf16.mxu1 %v10095_v55 }
 0xb1c   : > { %8334 = vmatmul.mubr.msk.f32.vlgmr.msra.gmra.mrb[22].mxu1 %vm2556_vm1, %v2537_v48 }
 0xb1d   : > { %8336 = vmatprep.mubr.msk.f32.mxu1 %vm2556_vm1, %v2538_v19 }
 0xb20   : > { %8337 = vmatmul.mubr.msk.f32.gmra.mrb[24].mxu1 %vm2556_vm1, %v2539_v20 }
 0xb21   : > { %8357 = vmatprep.mubr.msk.f32.mxu1 %vm10084_vm2, %v10083_v16 }
 0xbe7   : > { %v8313_v23 = vpop.f32.mrb[20].mxu1 }
 0xbe8   : > { %v4452_v25 = vadd.f32 %v8313_v23, %v7928_v21  ;;  %v4446_v27 = vpop.f32.mrb[21].mxu1 }
 0xbe9   : > { %v4447_v28 = vadd.f32 %v7928_v21, %v4446_v27 }
 0xbea   : > { %v4456_v29 = vadd.f32 %v4452_v25, %v11213_v15 }
 0xbeb   : > { %v4455_v30 = vadd.f32 %v4447_v28, %v11207_v13  ;;  %v7933_v28 = vld [vmem:[%s12056_s4] ss:$0 sm:$0xff] }
 0xbec   : > { %v4462_v31 = vsel %vm2556_vm1, %v4456_v29, 0.0 }
 0xbed   : > { %4463 = vadd.xlane.f32.xlu0 %v4462_v31  ;;  %v4459_v32 = vsel %vm2556_vm1, %v4455_v30, 0.0 }
 0xbee   : > { %4460 = vadd.xlane.f32.xlu1 %v4459_v32 }
 0xbef   : > { %v8335_v10 = vpop.f32.mrb[22].mxu1 }
 0xbf0   : > { %v4688_v26 = vadd.f32 %v8335_v10, %v7936_v9  ;;  %v4682_v11 = vpop.f32.mrb[23].mxu1 }
 0xbf1   : > { %v4683_v12 = vadd.f32 %v7936_v9, %v4682_v11 }
 0xbf3   : > { %v11481_v17 = vpack.i.bf16 %v4688_v26, %v4683_v12  ;;  %v8580_v18 = vpack.c.bf16 %v4688_v26, %v4683_v12  ;;  %v8338_v33 = vpop.f32.mrb[24].mxu1 }
 0xbf4   : > { %v4692_v34 = vpop.f32.mrb[25].mxu1 }
 0xc7a   : > { %v4464_v36 = vpop.xlane.xlu0 %4463 }
 0xc7b   : > { %v4466_v37 = vmul.f32 0.03125, %v4464_v36  ;;  %v4461_v38 = vpop.xlane.xlu1 %4460 }
 0xc7c   : > { %v4465_v15 = vmul.f32 0.03125, %v4461_v38 }
 0xc7d   : > { %v4468_v39 = vsub.f32 %v4456_v29, %v4466_v37 }
 0xc7e   : > { %v4467_v13 = vsub.f32 %v4455_v30, %v4465_v15 }
 0xc7f   : > { %v4470_v40 = vmul.f32 %v4468_v39, %v4468_v39 }
 0xc80   : > { %v4469_v41 = vmul.f32 %v4467_v13, %v4467_v13 }
 0xc81   : > { %v4474_v42 = vsel %vm2556_vm1, %v4470_v40, 0.0  ;;  %v11524_v40 = vadd.f32 %v7936_v9, %v4692_v34 }
 0xc82   : > { %4475 = vadd.xlane.f32.xlu0 %v4474_v42  ;;  %v4471_v43 = vsel %vm2556_vm1, %v4469_v41, 0.0 }
 0xc83   : > { %4472 = vadd.xlane.f32.xlu1 %v4471_v43  ;;  %v2542_v43 = vld [vmem:[%s12057_s12] sm:$0x3] }
 0xc84   : > { %vm4781_vm11 = vcmp.eq.f32.partialorder %v2542_v43, 0.0 }
 0xc85   : > { %v11533_v45 = vsel %vm4781_vm11, 1, %v10096_v44 }
 0xc86   : > { %v4786_v46 = vrot.slane %v11533_v45, %v11413_v24 }
 0xc88   : > { %vm11537_vm12 = vcmp.eq.s32.totalorder %v4786_v46, 1 }
 0xc94   : > { %8851 = vrot.lane.b32.xlu1 %v11481_v17, %s10086_s22 }
 0xc98   : > { %8856 = vrot.lane.b32.xlu1 %v11481_v17, %s10085_s19 }
 0xd0f   : > { %v4476_v56 = vpop.xlane.xlu0 %4475 }
 0xd10   : > { %v4478_v57 = vmul.f32 0.03125, %v4476_v56  ;;  %v4473_v58 = vpop.xlane.xlu1 %4472 }
 0xd11   : > { %v4477_v59 = vmul.f32 0.03125, %v4473_v58 }
 0xd12   : > { %v4480_v60 = vadd.f32 1e-06, %v4478_v57 }
 0xd13   : > { %v4479_v61 = vadd.f32 1e-06, %v4477_v59 }
 0xd14   : > { %8968 = vrsqrt.f32 %v4480_v60  ;;  %v8852_v21 = vpop.permute.xlu1 %8851 }
 0xd15   : > { %8970 = vrsqrt.f32 %v4479_v61  ;;  %v8854_v23 = vunpack.i.h.bf16 %v8852_v21  ;;  %v8853_v25 = vunpack.i.l.bf16 %v8852_v21 }
 0xd17   : > { %v8587_v27 = vpack.c.bf16 %v8854_v23, %v8853_v25 }
 0xd18   : > { %v8857_v35 = vpop.permute.xlu1 %8856 }
 0xd19   : > { %8589 = vmatpush3.bf16.xpose.msk.msra.mxu1 %vm11477_vm10, %v8587_v27  ;;  %v8859_v36 = vunpack.i.h.bf16 %v8857_v35  ;;  %v8858_v37 = vunpack.i.l.bf16 %v8857_v35 }
 0xd1a   : > { %8593 = vmatprep.subr.bf16.mxu1 %v10095_v55 }
 0xd1b   : > { %v8594_v38 = vpack.c.bf16 %v8859_v36, %v8858_v37 }
 0xd1e   : > { %v8969_v62 = vpop.eup %8968 }
 0xd1f   : > { %v8971_v1 = vpop.eup %8970  ;;  %v4484_v2 = vmul.f32 %v8969_v62, %v4468_v39 }
 0xd20   : > { %v4483_v3 = vmul.f32 %v8971_v1, %v4467_v13  ;;  %v11522_v13 = vadd.f32 %v8338_v33, %v7936_v9 }
 0xd21   : > { %v4492_v5 = vmul.f32 %v7931_v0, %v4484_v2 }
 0xd22   : > { %v4491_v6 = vmul.f32 %v7931_v0, %v4483_v3  ;;  %v11528_v41 = vpack.i.bf16 %v11522_v13, %v11524_v40  ;;  %v8608_v42 = vpack.c.bf16 %v11522_v13, %v11524_v40 }
 0xd23   : > { %v11465_v8 = vadd.f32 %v7932_v4, %v4492_v5 }
 0xd24   : > { %v11463_v7 = vadd.f32 %v7932_v4, %v4491_v6 }
 0xd26   : > { %8322 = vmatprep.mubr.msk.f32.mxu0 %vm2556_vm1, %v11463_v7 }
 0xd27   : > { %8323 = vmatmul.mubr.msk.f32.vlgmr.msra.gmra.mrb[20].mxu0 %vm2556_vm1, %v11465_v8 }
 0xd28   : > { %8343 = vmatprep.mubr.msk.f32.mxu0 %vm10084_vm2, %v10083_v16  ;;  %8582 = vmatpush3.bf16.xpose.msk.msra.mxu0 %vm11477_vm10, %v8580_v18 }
 0xd29   : > { %8583 = vmatprep.subr.bf16.mxu0 %v10095_v55 }
 0xdfa   : > { %v8324_v29 = vpop.f32.mrb[20].mxu0 }
 0xdfb   : > { %v11501_v30 = vadd.f32 %v8324_v29, %v7933_v28  ;;  %v4584_v31 = vpop.f32.mrb[21].mxu0 }
 0xdfc   : > { %v11503_v32 = vadd.f32 %v7933_v28, %v4584_v31 }
 0xdfe   : > { %5059 = vrot.lane.b32.xlu1 %v11503_v32, %s10085_s19  ;;  %4880 = vrot.lane.b32.xlu0 %v11503_v32, %s10086_s22 }
 0xdff   : > { %8344 = vmatmul.mubr.msk.f32.vlgmr.msra.gmra.mrb[22].mxu0 %vm2724_vm3, %v11503_v32 }
 0xe00   : > { %8350 = vmatprep.mubr.msk.f32.mxu0 %vm10084_vm2, %v10083_v16 }
 0xe70   : > { %v4881_v15 = vpop.permute.xlu0 %4880  ;;  %v5060_v39 = vpop.permute.xlu1 %5059 }
 0xe71   : > { %8358 = vmatmul.mubr.msk.f32.vlgmr.msra.gmra.mrb[26].mxu1 %vm2724_vm3, %v4881_v15 }
 0xe72   : > { %8596 = vmatpush3.bf16.xpose.msk.msra.mxu1 %vm11477_vm10, %v8594_v38  ;;  %8371 = vmatprep.mubr.msk.f32.mxu1 %vm10084_vm2, %v10083_v16 }
 0xe73   : > { %8604 = vmatprep.subr.bf16.mxu1 %v10095_v55 }
 0xe79   : > { %8372 = vmatmul.mubr.msk.f32.vlgmr.msra.gmra.mrb[28].mxu1 %vm2724_vm3, %v5060_v39 }
 0xe7a   : > { %8392 = vmatprep.mubr.msk.f32.mxu1 %vm10084_vm2, %v10083_v16 }
 0xed2   : > { %v4776_v47 = vpop.f32.mrb[22].mxu0 }
 0xed3   : > { %v4780_v49 = vmul.f32 0.35355338, %v4776_v47  ;;  %v8345_v50 = vpop.f32.mrb[23].mxu0 }
 0xed5   : > { %v4788_v51 = vsel %vm11537_vm12, -1e+09, %v4780_v49 }
 0xed6   : > { %v4789_v52 = vsel %vm4197_vm6, %v4788_v51, -inf }
 0xed7   : > { %4790 = vmax.xlane.f32.xlu0 %v4789_v52 }
 0xf44   : > { %v4958_v53 = vpop.f32.mrb[26].mxu1 }
 0xf45   : > { %v4962_v54 = vmul.f32 0.35355338, %v4958_v53  ;;  %v8359_v56 = vpop.f32.mrb[27].mxu1 }
 0xf47   : > { %v4963_v57 = vsel %vm11537_vm12, -1e+09, %v4962_v54 }
 0xf48   : > { %v4964_v58 = vsel %vm4197_vm6, %v4963_v57, -inf }
 0xf49   : > { %4965 = vmax.xlane.f32.xlu1 %v4964_v58 }
 0xf4c   : > { %v5137_v59 = vpop.f32.mrb[28].mxu1 }
 0xf4d   : > { %v5141_v60 = vmul.f32 0.35355338, %v5137_v59  ;;  %v8373_v61 = vpop.f32.mrb[29].mxu1 }
 0xf4f   : > { %v5142_v62 = vsel %vm11537_vm12, -1e+09, %v5141_v60 }
 0xf50   : > { %v5143_v0 = vsel %vm4197_vm6, %v5142_v62, -inf }
 0xf51   : > { %5144 = vmax.xlane.f32.xlu0 %v5143_v0 }
 0xf5a   : > { %8861 = vrot.lane.b32.xlu1 %v11481_v17, %s10089_s10 }
 0xf64   : > { %v4791_v1 = vpop.xlane.xlu0 %4790 }
 0xf65   : > { %v4792_v2 = vsub.f32 %v4788_v51, %v4791_v1 }
 0xf67   : > { %v4793_v3 = vmul.f32 1.442695, %v4792_v2 }
 0xf69   : > { %8972 = vpow2.f32 %v4793_v3 }
 0xf73   : > { %v8973_v4 = vpop.eup %8972 }
 0xf74   : > { %v4795_v5 = vsel %vm4197_vm6, %v8973_v4, 0.0 }
 0xf75   : > { %4796 = vadd.xlane.f32.xlu0 %v4795_v5 }
 0xfd6   : > { %v4966_v6 = vpop.xlane.xlu1 %4965 }
 0xfd7   : > { %v4967_v9 = vsub.f32 %v4963_v57, %v4966_v6 }
 0xfd9   : > { %v4968_v10 = vmul.f32 1.442695, %v4967_v9 }
 0xfda   : > { %v8862_v26 = vpop.permute.xlu1 %8861 }
 0xfdb   : > { %8974 = vpow2.f32 %v4968_v10  ;;  %v8864_v11 = vunpack.i.h.bf16 %v8862_v26  ;;  %v8863_v12 = vunpack.i.l.bf16 %v8862_v26 }
 0xfdd   : > { %v8584_v18 = vpack.c.bf16 %v8864_v11, %v8863_v12 }
 0xfde   : > { %v5145_v19 = vpop.xlane.xlu0 %5144 }
 0xfdf   : > { %v5146_v20 = vsub.f32 %v5142_v62, %v5145_v19  ;;  %8585 = vmatpush3.bf16.msra.mxu0 %v8584_v18 }
 0xfe0   : > { %8590 = vmatprep.subr.bf16.mxu0 %v10095_v55 }
 0xfe1   : > { %v5147_v21 = vmul.f32 1.442695, %v5146_v20 }
 0xfe3   : > { %8976 = vpow2.f32 %v5147_v21 }
 0xfe5   : > { %v8975_v23 = vpop.eup %8974 }
 0xfe6   : > { %v4970_v25 = vsel %vm4197_vm6, %v8975_v23, 0.0 }
 0xfe7   : > { %4971 = vadd.xlane.f32.xlu1 %v4970_v25  ;;  %v5500_v25 = vrot.slane %v11533_v45, %v11419_v22 }
 0xfe9   : > { %vm11614_vm13 = vcmp.eq.s32.totalorder %v5500_v25, 1 }
 0xfed   : > { %v8977_v27 = vpop.eup %8976 }
 0xfee   : > { %v5149_v28 = vsel %vm4197_vm6, %v8977_v27, 0.0 }
 0xfef   : > { %5150 = vadd.xlane.f32.xlu0 %v5149_v28 }
 0xff8   : > { %8871 = vrot.lane.b32.xlu1 %v11481_v17, %s10091_s20 }
 0xffc   : > { %8876 = vrot.lane.b32.xlu1 %v11481_v17, %s10087_s13 }
0x1002   : > { %v4797_v29 = vpop.xlane.xlu0 %4796 }
0x1003   : > { %8978 = vrcp.f32 %v4797_v29 }
0x1005   : > { %8866 = vrot.lane.b32.xlu0 %v11481_v17, %s10088_s21 }
0x1009   : > { %5238 = vrot.lane.b32.xlu0 %v11503_v32, %s10087_s13 }
0x100d   : > { %v8979_v31 = vpop.eup %8978 }
0x100e   : > { %v4799_v33 = vmul.f32 %v8979_v31, %v8973_v4 }
0x1010   : > { %8351 = vmatmul.mubr.msk.f32.vlgmr.msra.gmra.mrb[24].mxu0 %vm4197_vm6, %v4799_v33 }
0x1011   : > { %8364 = vmatprep.mubr.msk.f32.mxu0 %vm10084_vm2, %v10083_v16 }
0x1074   : > { %v4972_v34 = vpop.xlane.xlu1 %4971 }
0x1075   : > { %8980 = vrcp.f32 %v4972_v34 }
0x1078   : > { %v8872_v36 = vpop.permute.xlu1 %8871 }
0x1079   : > { %v8874_v43 = vunpack.i.h.bf16 %v8872_v36  ;;  %v8873_v44 = vunpack.i.l.bf16 %v8872_v36 }
0x107b   : > { %v8598_v49 = vpack.c.bf16 %v8874_v43, %v8873_v44 }
0x107c   : > { %v5151_v35 = vpop.xlane.xlu0 %5150  ;;  %v8877_v50 = vpop.permute.xlu1 %8876 }
0x107d   : > { %8982 = vrcp.f32 %v5151_v35  ;;  %v8879_v52 = vunpack.i.h.bf16 %v8877_v50  ;;  %v8878_v53 = vunpack.i.l.bf16 %v8877_v50 }
0x107f   : > { %v8981_v39 = vpop.eup %8980  ;;  %v8601_v54 = vpack.c.bf16 %v8879_v52, %v8878_v53 }
0x1080   : > { %v8867_v37 = vpop.permute.xlu0 %8866  ;;  %v4974_v32 = vmul.f32 %v8981_v39, %v8975_v23 }
0x1081   : > { %v8869_v38 = vunpack.i.h.bf16 %v8867_v37  ;;  %v8868_v15 = vunpack.i.l.bf16 %v8867_v37 }
0x1083   : > { %v8591_v46 = vpack.c.bf16 %v8869_v38, %v8868_v15 }
0x1084   : > { %v5239_v56 = vpop.permute.xlu0 %5238 }
0x1085   : > { %8592 = vmatpush3.bf16.msra.mxu0 %v8591_v46 }
0x1086   : > { %8597 = vmatprep.subr.bf16.mxu0 %v10095_v55 }
0x1087   : > { %v8983_v47 = vpop.eup %8982 }
0x1088   : > { %8365 = vmatmul.mubr.msk.f32.vlgmr.msra.gmra.mrb[26].mxu0 %vm4197_vm6, %v4974_v32  ;;  %v5153_v51 = vmul.f32 %v8983_v47, %v8977_v27 }
0x1089   : > { %8599 = vmatpush3.bf16.msra.mxu0 %v8598_v49  ;;  %8378 = vmatprep.mubr.msk.f32.mxu0 %vm10084_vm2, %v10083_v16 }
0x108a   : > { %8600 = vmatprep.subr.bf16.mxu0 %v10095_v55 }
0x108c   : > { %8379 = vmatmul.mubr.msk.f32.vlgmr.msra.gmra.mrb[28].mxu0 %vm4197_vm6, %v5153_v51 }
0x108d   : > { %8385 = vmatprep.mubr.msk.f32.mxu0 %vm10084_vm2, %v10083_v16 }
0x1092   : > { %8603 = vmatpush3.bf16.xpose.msk.msra.mxu0 %vm11477_vm10, %v8601_v54 }
0x1093   : > { %8611 = vmatprep.subr.bf16.mxu0 %v10095_v55 }
0x1099   : > { %8386 = vmatmul.mubr.msk.f32.vlgmr.msra.gmra.mrb[30].mxu0 %vm2724_vm3, %v5239_v56 }
0x109a   : > { %8406 = vmatprep.mubr.msk.f32.mxu0 %vm10084_vm2, %v10083_v16 }
0x10e3   : > { %v4875_v57 = vpop.f32.mrb[24].mxu0 }
0x10e4   : > { %4879 = vst.msk [vmem:[#allocation2] sm:$0xff] %vm2724_vm3, %v4875_v57  ;;  %v8352_v58 = vpop.f32.mrb[25].mxu0 }
0x115b   : > { %v11582_v59 = vpop.f32.mrb[26].mxu0 }
0x115c   : > { %v8366_v60 = vpop.f32.mrb[27].mxu0 }
0x115f   : > { %v11584_v61 = vpop.f32.mrb[28].mxu0 }
0x1160   : > { %v8380_v62 = vpop.f32.mrb[29].mxu0 }
0x116c   : > { %v5316_v0 = vpop.f32.mrb[30].mxu0 }
0x116d   : > { %v5320_v1 = vmul.f32 0.35355338, %v5316_v0  ;;  %v8387_v2 = vpop.f32.mrb[31].mxu0 }
0x116f   : > { %v5321_v3 = vsel %vm11537_vm12, -1e+09, %v5320_v1 }
0x1170   : > { %v5322_v4 = vsel %vm4197_vm6, %v5321_v3, -inf }
0x1171   : > { %5323 = vmax.xlane.f32.xlu1 %v5322_v4 }
0x11fe   : > { %v5324_v5 = vpop.xlane.xlu1 %5323 }
0x11ff   : > { %v5325_v6 = vsub.f32 %v5321_v3, %v5324_v5 }
0x1201   : > { %v5326_v9 = vmul.f32 1.442695, %v5325_v6 }
0x1203   : > { %8984 = vpow2.f32 %v5326_v9 }
0x120d   : > { %v8985_v10 = vpop.eup %8984 }
0x120e   : > { %v5328_v26 = vsel %vm4197_vm6, %v8985_v10, 0.0 }
0x120f   : > { %5329 = vadd.xlane.f32.xlu0 %v5328_v26 }
0x1225   : > { %8881 = vrot.lane.b32.xlu0 %v11481_v17, %s10090_s15 }
0x1229   : > { %8891 = vrot.lane.b32.xlu0 %v11528_v41, %s10086_s22 }
0x122d   : > { %5594 = vrot.lane.b32.xlu0 %v11501_v30, %s10086_s22  ;;  %s12066_s22 = scalar_lea.vmem [#allocation33], %s11055_s16 }
0x129c   : > { %v5330_v48 = vpop.xlane.xlu0 %5329 }
0x129d   : > { %8986 = vrcp.f32 %v5330_v48 }
0x12a0   : > { %v8882_v11 = vpop.permute.xlu0 %8881 }
0x12a1   : > { %v8884_v12 = vunpack.i.h.bf16 %v8882_v11  ;;  %v8883_v18 = vunpack.i.l.bf16 %v8882_v11 }
0x12a3   : > { %v8605_v19 = vpack.c.bf16 %v8884_v12, %v8883_v18 }
0x12a4   : > { %v8892_v43 = vpop.permute.xlu0 %8891 }
0x12a5   : > { %8606 = vmatpush3.bf16.msra.mxu1 %v8605_v19  ;;  %v8894_v46 = vunpack.i.h.bf16 %v8892_v43  ;;  %v8893_v32 = vunpack.i.l.bf16 %v8892_v43 }
0x12a6   : > { %8607 = vmatprep.subr.bf16.mxu1 %v10095_v55 }
0x12a7   : > { %v8987_v20 = vpop.eup %8986  ;;  %v8615_v49 = vpack.c.bf16 %v8894_v46, %v8893_v32 }
0x12a8   : > { %v5332_v21 = vmul.f32 %v8987_v20, %v8985_v10  ;;  %v5595_v50 = vpop.permute.xlu0 %5594 }
0x12aa   : > { %8393 = vmatmul.mubr.msk.f32.vlgmr.msra.gmra.mrb[30].mxu1 %vm4197_vm6, %v5332_v21 }
0x12ab   : > { %8399 = vmatprep.mubr.msk.f32.mxu1 %vm10084_vm2, %v10083_v16 }
0x12ae   : > { %8610 = vmatpush3.bf16.xpose.msk.msra.mxu1 %vm11477_vm10, %v8608_v42 }
0x12af   : > { %8618 = vmatprep.subr.bf16.mxu1 %v10095_v55 }
0x12b5   : > { %8400 = vmatmul.mubr.msk.f32.vlgmr.msra.gmra.mrb[32].mxu1 %vm2724_vm3, %v11501_v30 }
0x12b6   : > { %8420 = vmatprep.mubr.msk.f32.mxu1 %vm10084_vm2, %v10083_v16 }
0x137d   : > { %v11610_v17 = vpop.f32.mrb[30].mxu1 }
0x137e   : > { %v8394_v23 = vpop.f32.mrb[31].mxu1 }
0x1388   : > { %v5492_v27 = vpop.f32.mrb[32].mxu1 }
0x1389   : > { %v5496_v40 = vmul.f32 0.35355338, %v5492_v27  ;;  %v8401_v42 = vpop.f32.mrb[33].mxu1 }
0x138b   : > { %v5502_v28 = vsel %vm11614_vm13, -1e+09, %v5496_v40 }
0x138c   : > { %v5503_v29 = vsel %vm4197_vm6, %v5502_v28, -inf }
0x138d   : > { %5504 = vmax.xlane.f32.xlu1 %v5503_v29 }
0x141a   : > { %v5505_v31 = vpop.xlane.xlu1 %5504 }
0x141b   : > { %v5506_v33 = vsub.f32 %v5502_v28, %v5505_v31 }
0x141d   : > { %v5507_v34 = vmul.f32 1.442695, %v5506_v33 }
0x141f   : > { %8988 = vpow2.f32 %v5507_v34 }
0x1429   : > { %v8989_v35 = vpop.eup %8988 }
0x142a   : > { %v5509_v45 = vsel %vm4197_vm6, %v8989_v35, 0.0 }
0x142b   : > { %5510 = vadd.xlane.f32.xlu1 %v5509_v45 }
0x143c   : > { %8886 = vrot.lane.b32.xlu1 %v11528_v41, %s10089_s10 }
0x14b8   : > { %v5511_v36 = vpop.xlane.xlu1 %5510 }
0x14b9   : > { %8990 = vrcp.f32 %v5511_v36 }
0x14bc   : > { %v8887_v37 = vpop.permute.xlu1 %8886 }
0x14bd   : > { %v8889_v38 = vunpack.i.h.bf16 %v8887_v37  ;;  %v8888_v15 = vunpack.i.l.bf16 %v8887_v37 }
0x14bf   : > { %v8612_v39 = vpack.c.bf16 %v8889_v38, %v8888_v15 }
0x14c1   : > { %8613 = vmatpush3.bf16.msra.mxu0 %v8612_v39 }
0x14c2   : > { %8614 = vmatprep.subr.bf16.mxu0 %v10095_v55 }
0x14c3   : > { %v8991_v44 = vpop.eup %8990 }
0x14c4   : > { %v5513_v47 = vmul.f32 %v8991_v44, %v8989_v35 }
0x14c6   : > { %8407 = vmatmul.mubr.msk.f32.vlgmr.msra.gmra.mrb[32].mxu0 %vm4197_vm6, %v5513_v47 }
0x14c7   : > { %8413 = vmatprep.mubr.msk.f32.mxu0 %vm10084_vm2, %v10083_v16 }
0x14ca   : > { %8617 = vmatpush3.bf16.xpose.msk.msra.mxu0 %vm11477_vm10, %v8615_v49 }
0x14cb   : > { %8625 = vmatprep.subr.bf16.mxu0 %v10095_v55 }
0x14d1   : > { %8414 = vmatmul.mubr.msk.f32.vlgmr.msra.gmra.mrb[34].mxu0 %vm2724_vm3, %v5595_v50 }
0x14d2   : > { %8434 = vmatprep.mubr.msk.f32.mxu0 %vm10084_vm2, %v10083_v16 }
0x1599   : > { %v5589_v51 = vpop.f32.mrb[32].mxu0 }
0x159a   : > { %5593 = vst.msk [vmem:[#allocation2 + $0x8] sm:$0xff] %vm2724_vm3, %v5589_v51  ;;  %v8408_v52 = vpop.f32.mrb[33].mxu0 }
0x15a4   : > { %v5672_v53 = vpop.f32.mrb[34].mxu0 }
0x15a5   : > { %v5676_v54 = vmul.f32 0.35355338, %v5672_v53  ;;  %v8415_v56 = vpop.f32.mrb[35].mxu0 }
0x15a7   : > { %v5677_v57 = vsel %vm11614_vm13, -1e+09, %v5676_v54 }
0x15a8   : > { %v5678_v58 = vsel %vm4197_vm6, %v5677_v57, -inf }
0x15a9   : > { %5679 = vmax.xlane.f32.xlu1 %v5678_v58 }
0x15ba   : > { %8901 = vrot.lane.b32.xlu1 %v11528_v41, %s10085_s19 }
0x15be   : > { %5773 = vrot.lane.b32.xlu1 %v11501_v30, %s10085_s19  ;;  %s12064_s19 = scalar_lea.vmem [#allocation30], %s11055_s16 }
0x1636   : > { %v5680_v60 = vpop.xlane.xlu1 %5679 }
0x1637   : > { %v5681_v62 = vsub.f32 %v5677_v57, %v5680_v60 }
0x1639   : > { %v5682_v0 = vmul.f32 1.442695, %v5681_v62 }
0x163a   : > { %v8902_v10 = vpop.permute.xlu1 %8901 }
0x163b   : > { %8992 = vpow2.f32 %v5682_v0  ;;  %v8904_v48 = vunpack.i.h.bf16 %v8902_v10  ;;  %v8903_v11 = vunpack.i.l.bf16 %v8902_v10  ;;  %v6134_v10 = vld [vmem:[%s11196_s27 + $0x8] sm:$0xff] }
0x163d   : > { %v8622_v18 = vpack.c.bf16 %v8904_v48, %v8903_v11  ;;  %v6135_v48 = vld [vmem:[%s11196_s27 + $0x10] sm:$0xff]  ;;  %v6136_v11 = vld [vmem:[%s11196_s27 + $0x18] sm:$0xff] }
0x163e   : > { %v5774_v19 = vpop.permute.xlu1 %5773 }
0x1645   : > { %v8993_v1 = vpop.eup %8992 }
0x1646   : > { %v5684_v2 = vsel %vm4197_vm6, %v8993_v1, 0.0 }
0x1647   : > { %5685 = vadd.xlane.f32.xlu0 %v5684_v2 }
0x165d   : > { %8896 = vrot.lane.b32.xlu0 %v11528_v41, %s10088_s21  ;;  %s12069_s21 = scalar_lea.vmem [#allocation36], %s11055_s16 }
0x16d4   : > { %v5686_v3 = vpop.xlane.xlu0 %5685 }
0x16d5   : > { %8994 = vrcp.f32 %v5686_v3 }
0x16d8   : > { %v8897_v4 = vpop.permute.xlu0 %8896 }
0x16d9   : > { %v8899_v5 = vunpack.i.h.bf16 %v8897_v4  ;;  %v8898_v6 = vunpack.i.l.bf16 %v8897_v4 }
0x16db   : > { %v8619_v9 = vpack.c.bf16 %v8899_v5, %v8898_v6 }
0x16dd   : > { %8620 = vmatpush3.bf16.msra.mxu1 %v8619_v9  ;;  %v6133_v9 = vld [vmem:[%s11196_s27] sm:$0xff]  ;;  %s12062_s27 = scalar_lea.vmem [#allocation22], %s11055_s16 }
0x16de   : > { %8621 = vmatprep.subr.bf16.mxu1 %v10095_v55 }
0x16df   : > { %v8995_v26 = vpop.eup %8994 }
0x16e0   : > { %v5688_v12 = vmul.f32 %v8995_v26, %v8993_v1  ;;  %v8635_v26 = vpack.c.bf16 %v6134_v10, %v6133_v9 }
0x16e2   : > { %8421 = vmatmul.mubr.msk.f32.vlgmr.msra.gmra.mrb[34].mxu1 %vm4197_vm6, %v5688_v12  ;;  %v8639_v12 = vpack.c.bf16 %v6136_v11, %v6135_v48 }
0x16e3   : > { %8427 = vmatprep.mubr.msk.f32.mxu1 %vm10084_vm2, %v10083_v16 }
0x16e6   : > { %8624 = vmatpush3.bf16.xpose.msk.msra.mxu1 %vm11477_vm10, %v8622_v18  ;;  %v6225_v18 = vld [vmem:[%s11115_s0] sm:$0xff] }
0x16e7   : > { %8632 = vmatprep.subr.bf16.mxu1 %v10095_v55 }
0x16ed   : > { %8428 = vmatmul.mubr.msk.f32.vlgmr.msra.gmra.mrb[36].mxu1 %vm2724_vm3, %v5774_v19  ;;  %v6226_v19 = vld [vmem:[%s11115_s0 + $0x8] sm:$0xff]  ;;  %s12063_s0 = scalar_lea.vmem [#allocation28], %s11055_s16 }
0x16ee   : > { %8448 = vmatprep.mubr.msk.f32.mxu1 %vm10084_vm2, %v10083_v16 }
0x17b5   : > { %v11655_v20 = vpop.f32.mrb[34].mxu1 }
0x17b6   : > { %v8422_v21 = vpop.f32.mrb[35].mxu1 }
0x17c0   : > { %v5851_v23 = vpop.f32.mrb[36].mxu1 }
0x17c1   : > { %v5855_v25 = vmul.f32 0.35355338, %v5851_v23  ;;  %v8429_v27 = vpop.f32.mrb[37].mxu1 }
0x17c3   : > { %v5856_v40 = vsel %vm11614_vm13, -1e+09, %v5855_v25 }
0x17c4   : > { %v5857_v42 = vsel %vm4197_vm6, %v5856_v40, -inf }
0x17c5   : > { %5858 = vmax.xlane.f32.xlu0 %v5857_v42 }
0x17db   : > { %8906 = vrot.lane.b32.xlu0 %v11528_v41, %s10091_s20  ;;  %s12075_s20 = sld [smem:[#allocation116_spill]] }
0x17df   : > { %5952 = vrot.lane.b32.xlu0 %v11501_v30, %s10087_s13 }
0x17e1   : > { %p8753_p9 = scmp.eq.s32.totalorder %s12075_s20, 1 }
0x17e3   : > { %p9882_p11 = pnand %p9881_p2, %p8753_p9 }
0x17e5   : > { %p9883_p10 = pneg %p9882_p11 }
0x17e7   : > { %p9890_p0 = pnand %p9889_p13, %p9883_p10 }
0x1852   : > { %v5859_v28 = vpop.xlane.xlu0 %5858 }
0x1853   : > { %v5860_v29 = vsub.f32 %v5856_v40, %v5859_v28  ;;  %v7973_v40 = vld [vmem:[%s12062_s27] ss:$0 sm:$0xff] }
0x1855   : > { %v5861_v31 = vmul.f32 1.442695, %v5860_v29 }
0x1856   : > { %v8907_v33 = vpop.permute.xlu0 %8906 }
0x1857   : > { %8996 = vpow2.f32 %v5861_v31  ;;  %v8909_v34 = vunpack.i.h.bf16 %v8907_v33  ;;  %v8908_v35 = vunpack.i.l.bf16 %v8907_v33 }
0x1859   : > { %v8626_v45 = vpack.c.bf16 %v8909_v34, %v8908_v35  ;;  %v7976_v35 = vld [vmem:[%s12063_s0] ss:$0 sm:$0xff] }
0x185a   : > { %v5953_v32 = vpop.permute.xlu0 %5952 }
0x185b   : > { %8627 = vmatpush3.bf16.msra.mxu0 %v8626_v45 }
0x185c   : > { %8628 = vmatprep.subr.bf16.mxu0 %v10095_v55 }
0x1861   : > { %v8997_v36 = vpop.eup %8996 }
0x1862   : > { %v5863_v37 = vsel %vm4197_vm6, %v8997_v36, 0.0 }
0x1863   : > { %5864 = vadd.xlane.f32.xlu1 %v5863_v37 }
0x1874   : > { %8911 = vrot.lane.b32.xlu1 %v11528_v41, %s10087_s13  ;;  %s12067_s13 = scalar_lea.vmem [#allocation24], %s11055_s16 }
0x18f0   : > { %v5865_v38 = vpop.xlane.xlu1 %5864 }
0x18f1   : > { %8998 = vrcp.f32 %v5865_v38 }
0x18f4   : > { %v8912_v30 = vpop.permute.xlu1 %8911 }
0x18f5   : > { %v8914_v15 = vunpack.i.h.bf16 %v8912_v30  ;;  %v8913_v39 = vunpack.i.l.bf16 %v8912_v30 }
0x18f7   : > { %v8629_v46 = vpack.c.bf16 %v8914_v15, %v8913_v39 }
0x18fb   : > { %v8999_v43 = vpop.eup %8998 }
0x18fc   : > { %v5867_v44 = vmul.f32 %v8999_v43, %v8997_v36 }
0x18fe   : > { %8435 = vmatmul.mubr.msk.f32.vlgmr.msra.gmra.mrb[36].mxu0 %vm4197_vm6, %v5867_v44 }
0x18ff   : > { %8631 = vmatpush3.bf16.xpose.msk.msra.mxu0 %vm11477_vm10, %v8629_v46  ;;  %8441 = vmatprep.mubr.msk.f32.mxu0 %vm10084_vm2, %v10083_v16 }
0x1900   : > { %8643 = vmatprep.subr.bf16.mxu0 %v10095_v55 }
0x1906   : > { %8442 = vmatmul.mubr.msk.f32.vlgmr.msra.gmra.mrb[38].mxu0 %vm2724_vm3, %v5953_v32 }
0x1907   : > { %8466 = vmatprep.mubr.msk.f32.mxu0 %vm10084_vm2, %v10083_v16 }
0x19d1   : > { %v5943_v47 = vpop.f32.mrb[36].mxu0 }
0x19d2   : > { %v8436_v49 = vpop.f32.mrb[37].mxu0 }
0x19d9   : > { %v6030_v50 = vpop.f32.mrb[38].mxu0 }
0x19da   : > { %v6034_v51 = vmul.f32 0.35355338, %v6030_v50  ;;  %v8443_v52 = vpop.f32.mrb[39].mxu0 }
0x19db   : > { %v6395_v52 = vld [vmem:[%s11199_s28] sm:$0xff] }
0x19dc   : > { %v6035_v14 = vsel %vm11614_vm13, -1e+09, %v6034_v51 }
0x19dd   : > { %v6036_v53 = vsel %vm4197_vm6, %v6035_v14, -inf }
0x19de   : > { %6037 = vmax.xlane.f32.xlu1 %v6036_v53  ;;  %v6397_v53 = vld [vmem:[%s11199_s28 + $0x10] sm:$0xff] }
0x19ef   : > { %5055 = vrot.lane.b32.xlu1 %v11582_v59, %s10092_s1 }
0x19f3   : > { %5234 = vrot.lane.b32.xlu1 %v11584_v61, %s10093_s11 }
0x19f7   : > { %5413 = vrot.lane.b32.xlu1 %v11610_v17, %s10094_s8 }
0x1a6b   : > { %v6038_v54 = vpop.xlane.xlu1 %6037 }
0x1a6c   : > { %v6039_v56 = vsub.f32 %v6035_v14, %v6038_v54  ;;  %v6396_v14 = vld [vmem:[%s11199_s28 + $0x8] sm:$0xff] }
0x1a6d   : > { %v8646_v54 = vpack.c.bf16 %v6396_v14, %v6395_v52 }
0x1a6e   : > { %v6040_v57 = vmul.f32 1.442695, %v6039_v56  ;;  %v6398_v56 = vld [vmem:[%s11199_s28 + $0x18] sm:$0xff]  ;;  %s12065_s28 = scalar_lea.vmem [#allocation31], %s11055_s16 }
0x1a6f   : > { %v5056_v58 = vpop.permute.xlu1 %5055 }
0x1a70   : > { %9000 = vpow2.f32 %v6040_v57  ;;  %5058 = vst.msk [vmem:[#allocation2] sm:$0xff] %vm3063_vm7, %v5056_v58  ;;  %v8650_v57 = vpack.c.bf16 %v6398_v56, %v6397_v53  ;;  %v6534_v56 = vld [vmem:[%s11133_s3 + $0x8] sm:$0xff] }
0x1a73   : > { %v5235_v13 = vpop.permute.xlu1 %5234 }
0x1a74   : > { %5237 = vst.msk [vmem:[#allocation2] sm:$0xff] %vm3236_vm8, %v5235_v13 }
0x1a77   : > { %v5414_v60 = vpop.permute.xlu1 %5413 }
0x1a78   : > { %5416 = vst.msk [vmem:[#allocation2] sm:$0xff] %vm3409_vm9, %v5414_v60 }
0x1a7a   : > { %v9001_v59 = vpop.eup %9000 }
0x1a7b   : > { %v6042_v62 = vsel %vm4197_vm6, %v9001_v59, 0.0 }
0x1a7c   : > { %6043 = vadd.xlane.f32.xlu0 %v6042_v62 }
0x1a7f   : > { %v6131_v6 = vld [vmem:[#allocation2] sm:$0xff] }
0x1a92   : > { %8916 = vrot.lane.b32.xlu0 %v11528_v41, %s10090_s15  ;;  %s12074_s15 = scalar_lea.vmem [#allocation49], %s11055_s16 }
0x1a96   : > { %5769 = vrot.lane.b32.xlu0 %v11655_v20, %s10092_s1  ;;  %v8644_v20 = vpack.c.bf16 %v6226_v19, %v6225_v18 }
0x1a98   : > { %8645 = vmatpush3.bf16.msra.mxu0 %v8644_v20 }
0x1a99   : > { %8647 = vmatprep.subr.bf16.mxu0 %v8646_v54 }
0x1a9a   : > { %5948 = vrot.lane.b32.xlu0 %v5943_v47, %s10093_s11  ;;  %s12076_s11 = scalar_lea.vmem [#allocation39], %s11055_s16 }
0x1a9b   : > { %8467 = vmatmul.mubr.msk.f32.vlgmr.msra.gmra.mrb[40].mxu0 %vm4197_vm6, %v11395_v63 }
0x1a9c   : > { %8649 = vmatpush3.bf16.msra.mxu0 %v8646_v54  ;;  %v6533_v54 = vld [vmem:[%s11133_s3] sm:$0xff] }
0x1a9d   : > { %8651 = vmatprep.subr.bf16.mxu0 %v8650_v57 }
0x1aa0   : > { %8653 = vmatpush3.bf16.msra.mxu0 %v8650_v57  ;;  %v8654_v57 = vpack.c.bf16 %v6534_v56, %v6533_v54 }
0x1b09   : > { %v6044_v61 = vpop.xlane.xlu0 %6043 }
0x1b0a   : > { %9002 = vrcp.f32 %v6044_v61 }
0x1b0d   : > { %v8917_v17 = vpop.permute.xlu0 %8916 }
0x1b0e   : > { %v8919_v0 = vunpack.i.h.bf16 %v8917_v17  ;;  %v8918_v1 = vunpack.i.l.bf16 %v8917_v17 }
0x1b10   : > { %v8633_v2 = vpack.c.bf16 %v8919_v0, %v8918_v1  ;;  %v7978_v0 = vld [vmem:[%s12064_s19] ss:$0 sm:$0xff] }
0x1b11   : > { %v5770_v3 = vpop.permute.xlu0 %5769 }
0x1b12   : > { %5772 = vst.msk [vmem:[#allocation2 + $0x8] sm:$0xff] %vm3063_vm7, %v5770_v3  ;;  %8634 = vmatpush3.bf16.msra.mxu1 %v8633_v2  ;;  %v7979_v3 = vld [vmem:[%s12065_s28] ss:$0 sm:$0xff] }
0x1b13   : > { %8636 = vmatprep.subr.bf16.mxu1 %v8635_v26 }
0x1b14   : > { %v9003_v41 = vpop.eup %9002 }
0x1b15   : > { %v6046_v4 = vmul.f32 %v9003_v41, %v9001_v59  ;;  %v5949_v5 = vpop.permute.xlu0 %5948 }
0x1b16   : > { %5951 = vst.msk [vmem:[#allocation2 + $0x8] sm:$0xff] %vm3236_vm8, %v5949_v5 }
0x1b17   : > { %8449 = vmatmul.mubr.msk.f32.vlgmr.msra.gmra.mrb[38].mxu1 %vm4197_vm6, %v6046_v4 }
0x1b18   : > { %8459 = vmatprep.mubr.msk.f32.mxu1 %vm2556_vm1, %v6131_v6  ;;  %8638 = vmatpush3.bf16.msra.mxu1 %v8635_v26 }
0x1b19   : > { %8640 = vmatprep.subr.bf16.mxu1 %v8639_v12 }
0x1b1c   : > { %8642 = vmatpush3.bf16.msra.mxu1 %v8639_v12 }
0x1b1d   : > { %8655 = vmatprep.subr.bf16.mxu1 %v8654_v57 }
0x1b6e   : > { %v6300_v45 = vpop.f32.mrb[40].mxu0 }
0x1b6f   : > { %v6301_v36 = vadd.f32 %v7976_v35, %v6300_v45  ;;  %v8468_v37 = vpop.f32.mrb[41].mxu0 }
0x1b71   : > { %v6357_v38 = vrot.slane %v6301_v36, %v11413_v24  ;;  %v6372_v51 = vrot.slane %v6301_v36, %v11419_v22  ;;  %v6348_v1 = vadd.f32 1.0, %v6301_v36  ;;  %v7982_v36 = vld [vmem:[%s12066_s22] ss:$0 sm:$0xff] }
0x1b73   : > { %v6352_v5 = vrot.slane %v6348_v1, %v11413_v24  ;;  %v6367_v18 = vrot.slane %v6348_v1, %v11419_v22 }
0x1bea   : > { %v6122_v21 = vpop.f32.mrb[38].mxu1 }
0x1beb   : > { %6127 = vrot.lane.b32.xlu1 %v6122_v21, %s10094_s8  ;;  %v8450_v23 = vpop.f32.mrb[39].mxu1  ;;  %s12077_s8 = scalar_lea.vmem [#allocation40], %s11055_s16 }
0x1c5d   : > { %v6128_v25 = vpop.permute.xlu1 %6127 }
0x1c5e   : > { %6130 = vst.msk [vmem:[#allocation2 + $0x8] sm:$0xff] %vm3409_vm9, %v6128_v25 }
0x1c65   : > { %v6132_v27 = vld [vmem:[#allocation2 + $0x8] sm:$0xff] }
0x1c66   : > { %8460 = vmatmul.mubr.msk.f32.vlgmr.msra.gmra.mrb[40].mxu1 %vm2556_vm1, %v6132_v27 }
0x1c67   : > { %8657 = vmatpush3.bf16.msra.mxu1 %v8654_v57 }
0x1d39   : > { %v8461_v42 = vpop.f32.mrb[40].mxu1 }
0x1d3a   : > { %v6222_v28 = vadd.f32 %v8461_v42, %v7973_v40  ;;  %v6216_v29 = vpop.f32.mrb[41].mxu1 }
0x1d3b   : > { %v6217_v31 = vadd.f32 %v7973_v40, %v6216_v29 }
0x1d3c   : > { %v6309_v33 = vsel %vm2556_vm1, %v6222_v28, 0.0 }
0x1d3d   : > { %6310 = vadd.xlane.f32.xlu1 %v6309_v33  ;;  %v6306_v34 = vsel %vm2556_vm1, %v6217_v31, 0.0 }
0x1d3e   : > { %6307 = vadd.xlane.f32.xlu0 %v6306_v34 }
0x1d4e   : > { %6359 = vrot.lane.b32.xlu1 %v6357_v38, %s10089_s10 }
0x1dca   : > { %v6311_v30 = vpop.xlane.xlu1 %6310 }
0x1dcb   : > { %v6313_v15 = vmul.f32 0.03125, %v6311_v30  ;;  %v6308_v39 = vpop.xlane.xlu0 %6307 }
0x1dcc   : > { %v6312_v43 = vmul.f32 0.03125, %v6308_v39 }
0x1dcd   : > { %v6315_v44 = vsub.f32 %v6222_v28, %v6313_v15 }
0x1dce   : > { %v6314_v46 = vsub.f32 %v6217_v31, %v6312_v43  ;;  %v6360_v10 = vpop.permute.xlu1 %6359 }
0x1dcf   : > { %v6317_v49 = vmul.f32 %v6315_v44, %v6315_v44 }
0x1dd0   : > { %v6316_v32 = vmul.f32 %v6314_v46, %v6314_v46 }
0x1dd1   : > { %v6321_v50 = vsel %vm2556_vm1, %v6317_v49, 0.0 }
0x1dd2   : > { %v6318_v47 = vsel %vm2556_vm1, %v6316_v32, 0.0 }
0x1dd3   : > { %6319 = vadd.xlane.f32.xlu0 %v6318_v47 }
0x1dd7   : > { %6322 = vadd.xlane.f32.xlu0 %v6321_v50 }
0x1ded   : > { %6374 = vrot.lane.b32.xlu0 %v6372_v51, %s10089_s10 }
0x1e60   : > { %v6320_v58 = vpop.xlane.xlu0 %6319 }
0x1e61   : > { %v6324_v13 = vmul.f32 0.03125, %v6320_v58  ;;  %v6535_v58 = vld [vmem:[%s11133_s3 + $0x10] sm:$0xff] }
0x1e63   : > { %v6326_v60 = vadd.f32 1e-05, %v6324_v13  ;;  %v6536_v13 = vld [vmem:[%s11133_s3 + $0x18] sm:$0xff]  ;;  %s12068_s3 = scalar_lea.vmem [#allocation25], %s11055_s16 }
0x1e64   : > { %v6323_v59 = vpop.xlane.xlu0 %6322 }
0x1e65   : > { %9004 = vrsqrt.f32 %v6326_v60  ;;  %v6325_v62 = vmul.f32 0.03125, %v6323_v59  ;;  %v8658_v60 = vpack.c.bf16 %v6536_v13, %v6535_v58 }
0x1e67   : > { %v6327_v61 = vadd.f32 1e-05, %v6325_v62  ;;  %8659 = vmatprep.subr.bf16.mxu1 %v8658_v60 }
0x1e68   : > { %v6375_v19 = vpop.permute.xlu0 %6374  ;;  %8661 = vmatpush3.bf16.msra.mxu1 %v8658_v60 }
0x1e69   : > { %9006 = vrsqrt.f32 %v6327_v61  ;;  %8678 = vmatprep.subr.bf16.mxu1 %v10095_v55  ;;  %v7986_v55 = vld [vmem:[%s12068_s3] ss:$0 sm:$0xff] }
0x1e6f   : > { %v9005_v17 = vpop.eup %9004 }
0x1e70   : > { %v6330_v2 = vmul.f32 %v9005_v17, %v6314_v46 }
0x1e72   : > { %v6338_v41 = vmul.f32 %v7978_v0, %v6330_v2 }
0x1e73   : > { %v9007_v4 = vpop.eup %9006 }
0x1e74   : > { %v6346_v6 = vadd.f32 %v7979_v3, %v6338_v41  ;;  %v6331_v9 = vmul.f32 %v9007_v4, %v6315_v44 }
0x1e76   : > { %v6353_v26 = vmul.f32 %v6352_v5, %v6346_v6  ;;  %v6339_v48 = vmul.f32 %v7978_v0, %v6331_v9 }
0x1e78   : > { %v6362_v11 = vadd.f32 %v6360_v10, %v6353_v26  ;;  %v6347_v12 = vadd.f32 %v7979_v3, %v6339_v48  ;;  %v7985_v3 = vld [vmem:[%s12067_s13] ss:$0 sm:$0xff] }
0x1e79   : > { %v6643_v48 = vld [vmem:[%s11202_s30] sm:$0xff] }
0x1e7a   : > { %6363 = vst.msk [vmem:[#allocation3] sm:$0xff] %vm2556_vm1, %v6362_v11  ;;  %v6368_v20 = vmul.f32 %v6367_v18, %v6347_v12  ;;  %v6644_v11 = vld [vmem:[%s11202_s30 + $0x8] sm:$0xff]  ;;  %v6645_v18 = vld [vmem:[%s11202_s30 + $0x10] sm:$0xff] }
0x1e7b   : > { %v8662_v12 = vpack.c.bf16 %v6644_v11, %v6643_v48  ;;  %v6910_v11 = vld [vmem:[%s11168_s2] sm:$0xff] }
0x1e7c   : > { %v6377_v21 = vadd.f32 %v6375_v19, %v6368_v20  ;;  %v6646_v19 = vld [vmem:[%s11202_s30 + $0x18] sm:$0xff]  ;;  %v6647_v20 = vld [vmem:[%s11202_s30 + $0x20] sm:$0xff] }
0x1e7d   : > { %8663 = vmatprep.subr.bf16.mxu0 %v8662_v12 }
0x1e7e   : > { %6378 = vst.msk [vmem:[#allocation3 + $0x8] sm:$0xff] %vm2556_vm1, %v6377_v21  ;;  %v8666_v21 = vpack.c.bf16 %v6646_v19, %v6645_v18  ;;  %v6912_v18 = vld [vmem:[%s11168_s2 + $0x10] sm:$0xff] }
0x1e81   : > { %v6379_v23 = vld [vmem:[#allocation3] sm:$0xff] }
0x1e82   : > { %v7980_v25 = vmul.f32 -1.442695, %v6379_v23 }
0x1e84   : > { %9008 = vpow2.f32 %v7980_v25 }
0x1e85   : > { %v6380_v27 = vld [vmem:[#allocation3 + $0x8] sm:$0xff] }
0x1e86   : > { %v7981_v40 = vmul.f32 -1.442695, %v6380_v27 }
0x1e88   : > { %9010 = vpow2.f32 %v7981_v40  ;;  %v6650_v40 = vld [vmem:[%s11202_s30 + $0x38] sm:$0xff] }
0x1e8e   : > { %v9009_v42 = vpop.eup %9008 }
0x1e8f   : > { %v6387_v28 = vadd.f32 1.0, %v9009_v42  ;;  %v6740_v42 = vld [vmem:[%s11153_s18] sm:$0xff] }
0x1e91   : > { %9012 = vrcp.f32 %v6387_v28  ;;  %v6741_v28 = vld [vmem:[%s11153_s18 + $0x8] sm:$0xff]  ;;  %s12071_s18 = scalar_lea.vmem [#allocation43], %s11055_s16 }
0x1e92   : > { %v9011_v29 = vpop.eup %9010 }
0x1e93   : > { %v6388_v31 = vadd.f32 1.0, %v9011_v29  ;;  %v8679_v29 = vpack.c.bf16 %v6741_v28, %v6740_v42 }
0x1e95   : > { %9014 = vrcp.f32 %v6388_v31  ;;  %v7987_v31 = vld [vmem:[%s12069_s21] ss:$0 sm:$0xff] }
0x1e9b   : > { %v9013_v33 = vpop.eup %9012 }
0x1e9c   : > { %v6393_v34 = vmul.f32 %v9013_v33, %v6379_v23  ;;  %v6648_v23 = vld [vmem:[%s11202_s30 + $0x28] sm:$0xff] }
0x1e9d   : > { %v8670_v25 = vpack.c.bf16 %v6648_v23, %v6647_v20  ;;  %v6913_v20 = vld [vmem:[%s11168_s2 + $0x18] sm:$0xff] }
0x1e9e   : > { %8477 = vmatprep.mubr.msk.f32.mxu0 %vm2556_vm1, %v6393_v34 }
0x1e9f   : > { %v9015_v35 = vpop.eup %9014 }
0x1ea0   : > { %v6394_v45 = vmul.f32 %v9015_v35, %v6380_v27  ;;  %v6649_v27 = vld [vmem:[%s11202_s30 + $0x30] sm:$0xff]  ;;  %s12070_s30 = scalar_lea.vmem [#allocation37], %s11055_s16 }
0x1ea2   : > { %8478 = vmatmul.mubr.msk.f32.vlgmr.msra.gmra.mrb[42].mxu0 %vm2556_vm1, %v6394_v45 }
0x1ea3   : > { %8665 = vmatpush3.bf16.msra.mxu0 %v8662_v12  ;;  %v6911_v12 = vld [vmem:[%s11168_s2 + $0x8] sm:$0xff]  ;;  %s12073_s2 = scalar_lea.vmem [#allocation46], %s11055_s16 }
0x1ea4   : > { %8667 = vmatprep.subr.bf16.mxu0 %v8666_v21  ;;  %v8681_v19 = vpack.c.bf16 %v6911_v12, %v6910_v11 }
0x1ea7   : > { %8669 = vmatpush3.bf16.msra.mxu0 %v8666_v21  ;;  %v8685_v21 = vpack.c.bf16 %v6913_v20, %v6912_v18 }
0x1ea8   : > { %8671 = vmatprep.subr.bf16.mxu0 %v8670_v25 }
0x1eab   : > { %8673 = vmatpush3.bf16.msra.mxu0 %v8670_v25 }
0x1f75   : > { %v8479_v37 = vpop.f32.mrb[42].mxu0 }
0x1f76   : > { %v6484_v38 = vadd.f32 %v8479_v37, %v7982_v36  ;;  %v6478_v30 = vpop.f32.mrb[43].mxu0 }
0x1f77   : > { %v6479_v15 = vadd.f32 %v7982_v36, %v6478_v30 }
0x1f78   : > { %v6488_v39 = vadd.f32 %v6484_v38, %v11465_v8 }
0x1f79   : > { %v6487_v43 = vadd.f32 %v6479_v15, %v11463_v7 }
0x1f7a   : > { %v6494_v44 = vsel %vm2556_vm1, %v6488_v39, 0.0 }
0x1f7b   : > { %6495 = vadd.xlane.f32.xlu0 %v6494_v44  ;;  %v6491_v46 = vsel %vm2556_vm1, %v6487_v43, 0.0 }
0x1f7c   : > { %6492 = vadd.xlane.f32.xlu1 %v6491_v46 }
0x2008   : > { %v6496_v32 = vpop.xlane.xlu0 %6495 }
0x2009   : > { %v6498_v47 = vmul.f32 0.03125, %v6496_v32  ;;  %v6493_v49 = vpop.xlane.xlu1 %6492 }
0x200a   : > { %v6497_v50 = vmul.f32 0.03125, %v6493_v49 }
0x200b   : > { %v6500_v51 = vsub.f32 %v6488_v39, %v6498_v47 }
0x200c   : > { %v6499_v52 = vsub.f32 %v6487_v43, %v6497_v50 }
0x200d   : > { %v6502_v14 = vmul.f32 %v6500_v51, %v6500_v51 }
0x200e   : > { %v6501_v8 = vmul.f32 %v6499_v52, %v6499_v52 }
0x200f   : > { %v6506_v7 = vsel %vm2556_vm1, %v6502_v14, 0.0 }
0x2010   : > { %6507 = vadd.xlane.f32.xlu0 %v6506_v7  ;;  %v6503_v53 = vsel %vm2556_vm1, %v6501_v8, 0.0  ;;  %v7990_v7 = vld [vmem:[%s12070_s30] ss:$0 sm:$0xff] }
0x2011   : > { %6504 = vadd.xlane.f32.xlu1 %v6503_v53 }
0x209d   : > { %v6508_v59 = vpop.xlane.xlu0 %6507 }
0x209e   : > { %v6510_v62 = vmul.f32 0.03125, %v6508_v59  ;;  %v6505_v61 = vpop.xlane.xlu1 %6504 }
0x209f   : > { %v6509_v17 = vmul.f32 0.03125, %v6505_v61 }
0x20a0   : > { %v6512_v0 = vadd.f32 1e-06, %v6510_v62 }
0x20a1   : > { %v6511_v1 = vadd.f32 1e-06, %v6509_v17 }
0x20a2   : > { %9016 = vrsqrt.f32 %v6512_v0 }
0x20a3   : > { %9018 = vrsqrt.f32 %v6511_v1 }
0x20ac   : > { %v9017_v2 = vpop.eup %9016 }
0x20ad   : > { %v9019_v41 = vpop.eup %9018  ;;  %v6516_v4 = vmul.f32 %v9017_v2, %v6500_v51 }
0x20ae   : > { %v6515_v5 = vmul.f32 %v9019_v41, %v6499_v52 }
0x20af   : > { %v6524_v6 = vmul.f32 %v7985_v3, %v6516_v4 }
0x20b0   : > { %v6523_v9 = vmul.f32 %v7985_v3, %v6515_v5 }
0x20b1   : > { %v11755_v26 = vadd.f32 %v7986_v55, %v6524_v6 }
0x20b2   : > { %v11753_v10 = vadd.f32 %v7986_v55, %v6523_v9  ;;  %v7993_v55 = vld [vmem:[%s12071_s18] ss:$0 sm:$0xff] }
0x20b4   : > { %8488 = vmatprep.mubr.msk.f32.mxu1 %vm2556_vm1, %v11753_v10 }
0x20b5   : > { %8489 = vmatmul.mubr.msk.f32.vlgmr.msra.gmra.mrb[42].mxu1 %vm2556_vm1, %v11755_v26 }
0x20b6   : > { %8514 = vmatprep.mubr.msk.f32.mxu1 %vm10084_vm2, %v10083_v16  ;;  %v8674_v16 = vpack.c.bf16 %v6650_v40, %v6649_v27  ;;  %8680 = vmatpush3.bf16.msra.mxu1 %v8679_v29 }
0x20b7   : > { %8682 = vmatprep.subr.bf16.mxu1 %v8681_v19 }
0x20b8   : > { %8675 = vmatprep.subr.bf16.mxu0 %v8674_v16 }
0x20b9   : > { %8677 = vmatpush3.bf16.msra.mxu0 %v8674_v16  ;;  %8515 = vmatmul.mubr.msk.f32.vlgmr.msra.gmra.mrb[44].mxu1 %vm4197_vm6, %v11395_v63 }
0x20ba   : > { %8684 = vmatpush3.bf16.msra.mxu1 %v8681_v19 }
0x20bb   : > { %8686 = vmatprep.subr.bf16.mxu1 %v8685_v21 }
0x20be   : > { %8688 = vmatpush3.bf16.msra.mxu1 %v8685_v21  ;;  %v8002_v21 = vld [vmem:[%s12076_s11] ss:$0 sm:$0xff] }
0x2188   : > { %v8490_v33 = vpop.f32.mrb[42].mxu1 }
0x2189   : > { %v6622_v34 = vadd.f32 %v8490_v33, %v7987_v31  ;;  %v6616_v35 = vpop.f32.mrb[43].mxu1 }
0x218a   : > { %v6617_v45 = vadd.f32 %v7987_v31, %v6616_v35  ;;  %v7996_v35 = vld [vmem:[%s12073_s2] ss:$0 sm:$0xff] }
0x218b   : > { %v6628_v36 = vmul.f32 0.044715, %v6622_v34  ;;  %v6626_v52 = vmul.f32 0.5, %v6622_v34 }
0x218c   : > { %v6627_v37 = vmul.f32 0.044715, %v6617_v45  ;;  %v6625_v50 = vmul.f32 0.5, %v6617_v45  ;;  %v6815_v60 = vpop.f32.mrb[44].mxu1 }
0x218d   : > { %v6630_v38 = vmul.f32 %v6628_v36, %v6622_v34  ;;  %v8516_v59 = vpop.f32.mrb[45].mxu1  ;;  %v6816_v6 = vadd.f32 %v7993_v55, %v6815_v60 }
0x218e   : > { %v6629_v30 = vmul.f32 %v6627_v37, %v6617_v45 }
0x218f   : > { %v6632_v15 = vmul.f32 %v6630_v38, %v6622_v34  ;;  %v6872_v9 = vrot.slane %v6816_v6, %v11413_v24  ;;  %v6887_v48 = vrot.slane %v6816_v6, %v11419_v22  ;;  %v6863_v33 = vadd.f32 1.0, %v6816_v6 }
0x2190   : > { %v6631_v39 = vmul.f32 %v6629_v30, %v6617_v45 }
0x2191   : > { %v6634_v43 = vadd.f32 %v6632_v15, %v6622_v34  ;;  %v6882_v30 = vrot.slane %v6863_v33, %v11419_v22 }
0x2192   : > { %v6633_v44 = vadd.f32 %v6631_v39, %v6617_v45 }
0x2193   : > { %v6636_v46 = vmul.f32 0.7978846, %v6634_v43  ;;  %v6867_v43 = vrot.slane %v6863_v33, %v11413_v24 }
0x2194   : > { %v6635_v32 = vmul.f32 0.7978846, %v6633_v44 }
0x2195   : > { %9020 = vtanh.f32 %v6636_v46 }
0x2196   : > { %9022 = vtanh.f32 %v6635_v32 }
0x219f   : > { %v9021_v63 = vpop.eup %9020 }
0x21a0   : > { %v9023_v47 = vpop.eup %9022  ;;  %v6640_v49 = vadd.f32 1.0, %v9021_v63 }
0x21a1   : > { %v6639_v51 = vadd.f32 1.0, %v9023_v47 }
0x21a2   : > { %v6642_v8 = vmul.f32 %v6640_v49, %v6626_v52 }
0x21a3   : > { %v6641_v14 = vmul.f32 %v6639_v51, %v6625_v50 }
0x21a5   : > { %8507 = vmatprep.mubr.msk.f32.mxu0 %vm6658_vm14, %v6641_v14 }
0x21a6   : > { %8508 = vmatmul.mubr.msk.f32.vlgmr.msra.gmra.mrb[44].mxu0 %vm6658_vm14, %v6642_v8 }
0x2279   : > { %v8509_v53 = vpop.f32.mrb[44].mxu0 }
0x227a   : > { %v6737_v54 = vadd.f32 %v8509_v53, %v7990_v7  ;;  %v6731_v56 = vpop.f32.mrb[45].mxu0 }
0x227b   : > { %v6732_v57 = vadd.f32 %v7990_v7, %v6731_v56 }
0x227c   : > { %v6824_v58 = vsel %vm2556_vm1, %v6737_v54, 0.0 }
0x227d   : > { %6825 = vadd.xlane.f32.xlu0 %v6824_v58  ;;  %v6821_v13 = vsel %vm2556_vm1, %v6732_v57, 0.0 }
0x227e   : > { %6822 = vadd.xlane.f32.xlu1 %v6821_v13 }
0x230a   : > { %v6826_v62 = vpop.xlane.xlu0 %6825 }
0x230b   : > { %v6828_v61 = vmul.f32 0.03125, %v6826_v62  ;;  %v6823_v17 = vpop.xlane.xlu1 %6822 }
0x230c   : > { %v6827_v0 = vmul.f32 0.03125, %v6823_v17 }
0x230d   : > { %v6830_v1 = vsub.f32 %v6737_v54, %v6828_v61 }
0x230e   : > { %v6829_v2 = vsub.f32 %v6732_v57, %v6827_v0  ;;  %v7999_v57 = vld [vmem:[%s12074_s15] ss:$0 sm:$0xff] }
0x230f   : > { %v6832_v3 = vmul.f32 %v6830_v1, %v6830_v1 }
0x2310   : > { %v6831_v41 = vmul.f32 %v6829_v2, %v6829_v2 }
0x2311   : > { %v6836_v4 = vsel %vm2556_vm1, %v6832_v3, 0.0 }
0x2312   : > { %6837 = vadd.xlane.f32.xlu0 %v6836_v4  ;;  %v6833_v5 = vsel %vm2556_vm1, %v6831_v41, 0.0 }
0x2313   : > { %6834 = vadd.xlane.f32.xlu1 %v6833_v5 }
0x2324   : > { %6874 = vrot.lane.b32.xlu1 %v6872_v9, %s10089_s10 }
0x2328   : > { %6889 = vrot.lane.b32.xlu0 %v6887_v48, %s10089_s10  ;;  %s12072_s10 = scalar_lea.vmem [#allocation45], %s11055_s16 }
0x2329   : > { %v7995_v29 = vld [vmem:[%s12072_s10] ss:$0 sm:$0xff] }
0x239f   : > { %v6838_v23 = vpop.xlane.xlu0 %6837 }
0x23a0   : > { %v6840_v25 = vmul.f32 0.03125, %v6838_v23  ;;  %v6835_v27 = vpop.xlane.xlu1 %6834 }
0x23a1   : > { %v6839_v40 = vmul.f32 0.03125, %v6835_v27 }
0x23a2   : > { %v6842_v16 = vadd.f32 1e-05, %v6840_v25 }
0x23a3   : > { %v6841_v42 = vadd.f32 1e-05, %v6839_v40  ;;  %v6890_v15 = vpop.permute.xlu0 %6889  ;;  %v8003_v40 = vld [vmem:[%s12077_s8] ss:$0 sm:$0xff] }
0x23a4   : > { %9024 = vrsqrt.f32 %v6842_v16  ;;  %v6875_v46 = vpop.permute.xlu1 %6874 }
0x23a5   : > { %9026 = vrsqrt.f32 %v6841_v42 }
0x23ae   : > { %v9025_v28 = vpop.eup %9024 }
0x23af   : > { %v9027_v31 = vpop.eup %9026  ;;  %v6846_v34 = vmul.f32 %v9025_v28, %v6830_v1 }
0x23b0   : > { %v6845_v45 = vmul.f32 %v9027_v31, %v6829_v2 }
0x23b1   : > { %v6854_v36 = vmul.f32 %v7995_v29, %v6846_v34 }
0x23b2   : > { %v6853_v37 = vmul.f32 %v7995_v29, %v6845_v45 }
0x23b3   : > { %v6862_v38 = vadd.f32 %v7996_v35, %v6854_v36 }
0x23b4   : > { %v6861_v39 = vadd.f32 %v7996_v35, %v6853_v37 }
0x23b5   : > { %v6883_v44 = vmul.f32 %v6882_v30, %v6862_v38 }
0x23b6   : > { %v6868_v32 = vmul.f32 %v6867_v43, %v6861_v39 }
0x23b7   : > { %v6892_v63 = vadd.f32 %v6890_v15, %v6883_v44 }
0x23b8   : > { %v6877_v47 = vadd.f32 %v6875_v46, %v6868_v32 }
0x23b9   : > { %6893 = vst.msk [vmem:[#allocation3 + $0x8] sm:$0xff] %vm2556_vm1, %v6892_v63 }
0x23ba   : > { %6878 = vst.msk [vmem:[#allocation3] sm:$0xff] %vm2556_vm1, %v6877_v47 }
0x23c0   : > { %v6895_v49 = vld [vmem:[#allocation3 + $0x8] sm:$0xff] }
0x23c1   : > { %v6894_v50 = vld [vmem:[#allocation3] sm:$0xff]  ;;  %v7998_v51 = vmul.f32 -1.442695, %v6895_v49 }
0x23c2   : > { %v7997_v52 = vmul.f32 -1.442695, %v6894_v50 }
0x23c3   : > { %9028 = vpow2.f32 %v7998_v51 }
0x23c4   : > { %9030 = vpow2.f32 %v7997_v52 }
0x23cd   : > { %v9029_v22 = vpop.eup %9028 }
0x23ce   : > { %v9031_v14 = vpop.eup %9030  ;;  %v6903_v8 = vadd.f32 1.0, %v9029_v22 }
0x23cf   : > { %v6902_v24 = vadd.f32 1.0, %v9031_v14 }
0x23d0   : > { %9032 = vrcp.f32 %v6903_v8 }
0x23d1   : > { %9034 = vrcp.f32 %v6902_v24 }
0x23da   : > { %v9033_v7 = vpop.eup %9032 }
0x23db   : > { %v9035_v53 = vpop.eup %9034  ;;  %v6909_v56 = vmul.f32 %v9033_v7, %v6895_v49 }
0x23dc   : > { %v6908_v54 = vmul.f32 %v9035_v53, %v6894_v50 }
0x23de   : > { %8525 = vmatprep.mubr.msk.f32.mxu1 %vm2556_vm1, %v6908_v54 }
0x23df   : > { %8526 = vmatmul.mubr.msk.f32.vlgmr.msra.gmra.mrb[46].mxu1 %vm2556_vm1, %v6909_v56 }
0x24b2   : > { %v8527_v58 = vpop.f32.mrb[46].mxu1 }
0x24b3   : > { %v6999_v13 = vadd.f32 %v8527_v58, %v7999_v57  ;;  %v6993_v60 = vpop.f32.mrb[47].mxu1 }
0x24b4   : > { %v6994_v59 = vadd.f32 %v7999_v57, %v6993_v60 }
0x24b5   : > { %v7003_v62 = vadd.f32 %v6999_v13, %v11755_v26 }
0x24b6   : > { %v7002_v61 = vadd.f32 %v6994_v59, %v11753_v10 }
0x24b7   : > { %v7009_v17 = vsel %vm2556_vm1, %v7003_v62, 0.0 }
0x24b8   : > { %7010 = vadd.xlane.f32.xlu0 %v7009_v17  ;;  %v7006_v0 = vsel %vm2556_vm1, %v7002_v61, 0.0 }
0x24b9   : > { %7007 = vadd.xlane.f32.xlu1 %v7006_v0 }
0x2545   : > { %v7011_v1 = vpop.xlane.xlu0 %7010 }
0x2546   : > { %v7013_v2 = vmul.f32 0.03125, %v7011_v1  ;;  %v7008_v3 = vpop.xlane.xlu1 %7007 }
0x2547   : > { %v7012_v41 = vmul.f32 0.03125, %v7008_v3 }
0x2548   : > { %v7015_v4 = vsub.f32 %v7003_v62, %v7013_v2 }
0x2549   : > { %v7014_v5 = vsub.f32 %v7002_v61, %v7012_v41 }
0x254a   : > { %v7017_v55 = vmul.f32 %v7015_v4, %v7015_v4 }
0x254b   : > { %v7016_v6 = vmul.f32 %v7014_v5, %v7014_v5 }
0x254c   : > { %v7021_v9 = vsel %vm2556_vm1, %v7017_v55, 0.0 }
0x254d   : > { %7022 = vadd.xlane.f32.xlu0 %v7021_v9  ;;  %v7018_v10 = vsel %vm2556_vm1, %v7016_v6, 0.0 }
0x254e   : > { %7019 = vadd.xlane.f32.xlu1 %v7018_v10 }
0x25da   : > { %v7023_v26 = vpop.xlane.xlu0 %7022 }
0x25db   : > { %v7025_v48 = vmul.f32 0.03125, %v7023_v26  ;;  %v7020_v11 = vpop.xlane.xlu1 %7019 }
0x25dc   : > { %v7024_v12 = vmul.f32 0.03125, %v7020_v11 }
0x25dd   : > { %v7027_v18 = vadd.f32 1e-06, %v7025_v48 }
0x25de   : > { %v7026_v19 = vadd.f32 1e-06, %v7024_v12 }
0x25df   : > { %9036 = vrsqrt.f32 %v7027_v18 }
0x25e0   : > { %9038 = vrsqrt.f32 %v7026_v19 }
0x25e9   : > { %v9037_v20 = vpop.eup %9036 }
0x25ea   : > { %v9039_v23 = vpop.eup %9038  ;;  %v7031_v25 = vmul.f32 %v9037_v20, %v7015_v4 }
0x25eb   : > { %v7030_v27 = vmul.f32 %v9039_v23, %v7014_v5 }
0x25ec   : > { %v7039_v16 = vmul.f32 %v8002_v21, %v7031_v25 }
0x25ed   : > { %v7038_v42 = vmul.f32 %v8002_v21, %v7030_v27 }
0x25ee   : > { %v7047_v28 = vadd.f32 %v8003_v40, %v7039_v16 }
0x25ef   : > { %v7046_v29 = vadd.f32 %v8003_v40, %v7038_v42 }
0x25f0   : > { %7049 = vst.msk [vmem:[#allocation51 + $0x8] sm:$0xff] %vm2556_vm1, %v7047_v28 }
0x25f1   : > { %7048 = vst.msk [vmem:[#allocation51] sm:$0xff] %vm2556_vm1, %v7046_v29 }
0x25f2   : > { %9893 = shalt.err (!%p9890_p0)
}
0x25f3   : > { %s12078_s16 = sld [smem:[#allocation114_spill]] }
0x25f9   : > { %s9894_s17 = scalar_lea.hbm %s12078_s16, 256 }
0x25fa   : > { %p9895_p5 = scmp.ne.s32.totalorder %s12078_s16, %s9894_s17  ;;  %p9900_p1 = scmp.lt.u32.totalorder %s9894_s17, %s12078_s16 }
0x25fc   : > { %p9896_p6 = pnand %p9895_p5, %p8753_p9 }
0x25fe   : > { %p9897_p7 = pneg %p9896_p6 }
0x2600   : > { %p9902_p4 = pnand %p9900_p1, %p9897_p7 }
0x2602   : > { %9905 = shalt.err (!%p9902_p4)
}
0x2603   : > { %s10098_s25 = smov 128  }
0x2604   : > { %8750 = dma.vmem_to_hbm [thread:$0]  (%p8753_p9), %s7057_s6, 256, %s12078_s16, [#allocation6], %s10098_s25, %s10098_s25, %s10092_s1  }
0x2605   : > { %9987 = dma.done.wait (%p8753_p9), [#allocation6], 256  }
0x2606   : > { %9989 = vsyncadd (%p8753_p9), [#allocation6], 4294967040 }
0x2607 PF: > { %s12079_s11 = sld [smem:[#allocation117_spill]]  ;;  %s12080_s24 = sld [smem:[#allocation115_spill]] }
0x2608   : > { %s12081_s10 = sld [smem:[#allocation118_spill]]  ;;  %s12082_s0 = smov %s9996_s7 }
0x260d   : > { %p147_p8 = scmp.ge.s32.totalorder %s12079_s11, 4   ;;  %s12083_s7 = smov %s12080_s24 }
0x260f   :  { %149 = sbr.rel (!%p147_p8) target bundleno = 129 (0x81), region = 665 }
0x2616   :  { %7072 = vsyncpa [#allocation5], 1 }
0x2617   :  { %7074 = vsyncpa [#allocation5 + $0x1], 1 }
0x2618   :  { %7075 = vsyncpa [#allocation8], 1 }
0x2619   :  { %7077 = vsyncpa [#allocation8 + $0x1], 1 }
0x261a   :  { %7078 = vsyncpa [#allocation11], 1 }
0x261b   :  { %7080 = vsyncpa [#allocation11 + $0x1], 1 }
0x261c   :  { %7081 = vsyncpa [#allocation14], 1 }
0x261d   :  { %7083 = vsyncpa [#allocation14 + $0x1], 1 }
0x261e   :  { %7084 = vsyncpa [#allocation17], 1 }
0x261f   :  { %7086 = vsyncpa [#allocation17 + $0x1], 1 }
0x2620   :  { %7087 = vsyncpa [#allocation20], 1 }
0x2621   :  { %7089 = vsyncpa [#allocation20 + $0x1], 1 }
0x2622   :  { %7090 = vsyncpa [#allocation23], 1 }
0x2623   :  { %7092 = vsyncpa [#allocation23 + $0x1], 1 }
0x2624   :  { %7093 = vsyncpa [#allocation26], 1 }
0x2625   :  { %7095 = vsyncpa [#allocation26 + $0x1], 1 }
0x2626   :  { %7096 = vsyncpa [#allocation29], 1 }
0x2627   :  { %7098 = vsyncpa [#allocation29 + $0x1], 1 }
0x2628   :  { %7099 = vsyncpa [#allocation32], 1 }
0x2629   :  { %7101 = vsyncpa [#allocation32 + $0x1], 1 }
0x262a   :  { %7102 = vsyncpa [#allocation35], 1 }
0x262b   :  { %7104 = vsyncpa [#allocation35 + $0x1], 1 }
0x262c   :  { %7105 = vsyncpa [#allocation38], 1 }
0x262d   :  { %7107 = vsyncpa [#allocation38 + $0x1], 1 }
0x262e   :  { %7108 = vsyncpa [#allocation41], 1 }
0x262f   :  { %7110 = vsyncpa [#allocation41 + $0x1], 1 }
0x2630   :  { %7111 = vsyncpa [#allocation44], 1 }
0x2631   :  { %7113 = vsyncpa [#allocation44 + $0x1], 1 }
0x2632   :  { %7114 = vsyncpa [#allocation47], 1 }
0x2633   :  { %7116 = vsyncpa [#allocation47 + $0x1], 1 }
0x2634   :  { %7117 = vsyncpa [#allocation50], 1 }
0x2635   :  { %7119 = vsyncpa [#allocation50 + $0x1], 1 }
0x2636   :  { %7120 = vsyncpa [#allocation6], 1 }
0x2637   :  { %7122 = vsyncpa [#allocation6 + $0x1], 1 }

</bundles_post_ra>
